<compile_context>
chip_gen: v7x
topology: tpu7x:2x2x1
jax: 0.10.0
libtpu: 0.0.40
codegen_flags: <defaults>
</compile_context>

<pallas_src>
import jax
import jax.numpy as jnp
from jax.experimental import pallas as pl
from jax.experimental.pallas import tpu as pltpu


# ---------------------------------- kernel -----------------------------------

def _pct_kernel(x_ref, xyz_ref,
                conv1_w_ref, pos_w_ref, pos_b_ref, bn1_s_ref, bn1_t_ref,
                qk_w_ref, v_w_ref, v_b_ref, t_w_ref, t_b_ref,
                obn_s_ref, obn_t_ref,
                out_ref):
    """One batch element per grid step.  All activations are (C, N): N on lanes."""
    bf16 = jnp.bfloat16
    f32 = jnp.float32

    x = x_ref[...]                      # (C, N)  f32
    xyz = xyz_ref[...]                  # (3, N)  f32

    # pos_xyz: Conv1d(3 -> C, k=1) + bias  (tiny K=3 contraction, kept in f32).
    xyz_e = jnp.dot(pos_w_ref[...], xyz, preferred_element_type=f32) + pos_b_ref[...]  # (C, N)

    # x = relu(bn1(conv1(x)))  -- BN folded to per-channel scale/shift (inference mode).
    h = jnp.dot(conv1_w_ref[...], x.astype(bf16), preferred_element_type=f32)          # (C, N)
    h = jnp.maximum(h * bn1_s_ref[...] + bn1_t_ref[...], 0.0)

    C = h.shape[0]
    for i in range(4):                              # 4 stacked OA layers (static unroll)
        xin = h + xyz_e                             # (C, N)  position embedding added
        xin_bf = xin.astype(bf16)

        # q/k share the same bias-free weights; v has a bias.
        qk = jnp.dot(qk_w_ref[i], xin_bf, preferred_element_type=f32)                  # (C/4, N)
        xv = jnp.dot(v_w_ref[i], xin_bf, preferred_element_type=f32) + v_b_ref[i]      # (C, N)

        # energy[n, m] = sum_c qk[c, n] * qk[c, m]
        qk_bf = qk.astype(bf16)
        energy = jax.lax.dot_general(qk_bf, qk_bf, (((0,), (0,)), ((), ())),
                                     preferred_element_type=f32)                       # (N, N)

        # softmax over keys (last axis) fused with the offset column re-normalization
        # (sum over queries), divisions replaced by EUP reciprocals.
        p = jnp.exp(energy - jnp.max(energy, axis=-1, keepdims=True))                  # (N, N)
        r_row = pl.reciprocal(jnp.sum(p, axis=-1, keepdims=True), approx=True)         # (N, 1)
        att = p * r_row                                                                # softmax
        r_col = pl.reciprocal(1e-9 + jnp.sum(att, axis=0, keepdims=True), approx=True) # (1, N)
        att = (att * r_col).astype(bf16)                                               # (N, N)

        # x_r[c, m] = sum_n xv[c, n] * att[n, m]
        x_r = jnp.dot(xv.astype(bf16), att, preferred_element_type=f32)                # (C, N)

        # x_r = relu(bn(trans_conv(x - x_r)));  x = x + x_r
        t = jnp.dot(t_w_ref[i], (xin - x_r).astype(bf16),
                    preferred_element_type=f32) + t_b_ref[i]                           # (C, N)
        t = jnp.maximum(t * obn_s_ref[i] + obn_t_ref[i], 0.0)
        h = xin + t

        # lane-dense write into the single (4*C, N) output block at channel offset i*C
        out_ref[i * C:(i + 1) * C, :] = h.astype(out_ref.dtype)


# --------------------------------- wrapper -----------------------------------

def _vmem_limit_bytes(C, N):
    """Rough per-grid-step working-set estimate (with margin), clamped to [32, 64] MiB."""
    f32, bf16 = 4, 2
    io = 2 * (C * N + 3 * N + 4 * C * N) * f32          # double-buffered x / xyz / out blocks
    weights = 2 * ((9 * C * C + C * C) * bf16 + 16 * C * f32)
    acts = 12 * C * N * f32                              # (C, N) temporaries across a layer
    attn = 3 * N * N * f32                               # softmax / renorm peak
    est = io + weights + acts + attn
    return int(min(max(2 * est, 32 * 1024 * 1024), 64 * 1024 * 1024))


def offset_attention_position_embedding(x, xyz, params):
    """x: (B, C, N) [PyTorch NCW], xyz: (B, N, 3).  Returns (B, 4*C, N)."""
    B, C, N = x.shape
    C4 = C // 4
    xyz_cf = jnp.transpose(xyz, (0, 2, 1))               # (B, 3, N) -- mirrors xyz.permute(0,2,1)

    # Fold eval-mode BatchNorm1d into per-channel scale/shift.
    eps = 1e-5

    def fold_bn(g, b, mean, var):
        s = g * jax.lax.rsqrt(var + eps)
        return s, b - mean * s

    bn1_s, bn1_t = fold_bn(params['bn1_g'], params['bn1_b'],
                           params['bn1_mean'], params['bn1_var'])
    obn_s, obn_t = fold_bn(params['obn_g'], params['obn_b'],
                           params['obn_mean'], params['obn_var'])

    bf16 = jnp.bfloat16
    args = (x, xyz_cf,
            params['conv1_w'].astype(bf16), params['pos_w'], params['pos_b'],
            bn1_s, bn1_t,
            params['qk_w'].astype(bf16), params['v_w'].astype(bf16), params['v_b'],
            params['t_w'].astype(bf16), params['t_b'],
            obn_s, obn_t)

    per_b = lambda b: (b, 0, 0)     # per-batch blocks
    w2 = lambda b: (0, 0)           # resident 2-D weights (constant block index)
    w3 = lambda b: (0, 0, 0)        # resident stacked per-layer weights

    in_specs = [
        pl.BlockSpec((None, C, N), per_b),      # x            (B, C, N)
        pl.BlockSpec((None, 3, N), per_b),      # xyz          (B, 3, N)
        pl.BlockSpec((C, C), w2),               # conv1_w      bf16
        pl.BlockSpec((C, 3), w2),               # pos_w
        pl.BlockSpec((C, 1), w2),               # pos_b
        pl.BlockSpec((C, 1), w2),               # bn1 scale
        pl.BlockSpec((C, 1), w2),               # bn1 shift
        pl.BlockSpec((4, C4, C), w3),           # qk_w         bf16
        pl.BlockSpec((4, C, C), w3),            # v_w          bf16
        pl.BlockSpec((4, C, 1), w3),            # v_b
        pl.BlockSpec((4, C, C), w3),            # t_w          bf16
        pl.BlockSpec((4, C, 1), w3),            # t_b
        pl.BlockSpec((4, C, 1), w3),            # oa bn scale
        pl.BlockSpec((4, C, 1), w3),            # oa bn shift
    ]
    out_spec = pl.BlockSpec((None, 4 * C, N), per_b)

    return pl.pallas_call(
        _pct_kernel,
        grid=(B,),
        out_shape=jax.ShapeDtypeStruct((B, 4 * C, N), x.dtype),
        in_specs=in_specs,
        out_specs=out_spec,
        compiler_params=pltpu.CompilerParams(
            dimension_semantics=("parallel",),
            vmem_limit_bytes=_vmem_limit_bytes(C, N)),
    )(*args)


# ----------------------------- parameter setup -------------------------------

def init_params(key, C):
    C4 = C // 4
    ks = jax.random.split(key, 16)

    def w(k, shape, fan_in):
        return jax.random.normal(k, shape, jnp.float32) / jnp.sqrt(float(fan_in))

    return {
        'conv1_w':  w(ks[0], (C, C), C),                  # conv1 (bias=False), (out, in)
        'pos_w':    w(ks[1], (C, 3), 3),                  # pos_xyz weight
        'pos_b':    0.01 * jax.random.normal(ks[2], (C, 1), jnp.float32),
        'bn1_g':    1.0 + 0.1 * jax.random.normal(ks[3], (C, 1), jnp.float32),
        'bn1_b':    0.1 * jax.random.normal(ks[4], (C, 1), jnp.float32),
        'bn1_mean': 0.1 * jax.random.normal(ks[5], (C, 1), jnp.float32),
        'bn1_var':  1.0 + 0.1 * jax.random.uniform(ks[6], (C, 1), jnp.float32),
        # stacked parameters for the 4 OA layers
        'qk_w':     w(ks[7], (4, C4, C), C),              # shared q/k weight (bias=False)
        'v_w':      w(ks[8], (4, C, C), C),
        'v_b':      0.01 * jax.random.normal(ks[9], (4, C, 1), jnp.float32),
        't_w':      w(ks[10], (4, C, C), C),
        't_b':      0.01 * jax.random.normal(ks[11], (4, C, 1), jnp.float32),
        'obn_g':    1.0 + 0.1 * jax.random.normal(ks[12], (4, C, 1), jnp.float32),
        'obn_b':    0.1 * jax.random.normal(ks[13], (4, C, 1), jnp.float32),
        'obn_mean': 0.1 * jax.random.normal(ks[14], (4, C, 1), jnp.float32),
        'obn_var':  1.0 + 0.1 * jax.random.uniform(ks[15], (4, C, 1), jnp.float32),
    }


if __name__ == "__main__":
    key = jax.random.PRNGKey(0)
    B, C, N = 2, 32, 128                                  # channels divisible by 4
    kx, kxyz, kp = jax.random.split(key, 3)

    x = jax.random.normal(kx, (B, C, N), jnp.float32)     # PyTorch NCW input
    xyz = jax.random.normal(kxyz, (B, N, 3), jnp.float32)
    params = init_params(kp, C)

    out = offset_attention_position_embedding(x, xyz, params)
    out = jax.block_until_ready(out)
    assert out.shape == (B, 4 * C, N), out.shape
    assert bool(jnp.all(jnp.isfinite(out)))
    print("KERNEL_OK")
</pallas_src>

<mosaic_0001>
module attributes {stable_mosaic.version = 11 : i64} {
  func.func @_pct_kernel(%arg0: i32, %arg1: memref<1x32x128xf32, #tpu.memory_space<vmem>>, %arg2: memref<1x3x128xf32, #tpu.memory_space<vmem>>, %arg3: memref<32x32xbf16, #tpu.memory_space<vmem>>, %arg4: memref<32x3xf32, #tpu.memory_space<vmem>>, %arg5: memref<32x1xf32, #tpu.memory_space<vmem>>, %arg6: memref<32x1xf32, #tpu.memory_space<vmem>>, %arg7: memref<32x1xf32, #tpu.memory_space<vmem>>, %arg8: memref<4x8x32xbf16, #tpu.memory_space<vmem>>, %arg9: memref<4x32x32xbf16, #tpu.memory_space<vmem>>, %arg10: memref<4x32x1xf32, #tpu.memory_space<vmem>>, %arg11: memref<4x32x32xbf16, #tpu.memory_space<vmem>>, %arg12: memref<4x32x1xf32, #tpu.memory_space<vmem>>, %arg13: memref<4x32x1xf32, #tpu.memory_space<vmem>>, %arg14: memref<4x32x1xf32, #tpu.memory_space<vmem>>, %arg15: memref<1x128x128xf32, #tpu.memory_space<vmem>>) attributes {dimension_semantics = [#tpu.dimension_semantics<parallel>], iteration_bounds = array<i64: 2>, scalar_prefetch = 0 : i64, scratch_operands = 0 : i64, tpu.core_type = #tpu.core_type<tc>, window_params = [{transform_indices = @transform_0, window_bounds = array<i64: 1, 32, 128>}, {transform_indices = @transform_1, window_bounds = array<i64: 1, 3, 128>}, {pipeline_mode = #tpu.pipeline_mode<synchronous>, transform_indices = @transform_2, window_bounds = array<i64: 32, 32>}, {pipeline_mode = #tpu.pipeline_mode<synchronous>, transform_indices = @transform_3, window_bounds = array<i64: 32, 3>}, {pipeline_mode = #tpu.pipeline_mode<synchronous>, transform_indices = @transform_4, window_bounds = array<i64: 32, 1>}, {pipeline_mode = #tpu.pipeline_mode<synchronous>, transform_indices = @transform_5, window_bounds = array<i64: 32, 1>}, {pipeline_mode = #tpu.pipeline_mode<synchronous>, transform_indices = @transform_6, window_bounds = array<i64: 32, 1>}, {pipeline_mode = #tpu.pipeline_mode<synchronous>, transform_indices = @transform_7, window_bounds = array<i64: 4, 8, 32>}, {pipeline_mode = #tpu.pipeline_mode<synchronous>, transform_indices = @transform_8, window_bounds = array<i64: 4, 32, 32>}, {pipeline_mode = #tpu.pipeline_mode<synchronous>, transform_indices = @transform_9, window_bounds = array<i64: 4, 32, 1>}, {pipeline_mode = #tpu.pipeline_mode<synchronous>, transform_indices = @transform_10, window_bounds = array<i64: 4, 32, 32>}, {pipeline_mode = #tpu.pipeline_mode<synchronous>, transform_indices = @transform_11, window_bounds = array<i64: 4, 32, 1>}, {pipeline_mode = #tpu.pipeline_mode<synchronous>, transform_indices = @transform_12, window_bounds = array<i64: 4, 32, 1>}, {pipeline_mode = #tpu.pipeline_mode<synchronous>, transform_indices = @transform_13, window_bounds = array<i64: 4, 32, 1>}, {transform_indices = @transform_14, window_bounds = array<i64: 1, 128, 128>}]} {
    %c0 = arith.constant 0 : index
    %c0_0 = arith.constant 0 : index
    %c0_1 = arith.constant 0 : index
    %0 = vector.load %arg1[%c0, %c0_0, %c0_1] : memref<1x32x128xf32, #tpu.memory_space<vmem>>, vector<1x32x128xf32>
    %1 = vector.shape_cast %0 : vector<1x32x128xf32> to vector<32x128xf32>
    %c0_2 = arith.constant 0 : index
    %c0_3 = arith.constant 0 : index
    %c0_4 = arith.constant 0 : index
    %2 = vector.load %arg2[%c0_2, %c0_3, %c0_4] : memref<1x3x128xf32, #tpu.memory_space<vmem>>, vector<1x3x128xf32>
    %3 = vector.shape_cast %2 : vector<1x3x128xf32> to vector<3x128xf32>
    %c0_5 = arith.constant 0 : index
    %c0_6 = arith.constant 0 : index
    %4 = vector.load %arg4[%c0_5, %c0_6] : memref<32x3xf32, #tpu.memory_space<vmem>>, vector<32x3xf32>
    %cst = arith.constant dense<0.000000e+00> : vector<32x128xf32>
    %5 = tpu.matmul %4, %3, %cst {dimension_numbers = #tpu.dot_dimension_numbers<[1], [0], [0], [1], [0, 0, 1, 1], [], []>} : vector<32x3xf32>, vector<3x128xf32>, vector<32x128xf32> -> vector<32x128xf32>
    %c0_7 = arith.constant 0 : index
    %c0_8 = arith.constant 0 : index
    %6 = vector.load %arg5[%c0_7, %c0_8] : memref<32x1xf32, #tpu.memory_space<vmem>>, vector<32x1xf32>
    %7 = vector.broadcast %6 : vector<32x1xf32> to vector<32x128xf32>
    %8 = arith.addf %5, %7 : vector<32x128xf32>
    %c0_9 = arith.constant 0 : index
    %c0_10 = arith.constant 0 : index
    %9 = vector.load %arg3[%c0_9, %c0_10] : memref<32x32xbf16, #tpu.memory_space<vmem>>, vector<32x32xbf16>
    %10 = arith.truncf %1 : vector<32x128xf32> to vector<32x128xbf16>
    %cst_11 = arith.constant dense<0.000000e+00> : vector<32x128xf32>
    %11 = tpu.matmul %9, %10, %cst_11 {dimension_numbers = #tpu.dot_dimension_numbers<[1], [0], [0], [1], [0, 0, 1, 1], [], []>} : vector<32x32xbf16>, vector<32x128xbf16>, vector<32x128xf32> -> vector<32x128xf32>
    %c0_12 = arith.constant 0 : index
    %c0_13 = arith.constant 0 : index
    %12 = vector.load %arg6[%c0_12, %c0_13] : memref<32x1xf32, #tpu.memory_space<vmem>>, vector<32x1xf32>
    %13 = vector.broadcast %12 : vector<32x1xf32> to vector<32x128xf32>
    %14 = arith.mulf %11, %13 : vector<32x128xf32>
    %c0_14 = arith.constant 0 : index
    %c0_15 = arith.constant 0 : index
    %15 = vector.load %arg7[%c0_14, %c0_15] : memref<32x1xf32, #tpu.memory_space<vmem>>, vector<32x1xf32>
    %16 = vector.broadcast %15 : vector<32x1xf32> to vector<32x128xf32>
    %17 = arith.addf %14, %16 : vector<32x128xf32>
    %cst_16 = arith.constant 0.000000e+00 : f32
    %18 = vector.broadcast %cst_16 : f32 to vector<32x128xf32>
    %19 = arith.maximumf %17, %18 : vector<32x128xf32>
    %20 = arith.addf %19, %8 : vector<32x128xf32>
    %21 = arith.truncf %20 : vector<32x128xf32> to vector<32x128xbf16>
    %c0_17 = arith.constant 0 : index
    %c0_18 = arith.constant 0 : index
    %c0_19 = arith.constant 0 : index
    %22 = vector.load %arg8[%c0_17, %c0_18, %c0_19] : memref<4x8x32xbf16, #tpu.memory_space<vmem>>, vector<1x8x32xbf16>
    %23 = vector.shape_cast %22 : vector<1x8x32xbf16> to vector<8x32xbf16>
    %cst_20 = arith.constant dense<0.000000e+00> : vector<8x128xf32>
    %24 = tpu.matmul %23, %21, %cst_20 {dimension_numbers = #tpu.dot_dimension_numbers<[1], [0], [0], [1], [0, 0, 1, 1], [], []>} : vector<8x32xbf16>, vector<32x128xbf16>, vector<8x128xf32> -> vector<8x128xf32>
    %c0_21 = arith.constant 0 : index
    %c0_22 = arith.constant 0 : index
    %c0_23 = arith.constant 0 : index
    %25 = vector.load %arg9[%c0_21, %c0_22, %c0_23] : memref<4x32x32xbf16, #tpu.memory_space<vmem>>, vector<1x32x32xbf16>
    %26 = vector.shape_cast %25 : vector<1x32x32xbf16> to vector<32x32xbf16>
    %cst_24 = arith.constant dense<0.000000e+00> : vector<32x128xf32>
    %27 = tpu.matmul %26, %21, %cst_24 {dimension_numbers = #tpu.dot_dimension_numbers<[1], [0], [0], [1], [0, 0, 1, 1], [], []>} : vector<32x32xbf16>, vector<32x128xbf16>, vector<32x128xf32> -> vector<32x128xf32>
    %c0_25 = arith.constant 0 : index
    %c0_26 = arith.constant 0 : index
    %c0_27 = arith.constant 0 : index
    %28 = vector.load %arg10[%c0_25, %c0_26, %c0_27] : memref<4x32x1xf32, #tpu.memory_space<vmem>>, vector<1x32x1xf32>
    %29 = vector.shape_cast %28 : vector<1x32x1xf32> to vector<32x1xf32>
    %30 = vector.broadcast %29 : vector<32x1xf32> to vector<32x128xf32>
    %31 = arith.addf %27, %30 : vector<32x128xf32>
    %32 = arith.truncf %24 : vector<8x128xf32> to vector<8x128xbf16>
    %cst_28 = arith.constant dense<0.000000e+00> : vector<128x128xf32>
    %33 = tpu.matmul %32, %32, %cst_28 {dimension_numbers = #tpu.dot_dimension_numbers<[0], [0], [1], [1], [0, 1, 1, 1], [], []>} : vector<8x128xbf16>, vector<8x128xbf16>, vector<128x128xf32> -> vector<128x128xf32>
    %cst_29 = arith.constant dense<0xFF800000> : vector<128xf32>
    %34 = vector.multi_reduction <maximumf>, %33, %cst_29 [1] : vector<128x128xf32> to vector<128xf32>
    %35 = vector.shape_cast %34 : vector<128xf32> to vector<128x1xf32>
    %36 = vector.broadcast %35 : vector<128x1xf32> to vector<128x128xf32>
    %37 = arith.subf %33, %36 : vector<128x128xf32>
    %38 = math.exp %37 : vector<128x128xf32>
    %cst_30 = arith.constant dense<0.000000e+00> : vector<128xf32>
    %39 = vector.multi_reduction <add>, %38, %cst_30 [1] : vector<128x128xf32> to vector<128xf32>
    %40 = vector.shape_cast %39 : vector<128xf32> to vector<128x1xf32>
    %41 = tpu.reciprocal %40 {approx = true} : vector<128x1xf32> -> vector<128x1xf32>
    %42 = vector.broadcast %41 : vector<128x1xf32> to vector<128x128xf32>
    %43 = arith.mulf %38, %42 : vector<128x128xf32>
    %cst_31 = arith.constant dense<0.000000e+00> : vector<128xf32>
    %44 = vector.multi_reduction <add>, %43, %cst_31 [0] : vector<128x128xf32> to vector<128xf32>
    %45 = vector.shape_cast %44 : vector<128xf32> to vector<1x128xf32>
    %cst_32 = arith.constant 9.99999971E-10 : f32
    %46 = vector.broadcast %cst_32 : f32 to vector<1x128xf32>
    %47 = arith.addf %46, %45 : vector<1x128xf32>
    %48 = tpu.reciprocal %47 {approx = true} : vector<1x128xf32> -> vector<1x128xf32>
    %49 = vector.broadcast %48 : vector<1x128xf32> to vector<128x128xf32>
    %50 = arith.mulf %43, %49 : vector<128x128xf32>
    %51 = arith.truncf %50 : vector<128x128xf32> to vector<128x128xbf16>
    %52 = arith.truncf %31 : vector<32x128xf32> to vector<32x128xbf16>
    %cst_33 = arith.constant dense<0.000000e+00> : vector<32x128xf32>
    %53 = tpu.matmul %52, %51, %cst_33 {dimension_numbers = #tpu.dot_dimension_numbers<[1], [0], [0], [1], [0, 0, 1, 1], [], []>} : vector<32x128xbf16>, vector<128x128xbf16>, vector<32x128xf32> -> vector<32x128xf32>
    %c0_34 = arith.constant 0 : index
    %c0_35 = arith.constant 0 : index
    %c0_36 = arith.constant 0 : index
    %54 = vector.load %arg11[%c0_34, %c0_35, %c0_36] : memref<4x32x32xbf16, #tpu.memory_space<vmem>>, vector<1x32x32xbf16>
    %55 = vector.shape_cast %54 : vector<1x32x32xbf16> to vector<32x32xbf16>
    %56 = arith.subf %20, %53 : vector<32x128xf32>
    %57 = arith.truncf %56 : vector<32x128xf32> to vector<32x128xbf16>
    %cst_37 = arith.constant dense<0.000000e+00> : vector<32x128xf32>
    %58 = tpu.matmul %55, %57, %cst_37 {dimension_numbers = #tpu.dot_dimension_numbers<[1], [0], [0], [1], [0, 0, 1, 1], [], []>} : vector<32x32xbf16>, vector<32x128xbf16>, vector<32x128xf32> -> vector<32x128xf32>
    %c0_38 = arith.constant 0 : index
    %c0_39 = arith.constant 0 : index
    %c0_40 = arith.constant 0 : index
    %59 = vector.load %arg12[%c0_38, %c0_39, %c0_40] : memref<4x32x1xf32, #tpu.memory_space<vmem>>, vector<1x32x1xf32>
    %60 = vector.shape_cast %59 : vector<1x32x1xf32> to vector<32x1xf32>
    %61 = vector.broadcast %60 : vector<32x1xf32> to vector<32x128xf32>
    %62 = arith.addf %58, %61 : vector<32x128xf32>
    %c0_41 = arith.constant 0 : index
    %c0_42 = arith.constant 0 : index
    %c0_43 = arith.constant 0 : index
    %63 = vector.load %arg13[%c0_41, %c0_42, %c0_43] : memref<4x32x1xf32, #tpu.memory_space<vmem>>, vector<1x32x1xf32>
    %64 = vector.shape_cast %63 : vector<1x32x1xf32> to vector<32x1xf32>
    %65 = vector.broadcast %64 : vector<32x1xf32> to vector<32x128xf32>
    %66 = arith.mulf %62, %65 : vector<32x128xf32>
    %c0_44 = arith.constant 0 : index
    %c0_45 = arith.constant 0 : index
    %c0_46 = arith.constant 0 : index
    %67 = vector.load %arg14[%c0_44, %c0_45, %c0_46] : memref<4x32x1xf32, #tpu.memory_space<vmem>>, vector<1x32x1xf32>
    %68 = vector.shape_cast %67 : vector<1x32x1xf32> to vector<32x1xf32>
    %69 = vector.broadcast %68 : vector<32x1xf32> to vector<32x128xf32>
    %70 = arith.addf %66, %69 : vector<32x128xf32>
    %cst_47 = arith.constant 0.000000e+00 : f32
    %71 = vector.broadcast %cst_47 : f32 to vector<32x128xf32>
    %72 = arith.maximumf %70, %71 : vector<32x128xf32>
    %73 = arith.addf %20, %72 : vector<32x128xf32>
    %c0_48 = arith.constant 0 : index
    %c0_49 = arith.constant 0 : index
    %c0_50 = arith.constant 0 : index
    %74 = vector.load %arg15[%c0_48, %c0_49, %c0_50] : memref<1x128x128xf32, #tpu.memory_space<vmem>>, vector<1x32x128xf32>
    %75 = vector.shape_cast %74 : vector<1x32x128xf32> to vector<32x128xf32>
    %76 = vector.shape_cast %73 : vector<32x128xf32> to vector<1x32x128xf32>
    tpu.vector_store %arg15[%c0_48, %c0_49, %c0_50], %76 {strides = array<i32>} : memref<1x128x128xf32, #tpu.memory_space<vmem>>, vector<1x32x128xf32>,
    %77 = arith.addf %73, %8 : vector<32x128xf32>
    %78 = arith.truncf %77 : vector<32x128xf32> to vector<32x128xbf16>
    %c1 = arith.constant 1 : index
    %c0_51 = arith.constant 0 : index
    %c0_52 = arith.constant 0 : index
    %79 = vector.load %arg8[%c1, %c0_51, %c0_52] : memref<4x8x32xbf16, #tpu.memory_space<vmem>>, vector<1x8x32xbf16>
    %80 = vector.shape_cast %79 : vector<1x8x32xbf16> to vector<8x32xbf16>
    %cst_53 = arith.constant dense<0.000000e+00> : vector<8x128xf32>
    %81 = tpu.matmul %80, %78, %cst_53 {dimension_numbers = #tpu.dot_dimension_numbers<[1], [0], [0], [1], [0, 0, 1, 1], [], []>} : vector<8x32xbf16>, vector<32x128xbf16>, vector<8x128xf32> -> vector<8x128xf32>
    %c1_54 = arith.constant 1 : index
    %c0_55 = arith.constant 0 : index
    %c0_56 = arith.constant 0 : index
    %82 = vector.load %arg9[%c1_54, %c0_55, %c0_56] : memref<4x32x32xbf16, #tpu.memory_space<vmem>>, vector<1x32x32xbf16>
    %83 = vector.shape_cast %82 : vector<1x32x32xbf16> to vector<32x32xbf16>
    %cst_57 = arith.constant dense<0.000000e+00> : vector<32x128xf32>
    %84 = tpu.matmul %83, %78, %cst_57 {dimension_numbers = #tpu.dot_dimension_numbers<[1], [0], [0], [1], [0, 0, 1, 1], [], []>} : vector<32x32xbf16>, vector<32x128xbf16>, vector<32x128xf32> -> vector<32x128xf32>
    %c1_58 = arith.constant 1 : index
    %c0_59 = arith.constant 0 : index
    %c0_60 = arith.constant 0 : index
    %85 = vector.load %arg10[%c1_58, %c0_59, %c0_60] : memref<4x32x1xf32, #tpu.memory_space<vmem>>, vector<1x32x1xf32>
    %86 = vector.shape_cast %85 : vector<1x32x1xf32> to vector<32x1xf32>
    %87 = vector.broadcast %86 : vector<32x1xf32> to vector<32x128xf32>
    %88 = arith.addf %84, %87 : vector<32x128xf32>
    %89 = arith.truncf %81 : vector<8x128xf32> to vector<8x128xbf16>
    %cst_61 = arith.constant dense<0.000000e+00> : vector<128x128xf32>
    %90 = tpu.matmul %89, %89, %cst_61 {dimension_numbers = #tpu.dot_dimension_numbers<[0], [0], [1], [1], [0, 1, 1, 1], [], []>} : vector<8x128xbf16>, vector<8x128xbf16>, vector<128x128xf32> -> vector<128x128xf32>
    %cst_62 = arith.constant dense<0xFF800000> : vector<128xf32>
    %91 = vector.multi_reduction <maximumf>, %90, %cst_62 [1] : vector<128x128xf32> to vector<128xf32>
    %92 = vector.shape_cast %91 : vector<128xf32> to vector<128x1xf32>
    %93 = vector.broadcast %92 : vector<128x1xf32> to vector<128x128xf32>
    %94 = arith.subf %90, %93 : vector<128x128xf32>
    %95 = math.exp %94 : vector<128x128xf32>
    %cst_63 = arith.constant dense<0.000000e+00> : vector<128xf32>
    %96 = vector.multi_reduction <add>, %95, %cst_63 [1] : vector<128x128xf32> to vector<128xf32>
    %97 = vector.shape_cast %96 : vector<128xf32> to vector<128x1xf32>
    %98 = tpu.reciprocal %97 {approx = true} : vector<128x1xf32> -> vector<128x1xf32>
    %99 = vector.broadcast %98 : vector<128x1xf32> to vector<128x128xf32>
    %100 = arith.mulf %95, %99 : vector<128x128xf32>
    %cst_64 = arith.constant dense<0.000000e+00> : vector<128xf32>
    %101 = vector.multi_reduction <add>, %100, %cst_64 [0] : vector<128x128xf32> to vector<128xf32>
    %102 = vector.shape_cast %101 : vector<128xf32> to vector<1x128xf32>
    %cst_65 = arith.constant 9.99999971E-10 : f32
    %103 = vector.broadcast %cst_65 : f32 to vector<1x128xf32>
    %104 = arith.addf %103, %102 : vector<1x128xf32>
    %105 = tpu.reciprocal %104 {approx = true} : vector<1x128xf32> -> vector<1x128xf32>
    %106 = vector.broadcast %105 : vector<1x128xf32> to vector<128x128xf32>
    %107 = arith.mulf %100, %106 : vector<128x128xf32>
    %108 = arith.truncf %107 : vector<128x128xf32> to vector<128x128xbf16>
    %109 = arith.truncf %88 : vector<32x128xf32> to vector<32x128xbf16>
    %cst_66 = arith.constant dense<0.000000e+00> : vector<32x128xf32>
    %110 = tpu.matmul %109, %108, %cst_66 {dimension_numbers = #tpu.dot_dimension_numbers<[1], [0], [0], [1], [0, 0, 1, 1], [], []>} : vector<32x128xbf16>, vector<128x128xbf16>, vector<32x128xf32> -> vector<32x128xf32>
    %c1_67 = arith.constant 1 : index
    %c0_68 = arith.constant 0 : index
    %c0_69 = arith.constant 0 : index
    %111 = vector.load %arg11[%c1_67, %c0_68, %c0_69] : memref<4x32x32xbf16, #tpu.memory_space<vmem>>, vector<1x32x32xbf16>
    %112 = vector.shape_cast %111 : vector<1x32x32xbf16> to vector<32x32xbf16>
    %113 = arith.subf %77, %110 : vector<32x128xf32>
    %114 = arith.truncf %113 : vector<32x128xf32> to vector<32x128xbf16>
    %cst_70 = arith.constant dense<0.000000e+00> : vector<32x128xf32>
    %115 = tpu.matmul %112, %114, %cst_70 {dimension_numbers = #tpu.dot_dimension_numbers<[1], [0], [0], [1], [0, 0, 1, 1], [], []>} : vector<32x32xbf16>, vector<32x128xbf16>, vector<32x128xf32> -> vector<32x128xf32>
    %c1_71 = arith.constant 1 : index
    %c0_72 = arith.constant 0 : index
    %c0_73 = arith.constant 0 : index
    %116 = vector.load %arg12[%c1_71, %c0_72, %c0_73] : memref<4x32x1xf32, #tpu.memory_space<vmem>>, vector<1x32x1xf32>
    %117 = vector.shape_cast %116 : vector<1x32x1xf32> to vector<32x1xf32>
    %118 = vector.broadcast %117 : vector<32x1xf32> to vector<32x128xf32>
    %119 = arith.addf %115, %118 : vector<32x128xf32>
    %c1_74 = arith.constant 1 : index
    %c0_75 = arith.constant 0 : index
    %c0_76 = arith.constant 0 : index
    %120 = vector.load %arg13[%c1_74, %c0_75, %c0_76] : memref<4x32x1xf32, #tpu.memory_space<vmem>>, vector<1x32x1xf32>
    %121 = vector.shape_cast %120 : vector<1x32x1xf32> to vector<32x1xf32>
    %122 = vector.broadcast %121 : vector<32x1xf32> to vector<32x128xf32>
    %123 = arith.mulf %119, %122 : vector<32x128xf32>
    %c1_77 = arith.constant 1 : index
    %c0_78 = arith.constant 0 : index
    %c0_79 = arith.constant 0 : index
    %124 = vector.load %arg14[%c1_77, %c0_78, %c0_79] : memref<4x32x1xf32, #tpu.memory_space<vmem>>, vector<1x32x1xf32>
    %125 = vector.shape_cast %124 : vector<1x32x1xf32> to vector<32x1xf32>
    %126 = vector.broadcast %125 : vector<32x1xf32> to vector<32x128xf32>
    %127 = arith.addf %123, %126 : vector<32x128xf32>
    %cst_80 = arith.constant 0.000000e+00 : f32
    %128 = vector.broadcast %cst_80 : f32 to vector<32x128xf32>
    %129 = arith.maximumf %127, %128 : vector<32x128xf32>
    %130 = arith.addf %77, %129 : vector<32x128xf32>
    %c0_81 = arith.constant 0 : index
    %c32 = arith.constant 32 : index
    %c0_82 = arith.constant 0 : index
    %131 = vector.load %arg15[%c0_81, %c32, %c0_82] : memref<1x128x128xf32, #tpu.memory_space<vmem>>, vector<1x32x128xf32>
    %132 = vector.shape_cast %131 : vector<1x32x128xf32> to vector<32x128xf32>
    %133 = vector.shape_cast %130 : vector<32x128xf32> to vector<1x32x128xf32>
    tpu.vector_store %arg15[%c0_81, %c32, %c0_82], %133 {strides = array<i32>} : memref<1x128x128xf32, #tpu.memory_space<vmem>>, vector<1x32x128xf32>,
    %134 = arith.addf %130, %8 : vector<32x128xf32>
    %135 = arith.truncf %134 : vector<32x128xf32> to vector<32x128xbf16>
    %c2 = arith.constant 2 : index
    %c0_83 = arith.constant 0 : index
    %c0_84 = arith.constant 0 : index
    %136 = vector.load %arg8[%c2, %c0_83, %c0_84] : memref<4x8x32xbf16, #tpu.memory_space<vmem>>, vector<1x8x32xbf16>
    %137 = vector.shape_cast %136 : vector<1x8x32xbf16> to vector<8x32xbf16>
    %cst_85 = arith.constant dense<0.000000e+00> : vector<8x128xf32>
    %138 = tpu.matmul %137, %135, %cst_85 {dimension_numbers = #tpu.dot_dimension_numbers<[1], [0], [0], [1], [0, 0, 1, 1], [], []>} : vector<8x32xbf16>, vector<32x128xbf16>, vector<8x128xf32> -> vector<8x128xf32>
    %c2_86 = arith.constant 2 : index
    %c0_87 = arith.constant 0 : index
    %c0_88 = arith.constant 0 : index
    %139 = vector.load %arg9[%c2_86, %c0_87, %c0_88] : memref<4x32x32xbf16, #tpu.memory_space<vmem>>, vector<1x32x32xbf16>
    %140 = vector.shape_cast %139 : vector<1x32x32xbf16> to vector<32x32xbf16>
    %cst_89 = arith.constant dense<0.000000e+00> : vector<32x128xf32>
    %141 = tpu.matmul %140, %135, %cst_89 {dimension_numbers = #tpu.dot_dimension_numbers<[1], [0], [0], [1], [0, 0, 1, 1], [], []>} : vector<32x32xbf16>, vector<32x128xbf16>, vector<32x128xf32> -> vector<32x128xf32>
    %c2_90 = arith.constant 2 : index
    %c0_91 = arith.constant 0 : index
    %c0_92 = arith.constant 0 : index
    %142 = vector.load %arg10[%c2_90, %c0_91, %c0_92] : memref<4x32x1xf32, #tpu.memory_space<vmem>>, vector<1x32x1xf32>
    %143 = vector.shape_cast %142 : vector<1x32x1xf32> to vector<32x1xf32>
    %144 = vector.broadcast %143 : vector<32x1xf32> to vector<32x128xf32>
    %145 = arith.addf %141, %144 : vector<32x128xf32>
    %146 = arith.truncf %138 : vector<8x128xf32> to vector<8x128xbf16>
    %cst_93 = arith.constant dense<0.000000e+00> : vector<128x128xf32>
    %147 = tpu.matmul %146, %146, %cst_93 {dimension_numbers = #tpu.dot_dimension_numbers<[0], [0], [1], [1], [0, 1, 1, 1], [], []>} : vector<8x128xbf16>, vector<8x128xbf16>, vector<128x128xf32> -> vector<128x128xf32>
    %cst_94 = arith.constant dense<0xFF800000> : vector<128xf32>
    %148 = vector.multi_reduction <maximumf>, %147, %cst_94 [1] : vector<128x128xf32> to vector<128xf32>
    %149 = vector.shape_cast %148 : vector<128xf32> to vector<128x1xf32>
    %150 = vector.broadcast %149 : vector<128x1xf32> to vector<128x128xf32>
    %151 = arith.subf %147, %150 : vector<128x128xf32>
    %152 = math.exp %151 : vector<128x128xf32>
    %cst_95 = arith.constant dense<0.000000e+00> : vector<128xf32>
    %153 = vector.multi_reduction <add>, %152, %cst_95 [1] : vector<128x128xf32> to vector<128xf32>
    %154 = vector.shape_cast %153 : vector<128xf32> to vector<128x1xf32>
    %155 = tpu.reciprocal %154 {approx = true} : vector<128x1xf32> -> vector<128x1xf32>
    %156 = vector.broadcast %155 : vector<128x1xf32> to vector<128x128xf32>
    %157 = arith.mulf %152, %156 : vector<128x128xf32>
    %cst_96 = arith.constant dense<0.000000e+00> : vector<128xf32>
    %158 = vector.multi_reduction <add>, %157, %cst_96 [0] : vector<128x128xf32> to vector<128xf32>
    %159 = vector.shape_cast %158 : vector<128xf32> to vector<1x128xf32>
    %cst_97 = arith.constant 9.99999971E-10 : f32
    %160 = vector.broadcast %cst_97 : f32 to vector<1x128xf32>
    %161 = arith.addf %160, %159 : vector<1x128xf32>
    %162 = tpu.reciprocal %161 {approx = true} : vector<1x128xf32> -> vector<1x128xf32>
    %163 = vector.broadcast %162 : vector<1x128xf32> to vector<128x128xf32>
    %164 = arith.mulf %157, %163 : vector<128x128xf32>
    %165 = arith.truncf %164 : vector<128x128xf32> to vector<128x128xbf16>
    %166 = arith.truncf %145 : vector<32x128xf32> to vector<32x128xbf16>
    %cst_98 = arith.constant dense<0.000000e+00> : vector<32x128xf32>
    %167 = tpu.matmul %166, %165, %cst_98 {dimension_numbers = #tpu.dot_dimension_numbers<[1], [0], [0], [1], [0, 0, 1, 1], [], []>} : vector<32x128xbf16>, vector<128x128xbf16>, vector<32x128xf32> -> vector<32x128xf32>
    %c2_99 = arith.constant 2 : index
    %c0_100 = arith.constant 0 : index
    %c0_101 = arith.constant 0 : index
    %168 = vector.load %arg11[%c2_99, %c0_100, %c0_101] : memref<4x32x32xbf16, #tpu.memory_space<vmem>>, vector<1x32x32xbf16>
    %169 = vector.shape_cast %168 : vector<1x32x32xbf16> to vector<32x32xbf16>
    %170 = arith.subf %134, %167 : vector<32x128xf32>
    %171 = arith.truncf %170 : vector<32x128xf32> to vector<32x128xbf16>
    %cst_102 = arith.constant dense<0.000000e+00> : vector<32x128xf32>
    %172 = tpu.matmul %169, %171, %cst_102 {dimension_numbers = #tpu.dot_dimension_numbers<[1], [0], [0], [1], [0, 0, 1, 1], [], []>} : vector<32x32xbf16>, vector<32x128xbf16>, vector<32x128xf32> -> vector<32x128xf32>
    %c2_103 = arith.constant 2 : index
    %c0_104 = arith.constant 0 : index
    %c0_105 = arith.constant 0 : index
    %173 = vector.load %arg12[%c2_103, %c0_104, %c0_105] : memref<4x32x1xf32, #tpu.memory_space<vmem>>, vector<1x32x1xf32>
    %174 = vector.shape_cast %173 : vector<1x32x1xf32> to vector<32x1xf32>
    %175 = vector.broadcast %174 : vector<32x1xf32> to vector<32x128xf32>
    %176 = arith.addf %172, %175 : vector<32x128xf32>
    %c2_106 = arith.constant 2 : index
    %c0_107 = arith.constant 0 : index
    %c0_108 = arith.constant 0 : index
    %177 = vector.load %arg13[%c2_106, %c0_107, %c0_108] : memref<4x32x1xf32, #tpu.memory_space<vmem>>, vector<1x32x1xf32>
    %178 = vector.shape_cast %177 : vector<1x32x1xf32> to vector<32x1xf32>
    %179 = vector.broadcast %178 : vector<32x1xf32> to vector<32x128xf32>
    %180 = arith.mulf %176, %179 : vector<32x128xf32>
    %c2_109 = arith.constant 2 : index
    %c0_110 = arith.constant 0 : index
    %c0_111 = arith.constant 0 : index
    %181 = vector.load %arg14[%c2_109, %c0_110, %c0_111] : memref<4x32x1xf32, #tpu.memory_space<vmem>>, vector<1x32x1xf32>
    %182 = vector.shape_cast %181 : vector<1x32x1xf32> to vector<32x1xf32>
    %183 = vector.broadcast %182 : vector<32x1xf32> to vector<32x128xf32>
    %184 = arith.addf %180, %183 : vector<32x128xf32>
    %cst_112 = arith.constant 0.000000e+00 : f32
    %185 = vector.broadcast %cst_112 : f32 to vector<32x128xf32>
    %186 = arith.maximumf %184, %185 : vector<32x128xf32>
    %187 = arith.addf %134, %186 : vector<32x128xf32>
    %c0_113 = arith.constant 0 : index
    %c64 = arith.constant 64 : index
    %c0_114 = arith.constant 0 : index
    %188 = vector.load %arg15[%c0_113, %c64, %c0_114] : memref<1x128x128xf32, #tpu.memory_space<vmem>>, vector<1x32x128xf32>
    %189 = vector.shape_cast %188 : vector<1x32x128xf32> to vector<32x128xf32>
    %190 = vector.shape_cast %187 : vector<32x128xf32> to vector<1x32x128xf32>
    tpu.vector_store %arg15[%c0_113, %c64, %c0_114], %190 {strides = array<i32>} : memref<1x128x128xf32, #tpu.memory_space<vmem>>, vector<1x32x128xf32>,
    %191 = arith.addf %187, %8 : vector<32x128xf32>
    %192 = arith.truncf %191 : vector<32x128xf32> to vector<32x128xbf16>
    %c3 = arith.constant 3 : index
    %c0_115 = arith.constant 0 : index
    %c0_116 = arith.constant 0 : index
    %193 = vector.load %arg8[%c3, %c0_115, %c0_116] : memref<4x8x32xbf16, #tpu.memory_space<vmem>>, vector<1x8x32xbf16>
    %194 = vector.shape_cast %193 : vector<1x8x32xbf16> to vector<8x32xbf16>
    %cst_117 = arith.constant dense<0.000000e+00> : vector<8x128xf32>
    %195 = tpu.matmul %194, %192, %cst_117 {dimension_numbers = #tpu.dot_dimension_numbers<[1], [0], [0], [1], [0, 0, 1, 1], [], []>} : vector<8x32xbf16>, vector<32x128xbf16>, vector<8x128xf32> -> vector<8x128xf32>
    %c3_118 = arith.constant 3 : index
    %c0_119 = arith.constant 0 : index
    %c0_120 = arith.constant 0 : index
    %196 = vector.load %arg9[%c3_118, %c0_119, %c0_120] : memref<4x32x32xbf16, #tpu.memory_space<vmem>>, vector<1x32x32xbf16>
    %197 = vector.shape_cast %196 : vector<1x32x32xbf16> to vector<32x32xbf16>
    %cst_121 = arith.constant dense<0.000000e+00> : vector<32x128xf32>
    %198 = tpu.matmul %197, %192, %cst_121 {dimension_numbers = #tpu.dot_dimension_numbers<[1], [0], [0], [1], [0, 0, 1, 1], [], []>} : vector<32x32xbf16>, vector<32x128xbf16>, vector<32x128xf32> -> vector<32x128xf32>
    %c3_122 = arith.constant 3 : index
    %c0_123 = arith.constant 0 : index
    %c0_124 = arith.constant 0 : index
    %199 = vector.load %arg10[%c3_122, %c0_123, %c0_124] : memref<4x32x1xf32, #tpu.memory_space<vmem>>, vector<1x32x1xf32>
    %200 = vector.shape_cast %199 : vector<1x32x1xf32> to vector<32x1xf32>
    %201 = vector.broadcast %200 : vector<32x1xf32> to vector<32x128xf32>
    %202 = arith.addf %198, %201 : vector<32x128xf32>
    %203 = arith.truncf %195 : vector<8x128xf32> to vector<8x128xbf16>
    %cst_125 = arith.constant dense<0.000000e+00> : vector<128x128xf32>
    %204 = tpu.matmul %203, %203, %cst_125 {dimension_numbers = #tpu.dot_dimension_numbers<[0], [0], [1], [1], [0, 1, 1, 1], [], []>} : vector<8x128xbf16>, vector<8x128xbf16>, vector<128x128xf32> -> vector<128x128xf32>
    %cst_126 = arith.constant dense<0xFF800000> : vector<128xf32>
    %205 = vector.multi_reduction <maximumf>, %204, %cst_126 [1] : vector<128x128xf32> to vector<128xf32>
    %206 = vector.shape_cast %205 : vector<128xf32> to vector<128x1xf32>
    %207 = vector.broadcast %206 : vector<128x1xf32> to vector<128x128xf32>
    %208 = arith.subf %204, %207 : vector<128x128xf32>
    %209 = math.exp %208 : vector<128x128xf32>
    %cst_127 = arith.constant dense<0.000000e+00> : vector<128xf32>
    %210 = vector.multi_reduction <add>, %209, %cst_127 [1] : vector<128x128xf32> to vector<128xf32>
    %211 = vector.shape_cast %210 : vector<128xf32> to vector<128x1xf32>
    %212 = tpu.reciprocal %211 {approx = true} : vector<128x1xf32> -> vector<128x1xf32>
    %213 = vector.broadcast %212 : vector<128x1xf32> to vector<128x128xf32>
    %214 = arith.mulf %209, %213 : vector<128x128xf32>
    %cst_128 = arith.constant dense<0.000000e+00> : vector<128xf32>
    %215 = vector.multi_reduction <add>, %214, %cst_128 [0] : vector<128x128xf32> to vector<128xf32>
    %216 = vector.shape_cast %215 : vector<128xf32> to vector<1x128xf32>
    %cst_129 = arith.constant 9.99999971E-10 : f32
    %217 = vector.broadcast %cst_129 : f32 to vector<1x128xf32>
    %218 = arith.addf %217, %216 : vector<1x128xf32>
    %219 = tpu.reciprocal %218 {approx = true} : vector<1x128xf32> -> vector<1x128xf32>
    %220 = vector.broadcast %219 : vector<1x128xf32> to vector<128x128xf32>
    %221 = arith.mulf %214, %220 : vector<128x128xf32>
    %222 = arith.truncf %221 : vector<128x128xf32> to vector<128x128xbf16>
    %223 = arith.truncf %202 : vector<32x128xf32> to vector<32x128xbf16>
    %cst_130 = arith.constant dense<0.000000e+00> : vector<32x128xf32>
    %224 = tpu.matmul %223, %222, %cst_130 {dimension_numbers = #tpu.dot_dimension_numbers<[1], [0], [0], [1], [0, 0, 1, 1], [], []>} : vector<32x128xbf16>, vector<128x128xbf16>, vector<32x128xf32> -> vector<32x128xf32>
    %c3_131 = arith.constant 3 : index
    %c0_132 = arith.constant 0 : index
    %c0_133 = arith.constant 0 : index
    %225 = vector.load %arg11[%c3_131, %c0_132, %c0_133] : memref<4x32x32xbf16, #tpu.memory_space<vmem>>, vector<1x32x32xbf16>
    %226 = vector.shape_cast %225 : vector<1x32x32xbf16> to vector<32x32xbf16>
    %227 = arith.subf %191, %224 : vector<32x128xf32>
    %228 = arith.truncf %227 : vector<32x128xf32> to vector<32x128xbf16>
    %cst_134 = arith.constant dense<0.000000e+00> : vector<32x128xf32>
    %229 = tpu.matmul %226, %228, %cst_134 {dimension_numbers = #tpu.dot_dimension_numbers<[1], [0], [0], [1], [0, 0, 1, 1], [], []>} : vector<32x32xbf16>, vector<32x128xbf16>, vector<32x128xf32> -> vector<32x128xf32>
    %c3_135 = arith.constant 3 : index
    %c0_136 = arith.constant 0 : index
    %c0_137 = arith.constant 0 : index
    %230 = vector.load %arg12[%c3_135, %c0_136, %c0_137] : memref<4x32x1xf32, #tpu.memory_space<vmem>>, vector<1x32x1xf32>
    %231 = vector.shape_cast %230 : vector<1x32x1xf32> to vector<32x1xf32>
    %232 = vector.broadcast %231 : vector<32x1xf32> to vector<32x128xf32>
    %233 = arith.addf %229, %232 : vector<32x128xf32>
    %c3_138 = arith.constant 3 : index
    %c0_139 = arith.constant 0 : index
    %c0_140 = arith.constant 0 : index
    %234 = vector.load %arg13[%c3_138, %c0_139, %c0_140] : memref<4x32x1xf32, #tpu.memory_space<vmem>>, vector<1x32x1xf32>
    %235 = vector.shape_cast %234 : vector<1x32x1xf32> to vector<32x1xf32>
    %236 = vector.broadcast %235 : vector<32x1xf32> to vector<32x128xf32>
    %237 = arith.mulf %233, %236 : vector<32x128xf32>
    %c3_141 = arith.constant 3 : index
    %c0_142 = arith.constant 0 : index
    %c0_143 = arith.constant 0 : index
    %238 = vector.load %arg14[%c3_141, %c0_142, %c0_143] : memref<4x32x1xf32, #tpu.memory_space<vmem>>, vector<1x32x1xf32>
    %239 = vector.shape_cast %238 : vector<1x32x1xf32> to vector<32x1xf32>
    %240 = vector.broadcast %239 : vector<32x1xf32> to vector<32x128xf32>
    %241 = arith.addf %237, %240 : vector<32x128xf32>
    %cst_144 = arith.constant 0.000000e+00 : f32
    %242 = vector.broadcast %cst_144 : f32 to vector<32x128xf32>
    %243 = arith.maximumf %241, %242 : vector<32x128xf32>
    %244 = arith.addf %191, %243 : vector<32x128xf32>
    %c0_145 = arith.constant 0 : index
    %c96 = arith.constant 96 : index
    %c0_146 = arith.constant 0 : index
    %245 = vector.load %arg15[%c0_145, %c96, %c0_146] : memref<1x128x128xf32, #tpu.memory_space<vmem>>, vector<1x32x128xf32>
    %246 = vector.shape_cast %245 : vector<1x32x128xf32> to vector<32x128xf32>
    %247 = vector.shape_cast %244 : vector<32x128xf32> to vector<1x32x128xf32>
    tpu.vector_store %arg15[%c0_145, %c96, %c0_146], %247 {strides = array<i32>} : memref<1x128x128xf32, #tpu.memory_space<vmem>>, vector<1x32x128xf32>,
    return
  }
  func.func @transform_0(%arg0: i32) -> (i32, i32, i32) {
    %c0_i32 = arith.constant 0 : i32
    %c0_i32_0 = arith.constant 0 : i32
    %c0_i32_1 = arith.constant 0 : i32
    return %arg0, %c0_i32, %c0_i32_0 : i32, i32, i32
  }
  func.func @transform_1(%arg0: i32) -> (i32, i32, i32) {
    %c0_i32 = arith.constant 0 : i32
    %c0_i32_0 = arith.constant 0 : i32
    %c0_i32_1 = arith.constant 0 : i32
    return %arg0, %c0_i32, %c0_i32_0 : i32, i32, i32
  }
  func.func @transform_2(%arg0: i32) -> (i32, i32) {
    %c0_i32 = arith.constant 0 : i32
    %c0_i32_0 = arith.constant 0 : i32
    %c0_i32_1 = arith.constant 0 : i32
    return %c0_i32, %c0_i32_0 : i32, i32
  }
  func.func @transform_3(%arg0: i32) -> (i32, i32) {
    %c0_i32 = arith.constant 0 : i32
    %c0_i32_0 = arith.constant 0 : i32
    %c0_i32_1 = arith.constant 0 : i32
    return %c0_i32, %c0_i32_0 : i32, i32
  }
  func.func @transform_4(%arg0: i32) -> (i32, i32) {
    %c0_i32 = arith.constant 0 : i32
    %c0_i32_0 = arith.constant 0 : i32
    %c0_i32_1 = arith.constant 0 : i32
    return %c0_i32, %c0_i32_0 : i32, i32
  }
  func.func @transform_5(%arg0: i32) -> (i32, i32) {
    %c0_i32 = arith.constant 0 : i32
    %c0_i32_0 = arith.constant 0 : i32
    %c0_i32_1 = arith.constant 0 : i32
    return %c0_i32, %c0_i32_0 : i32, i32
  }
  func.func @transform_6(%arg0: i32) -> (i32, i32) {
    %c0_i32 = arith.constant 0 : i32
    %c0_i32_0 = arith.constant 0 : i32
    %c0_i32_1 = arith.constant 0 : i32
    return %c0_i32, %c0_i32_0 : i32, i32
  }
  func.func @transform_7(%arg0: i32) -> (i32, i32, i32) {
    %c0_i32 = arith.constant 0 : i32
    %c0_i32_0 = arith.constant 0 : i32
    %c0_i32_1 = arith.constant 0 : i32
    %c0_i32_2 = arith.constant 0 : i32
    return %c0_i32, %c0_i32_0, %c0_i32_1 : i32, i32, i32
  }
  func.func @transform_8(%arg0: i32) -> (i32, i32, i32) {
    %c0_i32 = arith.constant 0 : i32
    %c0_i32_0 = arith.constant 0 : i32
    %c0_i32_1 = arith.constant 0 : i32
    %c0_i32_2 = arith.constant 0 : i32
    return %c0_i32, %c0_i32_0, %c0_i32_1 : i32, i32, i32
  }
  func.func @transform_9(%arg0: i32) -> (i32, i32, i32) {
    %c0_i32 = arith.constant 0 : i32
    %c0_i32_0 = arith.constant 0 : i32
    %c0_i32_1 = arith.constant 0 : i32
    %c0_i32_2 = arith.constant 0 : i32
    return %c0_i32, %c0_i32_0, %c0_i32_1 : i32, i32, i32
  }
  func.func @transform_10(%arg0: i32) -> (i32, i32, i32) {
    %c0_i32 = arith.constant 0 : i32
    %c0_i32_0 = arith.constant 0 : i32
    %c0_i32_1 = arith.constant 0 : i32
    %c0_i32_2 = arith.constant 0 : i32
    return %c0_i32, %c0_i32_0, %c0_i32_1 : i32, i32, i32
  }
  func.func @transform_11(%arg0: i32) -> (i32, i32, i32) {
    %c0_i32 = arith.constant 0 : i32
    %c0_i32_0 = arith.constant 0 : i32
    %c0_i32_1 = arith.constant 0 : i32
    %c0_i32_2 = arith.constant 0 : i32
    return %c0_i32, %c0_i32_0, %c0_i32_1 : i32, i32, i32
  }
  func.func @transform_12(%arg0: i32) -> (i32, i32, i32) {
    %c0_i32 = arith.constant 0 : i32
    %c0_i32_0 = arith.constant 0 : i32
    %c0_i32_1 = arith.constant 0 : i32
    %c0_i32_2 = arith.constant 0 : i32
    return %c0_i32, %c0_i32_0, %c0_i32_1 : i32, i32, i32
  }
  func.func @transform_13(%arg0: i32) -> (i32, i32, i32) {
    %c0_i32 = arith.constant 0 : i32
    %c0_i32_0 = arith.constant 0 : i32
    %c0_i32_1 = arith.constant 0 : i32
    %c0_i32_2 = arith.constant 0 : i32
    return %c0_i32, %c0_i32_0, %c0_i32_1 : i32, i32, i32
  }
  func.func @transform_14(%arg0: i32) -> (i32, i32, i32) {
    %c0_i32 = arith.constant 0 : i32
    %c0_i32_0 = arith.constant 0 : i32
    %c0_i32_1 = arith.constant 0 : i32
    return %arg0, %c0_i32, %c0_i32_0 : i32, i32, i32
  }
}

</mosaic_0001>

<bundles_post_ra>
// kernel: tpu_custom_call.1
= control target key start
LH: loop header
LB: loop body
LE: loop exit
PB: predicated region body
PF: predicated region fallthrough
CT: control target
= control target key end

     0   :  { %19 = vsyncpa [#allocation3], 0  ;;  %s5870_s0 = inlined_call_operand.vmem [shape: f32[2,32,128], index: 0, kind: input, shape index: {}]   ;;  %s5871_s1 = inlined_call_operand.vmem [shape: f32[2,3,128], index: 1, kind: input, shape index: {}]   ;;  %s5872_s2 = inlined_call_operand.vmem [shape: bf16[32,32], index: 2, kind: input, shape index: {}]   ;;  %s5873_s3 = inlined_call_operand.vmem [shape: f32[32,3], index: 3, kind: input, shape index: {}]   ;;  %s5874_s4 = inlined_call_operand.vmem [shape: f32[32,1], index: 4, kind: input, shape index: {}]   ;;  %s5875_s5 = inlined_call_operand.vmem [shape: f32[32,1], index: 5, kind: input, shape index: {}]   ;;  %s5876_s6 = inlined_call_operand.vmem [shape: f32[32,1], index: 6, kind: input, shape index: {}]   ;;  %s5877_s7 = inlined_call_operand.vmem [shape: bf16[4,8,32], index: 7, kind: input, shape index: {}]   ;;  %s5878_s8 = inlined_call_operand.vmem [shape: bf16[4,32,32], index: 8, kind: input, shape index: {}]   ;;  %s5879_s9 = inlined_call_operand.vmem [shape: f32[4,32,1], index: 9, kind: input, shape index: {}]   ;;  %s5880_s10 = inlined_call_operand.vmem [shape: bf16[4,32,32], index: 10, kind: input, shape index: {}]   ;;  %s5881_s11 = inlined_call_operand.vmem [shape: f32[4,32,1], index: 11, kind: input, shape index: {}]   ;;  %s5882_s12 = inlined_call_operand.vmem [shape: f32[4,32,1], index: 12, kind: input, shape index: {}]   ;;  %s5883_s13 = inlined_call_operand.vmem [shape: f32[4,32,1], index: 13, kind: input, shape index: {}]   ;;  %s5884_s14 = inlined_call_operand.hbm [shape: f32[2,128,128], index: 14, kind: output, shape index: {}]  }
   0x1   :  { %21 = vsyncpa [#allocation3 + $0x1], 0  ;;  %s4671_s29 = smov 0   ;;  %s4673_s30 = smov 0  }
   0x2   :  { %s4675_s15 = smov 0   ;;  %s4677_s16 = smov 0  }
   0x3 LB: > { %5891 = sst [smem:[#allocation5_spill]] %s4576_s29  ;;  %s4692_s17 = sadd.s32 4294967295, %s4588_s16   ;;  %s4588_s16 = sphi %s4677_s16, %s5902_s16   ;;  %s4584_s15 = sphi %s4675_s15, %s5904_s15   ;;  %s4580_s30 = sphi %s4673_s30, %s5906_s30   ;;  %s4576_s29 = sphi %s4671_s29, %s5905_s29  }
   0x4   : > { %5892 = sst [smem:[#allocation6_spill]] %s4584_s15  ;;  %s3634_s18 = sadd.s32 4294967294, %s4588_s16  }
   0x5   : > { %5893 = sst [smem:[#allocation7_spill]] %s4588_s16  ;;  %s4696_s19 = sadd.s32 1, %s4588_s16  }
   0x6   : > { %5894 = sst [smem:[#allocation8_spill]] %s4696_s19  ;;  %s338_s20 = sadd.s32 1, %s4584_s15 }
   0x7   : > { %s335_s21 = ssub.s32 %s4588_s16, %s4696_s19  ;;  %p348_p0 = scmp.ne.s32.totalorder %s4584_s15, %s4580_s30 }
   0x8   : > { %p336_p1 = scmp.eq.s32.totalorder %s335_s21, 0  ;;  %p349_p2 = scmp.eq.s32.totalorder %s4692_s17, 1 }
   0x9   : > { %p354_p3 = scmp.ne.s32.totalorder %s4580_s30, %s4576_s29  ;;  %p355_p4 = scmp.eq.s32.totalorder %s3634_s18, 1 }
   0xa   : > { %s4707_s22 = scalar_select %p336_p1, %s4584_s15, %s338_s20  }
   0xb   : > { %p4709_p5 = por %p349_p2, %p348_p0  ;;  %p4713_p6 = por %p355_p4, %p354_p3 }
   0xc   : > { %5895 = sst [smem:[#allocation9_spill]] %s4707_s22  ;;  %p3637_p7 = scmp.ge.s32.totalorder %s4588_s16, 1 }
   0xd   : > { %s5897_s24 = scalar_select %p4713_p6, 1, 0 }
   0xe   : > { %p424_p8 = scmp.lt.s32.totalorder %s4588_s16, 3 }
   0xf   : > { %5898 = sst [smem:[#allocation10_spill]] %s5897_s24 }
  0x10   : > { %p425_p9 = pnand %p3637_p7, %p424_p8 }
  0x11   : > { %p474_p10 = scmp.lt.s32.totalorder (!%p425_p9), %s4692_s17, 1  ;;  %v489_v0 = vld [vmem:[%s5873_s3] sm:$0xff] (!%p425_p9)  ;;  %vm517_vm0 = vcmask (!%p425_p9), 23552   ;;  %vm635_vm1 = vcmask (!%p425_p9), 261120   ;;  %vm530_vm2 = vcmask (!%p425_p9), 1042432   ;;  %v4590_v4 = vmov (!%p425_p9), 0  }
  0x12   : > { %428 = sbr.rel (%p425_p9) target bundleno = 5949 (0x173d), region = 76  ;;  %3932 = vmatprep.mubr.msk.f32.mxu0 (!%p425_p9), %vm517_vm0, %v489_v0  ;;  %v4244_v1 = vld [vmem:[%s5872_s2] sm:$0xff] (!%p425_p9)   ;;  %4243 = vset.pattern.permute.xlu1 (!%p425_p9), %v4590_v4  ;;  %v490_v5 = vld [vmem:[%s5873_s3 + $0x8] sm:$0xff] (!%p425_p9)  ;;  %v491_v10 = vld [vmem:[%s5873_s3 + $0x10] sm:$0xff] (!%p425_p9)  ;;  %v4591_v26 = vmov (!%p425_p9), 0.0   ;;  %vm4592_vm3 = vmmov (!%p425_p9), 0  }
  0x13   : > { %v719_v2 = vld [vmem:[%s5876_s6] sm:$0xff] (!%p425_p9)  ;;  %3942 = vmatprep.mubr.msk.bf16.mxu1 (!%p425_p9), %vm635_vm1, %v4244_v1  ;;  %4242 = vset.pattern.permute.xlu0 (!%p425_p9), %v4590_v4  ;;  %v492_v13 = vld [vmem:[%s5873_s3 + $0x18] sm:$0xff] (!%p425_p9)  ;;  %v720_v15 = vld [vmem:[%s5876_s6 + $0x8] sm:$0xff] (!%p425_p9)  ;;  %vm936_vm4 = vcmask (!%p425_p9), 1043456   ;;  %vm911_vm5 = vcmask (!%p425_p9), 64512   ;;  %s471_s16 = sand.u32 (!%p425_p9), 1, %s4580_s30  }
  0x14   : > { %v691_v3 = vld [vmem:[%s5875_s5] sm:$0xff] (!%p425_p9)  ;;  %725 = vperm.xlu1 (!%p425_p9), %4243, %v719_v2   ;;  %v692_v16 = vld [vmem:[%s5875_s5 + $0x8] sm:$0xff] (!%p425_p9)  ;;  %v694_v20 = vld [vmem:[%s5875_s5 + $0x18] sm:$0xff] (!%p425_p9) }
  0x15   : > { %697 = vperm.xlu0 (!%p425_p9), %4242, %v691_v3   ;;  %v494_v17 = vld [vmem:[%s5874_s4 + $0x8] sm:$0xff] (!%p425_p9)  ;;  %v493_v19 = vld [vmem:[%s5874_s4] sm:$0xff] (!%p425_p9)  ;;  %v693_v21 = vld [vmem:[%s5875_s5 + $0x10] sm:$0xff] (!%p425_p9) }
  0x16   : > { %v4245_v18 = vld [vmem:[%s5872_s2 + $0x8] sm:$0xff] (!%p425_p9)   ;;  %v722_v22 = vld [vmem:[%s5876_s6 + $0x18] sm:$0xff] (!%p425_p9)  ;;  %v721_v23 = vld [vmem:[%s5876_s6 + $0x10] sm:$0xff] (!%p425_p9) }
  0x17   : > { %v496_v24 = vld [vmem:[%s5874_s4 + $0x18] sm:$0xff] (!%p425_p9)  ;;  %v495_v25 = vld [vmem:[%s5874_s4 + $0x10] sm:$0xff] (!%p425_p9) }
  0x18   : > { %730 = vperm.xlu1 (!%p425_p9), %4243, %v720_v15  }
  0x19   : > { %s475_s27 = scalar_select %p474_p10, %s4692_s17, 1  ;;  %702 = vperm.xlu0 %4242, %v692_v16  }
  0x1b   : > { %s3799_s19 = sshll.u32 %s475_s27, 5  ;;  %s3641_s25 = sshll.u32 %s475_s27, 2 }
  0x1c   : > { %s478_s28 = scalar_lea.vmem %s5870_s0, %s3799_s19  ;;  %s482_s20 = scalar_lea.vmem %s5871_s1, %s3641_s25  ;;  %504 = vperm.xlu1 %4243, %v494_v17  }
  0x1d   : > { %v488_v6 = vld [vmem:[%s482_s20] sm:$0x7]  ;;  %v485_v8 = vld [vmem:[%s478_s28 + $0x8] sm:$0xff]  ;;  %v486_v11 = vld [vmem:[%s478_s28 + $0x10] sm:$0xff]  ;;  %499 = vperm.xlu0 %4242, %v493_v19   ;;  %s3638_s19 = sshll.u32 %s471_s16, 7  ;;  %s3800_s20 = sshll.u32 %s4692_s17, 11 }
  0x1e   : > { %v484_v7 = vld [vmem:[%s478_s28] sm:$0xff]  ;;  %3930 = vmatprep.subr.msk.mxu0 %vm530_vm2, %v488_v6  ;;  %v487_v12 = vld [vmem:[%s478_s28 + $0x18] sm:$0xff]  ;;  %s5051_s24 = scalar_lea.vmem [#allocation2], %s3638_s19  ;;  %s5819_s29 = scalar_lea.hbm %s5884_s14, %s3800_s20 }
  0x1f   : > { %v623_v9 = vpack.c.bf16 %v485_v8, %v484_v7  ;;  %3931 = vmatpush3.msk.msra.mxu0 %vm530_vm2, %v488_v6  ;;  %v624_v14 = vpack.c.bf16 %v487_v12, %v486_v11  ;;  %s3560_s21 = sshll.u32 %s5051_s24, 4  ;;  %s5829_s17 = scalar_lea.sflag [#allocation3], %s471_s16  ;;  %s5821_s21 = int_to_ptr.vmem [resolvable:$true] %s3560_s21 }
  0x20   : > { %3933 = vmatmul.mubr.msk.f32.vlgmr.msra.gmra.mrb[0].mxu0 %vm517_vm0, %v490_v5  ;;  %712 = vperm.xlu1 %4243, %v694_v20   ;;  %v757_v5 = vld [vmem:[%s5877_s7] sm:$0xf]  ;;  %s4526_s19 = scalar_lea.vmem %s5821_s21, 2048  ;;  %s4593_s27 = smov [#allocation2]  }
  0x21   : > { %3938 = vmatprep.subr.bf16.mxu1 %v623_v9  ;;  %3935 = vmatprep.mubr.msk.f32.mxu0 %vm517_vm0, %v491_v10  ;;  %v4246_v20 = vld [vmem:[%s5878_s8] sm:$0xff]   ;;  %p4527_p11 = scmp.ne.s32.totalorder %s5821_s21, %s4526_s19  ;;  %s4530_s25 = sshll.u32 %s4593_s27, 4  ;;  %s4531_s25 = int_to_ptr.vmem [resolvable:$false] %s4530_s25 }
  0x22   : > { %3939 = vmatpush3.bf16.msra.mxu1 %v623_v9  ;;  %707 = vperm.xlu0 %4242, %v693_v21   ;;  %v4247_v21 = vld [vmem:[%s5878_s8 + $0x8] sm:$0xff]   ;;  %s4532_s26 = scalar_lea.vmem %s4531_s25, 4096  ;;  %p4533_p0 = scmp.lt.s32.totalorder %s5821_s21, %s4531_s25 }
  0x23   : > { %3940 = vmatprep.subr.bf16.mxu1 %v624_v14  ;;  %3946 = vmatprep.subr.bf16.mxu0 %v4591_v26  ;;  %p4528_p12 = pnand %p4527_p11, %p4709_p5  ;;  %p4534_p1 = scmp.lt.s32.totalorder %s4532_s26, %s4526_s19 }
  0x24   : > { %3936 = vmatmul.mubr.msk.f32.gmra.mrb[2].mxu0 %vm517_vm0, %v492_v13  ;;  %740 = vperm.xlu1 %4243, %v722_v22  }
  0x25   : > { %3950 = vmatprep.mubr.msk.bf16.mxu0 %vm4592_vm3, %v4591_v26  ;;  %p4529_p13 = pneg %p4528_p12  ;;  %p4535_p2 = por %p4534_p1, %p4533_p0 }
  0x26   : > { %3941 = vmatpush3.bf16.msra.mxu1 %v624_v14  ;;  %735 = vperm.xlu0 %4242, %v721_v23  }
  0x27   : > { %p4536_p3 = pnand %p4535_p2, %p4529_p13 }
  0x28   : > { %514 = vperm.xlu1 %4243, %v496_v24  }
  0x29   : > { %3943 = vmatmul.mubr.msk.bf16.vlgmr.msra.gmra.mrb[0].mxu1 %vm635_vm1, %v4245_v18 }
  0x2a   : > { %509 = vperm.xlu0 %4242, %v495_v25   ;;  %3958 = vmatprep.mubr.msk.bf16.mxu1 %vm635_vm1, %v4246_v20 }
  0x93   : > { %v726_v27 = vpop.permute.xlu1 %725 }
  0x94   : > { %v698_v28 = vpop.permute.xlu0 %697 }
  0x97   : > { %v731_v29 = vpop.permute.xlu1 %730 }
  0x98   : > { %v703_v30 = vpop.permute.xlu0 %702 }
  0x9b   : > { %v505_v31 = vpop.permute.xlu1 %504 }
  0x9c   : > { %v500_v32 = vpop.permute.xlu0 %499 }
  0x9f   : > { %v713_v35 = vpop.permute.xlu1 %712 }
  0xa1   : > { %v708_v37 = vpop.permute.xlu0 %707 }
  0xa3   : > { %v741_v40 = vpop.permute.xlu1 %740 }
  0xa5   : > { %v736_v45 = vpop.permute.xlu0 %735 }
  0xa7   : > { %v515_v54 = vpop.permute.xlu1 %514 }
  0xa9   : > { %v510_v61 = vpop.permute.xlu0 %509 }
  0xf3   : > { %v3934_v33 = vpop.f32.mrb[0].mxu0 }
  0xf4   : > { %v600_v34 = vpop.f32.mrb[1].mxu0  ;;  %v4792_v55 = vadd.f32 %v3934_v33, %v505_v31 }
  0xf5   : > { %v4794_v57 = vadd.f32 %v600_v34, %v500_v32 }
  0xf7   : > { %v3937_v36 = vpop.f32.mrb[2].mxu0 }
  0xf8   : > { %v610_v38 = vpop.f32.mrb[3].mxu0  ;;  %v4796_v58 = vadd.f32 %v3937_v36, %v515_v54 }
  0xf9   : > { %v4798_v62 = vadd.f32 %v610_v38, %v510_v61 }
  0xfc   : > { %v3944_v39 = vpop.f32.mrb[0].mxu1 }
  0xfd   : > { %v717_v41 = vmul.f32 %v3944_v39, %v708_v37  ;;  %v676_v42 = vpop.f32.mrb[1].mxu1 }
  0xfe   : > { %v715_v43 = vmul.f32 %v698_v28, %v676_v42  ;;  %v3945_v44 = vpop.f32.mrb[2].mxu1 }
  0xff   : > { %v718_v46 = vmul.f32 %v3945_v44, %v713_v35  ;;  %v679_v47 = vpop.f32.mrb[3].mxu1  ;;  %v745_v48 = vadd.f32 %v736_v45, %v717_v41 }
 0x100   : > { %v743_v49 = vadd.f32 %v726_v27, %v715_v43  ;;  %v716_v50 = vmul.f32 %v703_v30, %v679_v47 }
 0x101   : > { %v746_v51 = vadd.f32 %v741_v40, %v718_v46  ;;  %v749_v59 = vmax.f32 %v745_v48, 0.0 }
 0x102   : > { %v747_v52 = vmax.f32 %v743_v49, 0.0  ;;  %v744_v53 = vadd.f32 %v731_v29, %v716_v50 }
 0x103   : > { %v750_v56 = vmax.f32 %v746_v51, 0.0  ;;  %v4810_v2 = vadd.f32 %v749_v59, %v4798_v62 }
 0x104   : > { %v748_v60 = vmax.f32 %v744_v53, 0.0  ;;  %v4801_v63 = vadd.f32 %v747_v52, %v4794_v57 }
 0x105   : > { %v4804_v0 = vadd.f32 %v750_v56, %v4796_v58 }
 0x106   : > { %v4807_v1 = vadd.f32 %v748_v60, %v4792_v55 }
 0x107   : > { %v756_v4 = vpack.c.bf16 %v4804_v0, %v4810_v2 }
 0x108   : > { %v755_v3 = vpack.c.bf16 %v4807_v1, %v4801_v63 }
 0x10a   : > { %3947 = vmatpush3.bf16.msra.mxu0 %v755_v3  ;;  %3954 = vmatprep.subr.bf16.mxu1 %v755_v3 }
 0x10b   : > { %3955 = vmatpush3.bf16.msra.mxu1 %v755_v3  ;;  %3948 = vmatprep.subr.bf16.mxu0 %v4591_v26 }
 0x10c   : > { %3956 = vmatprep.subr.bf16.mxu1 %v756_v4 }
 0x10e   : > { %3949 = vmatpush3.bf16.msra.mxu0 %v756_v4 }
 0x10f   : > { %3957 = vmatpush3.bf16.msra.mxu1 %v756_v4 }
 0x111   : > { %3951 = vmatmul.mubr.msk.bf16.vlgmr.msra.gmra.mrb[4].mxu0 %vm635_vm1, %v757_v5 }
 0x112   : > { %3959 = vmatmul.mubr.msk.bf16.vlgmr.msra.gmra.mrb[4].mxu1 %vm635_vm1, %v4247_v21 }
 0x1e4   : > { %v795_v6 = vpop.f32.mrb[4].mxu0 }
 0x1e5   : > { %v894_v7 = vpack.c.bf16 %v795_v6, %v795_v6  ;;  %v3952_v8 = vpop.f32.mrb[5].mxu0 }
 0x1e6   : > { %v798_v9 = vpop.f32.mrb[6].mxu0 }
 0x1e7   : > { %895 = vxpose.xlu0.c.b16.start.end [1/1] (short) %v894_v7, 128  ;;  %v3953_v10 = vpop.f32.mrb[7].mxu0  ;;  %4194 = vmatprep.subr.msk.bf16.mxu0 %vm936_vm4, %v894_v7  ;;  %v938_v11 = vsel %vm936_vm4, %v894_v7, 0 }
 0x1e8   : > { %3963 = vmatpush3.bf16.msra.mxu0 %v938_v11 }
 0x24d   : > { %v903_v12 = vpop.trf.xlu0 }
 0x24e   : > { %3964 = vmatprep.mubr.msk.bf16.mxu0 %vm911_vm5, %v903_v12 }
 0x251   : > { %v904_v13 = vpop.trf.xlu0 }
 0x252   : > { %3965 = vmatmul.mubr.msk.bf16.vlgmr.msra.gmra.mrb[8].mxu0 %vm911_vm5, %v904_v13 }
 0x255   : > { %v905_v14 = vpop.trf.xlu0 }
 0x256   : > { %3968 = vmatprep.mubr.msk.bf16.mxu0 %vm911_vm5, %v905_v14 }
 0x259   : > { %v906_v15 = vpop.trf.xlu0 }
 0x25a   : > { %3969 = vmatmul.mubr.msk.bf16.gmra.mrb[12].mxu0 %vm911_vm5, %v906_v15 }
 0x25d   : > { %v907_v16 = vpop.trf.xlu0 }
 0x25e   : > { %3972 = vmatprep.mubr.msk.bf16.mxu0 %vm911_vm5, %v907_v16 }
 0x261   : > { %v908_v17 = vpop.trf.xlu0 }
 0x262   : > { %3973 = vmatmul.mubr.msk.bf16.gmra.mrb[16].mxu0 %vm911_vm5, %v908_v17 }
 0x265   : > { %v909_v18 = vpop.trf.xlu0 }
 0x266   : > { %3976 = vmatprep.mubr.msk.bf16.mxu0 %vm911_vm5, %v909_v18 }
 0x269   : > { %v910_v19 = vpop.trf.xlu0 }
 0x26a   : > { %3977 = vmatmul.mubr.msk.bf16.gmra.mrb[20].mxu0 %vm911_vm5, %v910_v19 }
 0x325   : > { %v3966_v22 = vpop.f32.mrb[8].mxu0 }
 0x326   : > { %v974_v23 = vpop.f32.mrb[9].mxu0 }
 0x327   : > { %1037 = vmax.xlane.f32.xlu1 %v974_v23  ;;  %v3967_v24 = vpop.f32.mrb[10].mxu0 }
 0x328   : > { %v977_v25 = vpop.f32.mrb[11].mxu0 }
 0x329   : > { %1039 = vmax.xlane.f32.xlu0 %v977_v25 }
 0x32b   : > { %1041 = vmax.xlane.f32.xlu1 %v3966_v22 }
 0x32d   : > { %v3970_v27 = vpop.f32.mrb[12].mxu0 }
 0x32e   : > { %v990_v28 = vpop.f32.mrb[13].mxu0 }
 0x32f   : > { %1043 = vmax.xlane.f32.xlu1 %v3967_v24  ;;  %v3971_v29 = vpop.f32.mrb[14].mxu0 }
 0x330   : > { %v993_v30 = vpop.f32.mrb[15].mxu0 }
 0x333   : > { %1049 = vmax.xlane.f32.xlu1 %v3970_v27 }
 0x335   : > { %v4839_v31 = vpop.f32.mrb[16].mxu0 }
 0x336   : > { %v1006_v32 = vpop.f32.mrb[17].mxu0 }
 0x337   : > { %1045 = vmax.xlane.f32.xlu1 %v990_v28  ;;  %v4841_v33 = vpop.f32.mrb[18].mxu0 }
 0x338   : > { %1059 = vmax.xlane.f32.xlu0 %v4841_v33  ;;  %v4844_v34 = vpop.f32.mrb[19].mxu0 }
 0x33b   : > { %1051 = vmax.xlane.f32.xlu1 %v3971_v29 }
 0x33d   : > { %v4846_v35 = vpop.f32.mrb[20].mxu0 }
 0x33e   : > { %v4848_v36 = vpop.f32.mrb[21].mxu0 }
 0x33f   : > { %1047 = vmax.xlane.f32.xlu1 %v993_v30  ;;  %v4850_v37 = vpop.f32.mrb[22].mxu0 }
 0x340   : > { %v4852_v38 = vpop.f32.mrb[23].mxu0 }
 0x341   : > { %1063 = vmax.xlane.f32.xlu0 %v4852_v38 }
 0x343   : > { %1053 = vmax.xlane.f32.xlu1 %v1006_v32 }
 0x345   : > { %1067 = vmax.xlane.f32.xlu0 %v4850_v37 }
 0x347   : > { %1055 = vmax.xlane.f32.xlu1 %v4844_v34 }
 0x34b   : > { %1057 = vmax.xlane.f32.xlu1 %v4839_v31 }
 0x34f   : > { %1061 = vmax.xlane.f32.xlu1 %v4848_v36 }
 0x353   : > { %1065 = vmax.xlane.f32.xlu1 %v4846_v35 }
 0x3b4   : > { %v1038_v39 = vpop.xlane.xlu1 %1037 }
 0x3b5   : > { %v1069_v40 = vsub.f32 %v974_v23, %v1038_v39 }
 0x3b6   : > { %v1040_v41 = vpop.xlane.xlu0 %1039 }
 0x3b7   : > { %v1085_v42 = vmul.f32 1.442695, %v1069_v40  ;;  %v1070_v43 = vsub.f32 %v977_v25, %v1040_v41 }
 0x3b8   : > { %v1042_v44 = vpop.xlane.xlu1 %1041 }
 0x3b9   : > { %4262 = vpow2.f32 %v1085_v42  ;;  %v1087_v45 = vmul.f32 1.442695, %v1070_v43  ;;  %v1071_v46 = vsub.f32 %v3966_v22, %v1042_v44 }
 0x3bb   : > { %4264 = vpow2.f32 %v1087_v45  ;;  %v1089_v47 = vmul.f32 1.442695, %v1071_v46 }
 0x3bc   : > { %v1044_v48 = vpop.xlane.xlu1 %1043 }
 0x3bd   : > { %4266 = vpow2.f32 %v1089_v47  ;;  %v1072_v49 = vsub.f32 %v3967_v24, %v1044_v48  ;;  %v805_v48 = vld [vmem:[%s5879_s9] sm:$0xff] }
 0x3bf   : > { %v1091_v50 = vmul.f32 1.442695, %v1072_v49  ;;  %v4918_v49 = vpop.f32.mrb[4].mxu1 }
 0x3c0   : > { %v1050_v51 = vpop.xlane.xlu1 %1049 }
 0x3c1   : > { %4268 = vpow2.f32 %v1091_v50  ;;  %v1075_v56 = vsub.f32 %v3970_v27, %v1050_v51  ;;  %v807_v50 = vld [vmem:[%s5879_s9 + $0x10] sm:$0xff]  ;;  %v4923_v51 = vpop.f32.mrb[5].mxu1 }
 0x3c3   : > { %v4860_v52 = vpop.eup %4262  ;;  %v1097_v4 = vmul.f32 1.442695, %v1075_v56  ;;  %v4928_v56 = vpop.f32.mrb[6].mxu1 }
 0x3c4   : > { %v1046_v53 = vpop.xlane.xlu1 %1045  ;;  %1117 = vadd.xlane.f32.xlu1 %v4860_v52 }
 0x3c5   : > { %v4863_v54 = vpop.eup %4264  ;;  %v1073_v59 = vsub.f32 %v990_v28, %v1046_v53  ;;  %v1060_v9 = vpop.xlane.xlu0 %1059  ;;  %v806_v53 = vld [vmem:[%s5879_s9 + $0x8] sm:$0xff] }
 0x3c6   : > { %1119 = vadd.xlane.f32.xlu0 %v4863_v54  ;;  %v1080_v17 = vsub.f32 %v4841_v33, %v1060_v9  ;;  %v1292_v9 = vld [vmem:[%s5881_s11 + $0x18] sm:$0xff] }
 0x3c7   : > { %v4866_v60 = vpop.eup %4266  ;;  %v1093_v61 = vmul.f32 1.442695, %v1073_v59  ;;  %v808_v59 = vld [vmem:[%s5879_s9 + $0x18] sm:$0xff] }
 0x3c8   : > { %v1052_v3 = vpop.xlane.xlu1 %1051  ;;  %1121 = vadd.xlane.f32.xlu1 %v4866_v60  ;;  %v1107_v22 = vmul.f32 1.442695, %v1080_v17 }
 0x3c9   : > { %4270 = vpow2.f32 %v1093_v61  ;;  %v1076_v6 = vsub.f32 %v3971_v29, %v1052_v3  ;;  %v4933_v61 = vpop.f32.mrb[7].mxu1  ;;  %v1289_v3 = vld [vmem:[%s5881_s11] sm:$0xff] }
 0x3ca   : > { %4272 = vpow2.f32 %v1097_v4  ;;  %v1290_v4 = vld [vmem:[%s5881_s11 + $0x8] sm:$0xff] }
 0x3cb   : > { %v4869_v5 = vpop.eup %4268  ;;  %v1099_v11 = vmul.f32 1.442695, %v1076_v6  ;;  %v1378_v6 = vld [vmem:[%s5882_s12] sm:$0xff] }
 0x3cc   : > { %v1048_v7 = vpop.xlane.xlu1 %1047  ;;  %1123 = vadd.xlane.f32.xlu0 %v4869_v5 }
 0x3cd   : > { %v1074_v8 = vsub.f32 %v993_v30, %v1048_v7  ;;  %v1379_v7 = vld [vmem:[%s5882_s12 + $0x8] sm:$0xff] }
 0x3ce   : > { %v1064_v15 = vpop.xlane.xlu0 %1063 }
 0x3cf   : > { %v1095_v10 = vmul.f32 1.442695, %v1074_v8  ;;  %v1082_v23 = vsub.f32 %v4852_v38, %v1064_v15  ;;  %v1291_v8 = vld [vmem:[%s5881_s11 + $0x10] sm:$0xff] }
 0x3d0   : > { %v1054_v12 = vpop.xlane.xlu1 %1053  ;;  %v1408_v15 = vld [vmem:[%s5883_s13 + $0x10] sm:$0xff] }
 0x3d1   : > { %4274 = vpow2.f32 %v1095_v10  ;;  %v1077_v13 = vsub.f32 %v1006_v32, %v1054_v12  ;;  %v1111_v30 = vmul.f32 1.442695, %v1082_v23  ;;  %v1406_v10 = vld [vmem:[%s5883_s13] sm:$0xff]  ;;  %v1380_v12 = vld [vmem:[%s5882_s12 + $0x10] sm:$0xff] }
 0x3d2   : > { %4276 = vpow2.f32 %v1099_v11  ;;  %v1068_v25 = vpop.xlane.xlu0 %1067  ;;  %v1407_v11 = vld [vmem:[%s5883_s13 + $0x8] sm:$0xff] }
 0x3d3   : > { %v4872_v14 = vpop.eup %4270  ;;  %v1101_v16 = vmul.f32 1.442695, %v1077_v13  ;;  %v1084_v32 = vsub.f32 %v4850_v37, %v1068_v25  ;;  %v1381_v13 = vld [vmem:[%s5882_s12 + $0x18] sm:$0xff] }
 0x3d4   : > { %v1056_v18 = vpop.xlane.xlu1 %1055  ;;  %1125 = vadd.xlane.f32.xlu1 %v4872_v14  ;;  %v4877_v20 = vpop.eup %4272 }
 0x3d5   : > { %4278 = vpow2.f32 %v1101_v16  ;;  %v1078_v19 = vsub.f32 %v4844_v34, %v1056_v18  ;;  %v1409_v16 = vld [vmem:[%s5883_s13 + $0x18] sm:$0xff] }
 0x3d7   : > { %v1103_v21 = vmul.f32 1.442695, %v1078_v19 }
 0x3d8   : > { %v1058_v24 = vpop.xlane.xlu1 %1057  ;;  %1129 = vadd.xlane.f32.xlu1 %v4877_v20 }
 0x3d9   : > { %4280 = vpow2.f32 %v1103_v21  ;;  %v1079_v27 = vsub.f32 %v4839_v31, %v1058_v24  ;;  %v1115_v31 = vmul.f32 1.442695, %v1084_v32 }
 0x3da   : > { %4282 = vpow2.f32 %v1107_v22 }
 0x3db   : > { %v4882_v28 = vpop.eup %4274  ;;  %v1105_v29 = vmul.f32 1.442695, %v1079_v27 }
 0x3dc   : > { %v1062_v33 = vpop.xlane.xlu1 %1061  ;;  %1127 = vadd.xlane.f32.xlu0 %v4882_v28  ;;  %v4887_v38 = vpop.eup %4276 }
 0x3dd   : > { %4284 = vpow2.f32 %v1105_v29  ;;  %v1081_v34 = vsub.f32 %v4848_v36, %v1062_v33 }
 0x3de   : > { %4286 = vpow2.f32 %v1111_v30 }
 0x3df   : > { %v4889_v39 = vpop.eup %4278  ;;  %v1109_v40 = vmul.f32 1.442695, %v1081_v34 }
 0x3e0   : > { %1133 = vadd.xlane.f32.xlu1 %v4889_v39  ;;  %v1066_v41 = vpop.xlane.xlu1 %1065  ;;  %1131 = vadd.xlane.f32.xlu0 %v4887_v38 }
 0x3e1   : > { %4288 = vpow2.f32 %v1109_v40  ;;  %v1083_v37 = vsub.f32 %v4846_v35, %v1066_v41 }
 0x3e2   : > { %4290 = vpow2.f32 %v1115_v31 }
 0x3e3   : > { %v4894_v42 = vpop.eup %4280  ;;  %v1113_v43 = vmul.f32 1.442695, %v1083_v37 }
 0x3e4   : > { %1135 = vadd.xlane.f32.xlu0 %v4894_v42  ;;  %v4897_v36 = vpop.eup %4282 }
 0x3e5   : > { %4292 = vpow2.f32 %v1113_v43 }
 0x3e7   : > { %v4899_v44 = vpop.eup %4284 }
 0x3e8   : > { %1137 = vadd.xlane.f32.xlu1 %v4899_v44  ;;  %1139 = vadd.xlane.f32.xlu0 %v4897_v36  ;;  %v4903_v45 = vpop.eup %4286 }
 0x3eb   : > { %v4905_v46 = vpop.eup %4288 }
 0x3ec   : > { %1141 = vadd.xlane.f32.xlu1 %v4905_v46  ;;  %1143 = vadd.xlane.f32.xlu0 %v4903_v45  ;;  %v4909_v35 = vpop.eup %4290 }
 0x3ef   : > { %v4911_v47 = vpop.eup %4292 }
 0x3f0   : > { %1145 = vadd.xlane.f32.xlu1 %v4911_v47  ;;  %1147 = vadd.xlane.f32.xlu0 %v4909_v35 }
 0x401   : > { %811 = vperm.xlu1 %4243, %v805_v48  }
 0x405   : > { %821 = vperm.xlu1 %4243, %v807_v50  }
 0x406   : > { %816 = vperm.xlu0 %4242, %v806_v53  }
 0x409   : > { %826 = vperm.xlu1 %4243, %v808_v59  }
 0x40a   : > { %1295 = vperm.xlu0 %4242, %v1289_v3  }
 0x40d   : > { %1300 = vperm.xlu1 %4243, %v1290_v4  }
 0x40e   : > { %1384 = vperm.xlu0 %4242, %v1378_v6  }
 0x411   : > { %1389 = vperm.xlu1 %4243, %v1379_v7  }
 0x412   : > { %1305 = vperm.xlu0 %4242, %v1291_v8  }
 0x415   : > { %1310 = vperm.xlu1 %4243, %v1292_v9  }
 0x416   : > { %1412 = vperm.xlu0 %4242, %v1406_v10  }
 0x419   : > { %1417 = vperm.xlu1 %4243, %v1407_v11  }
 0x41a   : > { %1394 = vperm.xlu0 %4242, %v1380_v12  }
 0x41d   : > { %1399 = vperm.xlu1 %4243, %v1381_v13  }
 0x41e   : > { %1422 = vperm.xlu0 %4242, %v1408_v15  }
 0x421   : > { %1427 = vperm.xlu1 %4243, %v1409_v16  }
 0x451   : > { %v1118_v17 = vpop.xlane.xlu1 %1117 }
 0x453   : > { %v1120_v18 = vpop.xlane.xlu0 %1119 }
 0x454   : > { %4294 = vrcp.f32 %v1120_v18 }
 0x455   : > { %v1122_v19 = vpop.xlane.xlu1 %1121  ;;  %4296 = vrcp.f32 %v1118_v17 }
 0x456   : > { %4298 = vrcp.f32 %v1122_v19 }
 0x459   : > { %v1124_v21 = vpop.xlane.xlu0 %1123 }
 0x45a   : > { %4300 = vrcp.f32 %v1124_v21 }
 0x45e   : > { %v4295_v23 = vpop.eup %4294 }
 0x45f   : > { %v4297_v25 = vpop.eup %4296  ;;  %v4972_v29 = vmul.f32 %v4295_v23, %v4863_v54 }
 0x460   : > { %v4299_v30 = vpop.eup %4298  ;;  %v4975_v32 = vmul.f32 %v4297_v25, %v4860_v52 }
 0x461   : > { %v1126_v22 = vpop.xlane.xlu1 %1125  ;;  %v4978_v34 = vmul.f32 %v4299_v30, %v4866_v60 }
 0x462   : > { %4302 = vrcp.f32 %v1126_v22  ;;  %v1181_v41 = vadd.f32 %v4972_v29, %v4975_v32 }
 0x464   : > { %v4301_v33 = vpop.eup %4300  ;;  %v1182_v48 = vadd.f32 %v1181_v41, %v4978_v34 }
 0x465   : > { %v1130_v24 = vpop.xlane.xlu1 %1129  ;;  %v4983_v43 = vmul.f32 %v4301_v33, %v4869_v5 }
 0x466   : > { %4304 = vrcp.f32 %v1130_v24 }
 0x467   : > { %v1183_v50 = vadd.f32 %v1182_v48, %v4983_v43 }
 0x469   : > { %v1128_v27 = vpop.xlane.xlu0 %1127 }
 0x46a   : > { %4306 = vrcp.f32 %v1128_v27 }
 0x46c   : > { %v4303_v37 = vpop.eup %4302 }
 0x46d   : > { %v1134_v40 = vpop.xlane.xlu1 %1133  ;;  %v1132_v31 = vpop.xlane.xlu0 %1131  ;;  %v4986_v54 = vmul.f32 %v4303_v37, %v4872_v14 }
 0x46e   : > { %4308 = vrcp.f32 %v1134_v40 }
 0x46f   : > { %4310 = vrcp.f32 %v1132_v31  ;;  %v1184_v5 = vadd.f32 %v1183_v50, %v4986_v54 }
 0x470   : > { %v4305_v60 = vpop.eup %4304 }
 0x471   : > { %v1136_v52 = vpop.xlane.xlu0 %1135  ;;  %v4995_v6 = vmul.f32 %v4305_v60, %v4877_v20 }
 0x472   : > { %4312 = vrcp.f32 %v1136_v52 }
 0x474   : > { %v4307_v53 = vpop.eup %4306 }
 0x475   : > { %v4991_v59 = vmul.f32 %v4307_v53, %v4882_v28  ;;  %v1138_v3 = vpop.xlane.xlu1 %1137  ;;  %v1140_v4 = vpop.xlane.xlu0 %1139 }
 0x476   : > { %4314 = vrcp.f32 %v1138_v3 }
 0x477   : > { %4316 = vrcp.f32 %v1140_v4  ;;  %v1185_v14 = vadd.f32 %v1184_v5, %v4991_v59 }
 0x478   : > { %v4309_v7 = vpop.eup %4308 }
 0x479   : > { %v4311_v8 = vpop.eup %4310  ;;  %v1142_v9 = vpop.xlane.xlu1 %1141  ;;  %v1186_v11 = vadd.f32 %v1185_v14, %v4995_v6  ;;  %v5003_v13 = vmul.f32 %v4309_v7, %v4889_v39 }
 0x47a   : > { %v1144_v10 = vpop.xlane.xlu0 %1143  ;;  %v5000_v28 = vmul.f32 %v4311_v8, %v4887_v38  ;;  %4318 = vrcp.f32 %v1142_v9 }
 0x47b   : > { %4320 = vrcp.f32 %v1144_v10 }
 0x47c   : > { %v4313_v12 = vpop.eup %4312  ;;  %v1187_v20 = vadd.f32 %v1186_v11, %v5000_v28 }
 0x47d   : > { %v5007_v15 = vmul.f32 %v4313_v12, %v4894_v42  ;;  %v1146_v16 = vpop.xlane.xlu1 %1145 }
 0x47e   : > { %v1148_v17 = vpop.xlane.xlu0 %1147  ;;  %4322 = vrcp.f32 %v1146_v16  ;;  %v1188_v18 = vadd.f32 %v1187_v20, %v5003_v13 }
 0x47f   : > { %4324 = vrcp.f32 %v1148_v17 }
 0x480   : > { %v4315_v19 = vpop.eup %4314  ;;  %v1189_v23 = vadd.f32 %v1188_v18, %v5007_v15 }
 0x481   : > { %v4317_v38 = vpop.eup %4316  ;;  %v1175_v21 = vmul.f32 %v4315_v19, %v4899_v44  ;;  %v812_v22 = vpop.permute.xlu1 %811 }
 0x482   : > { %v1176_v39 = vmul.f32 %v4317_v38, %v4897_v36  ;;  %v880_v31 = vadd.f32 %v4923_v51, %v812_v22 }
 0x483   : > { %v1190_v24 = vadd.f32 %v1189_v23, %v1175_v21 }
 0x484   : > { %v4319_v25 = vpop.eup %4318 }
 0x485   : > { %v4321_v27 = vpop.eup %4320  ;;  %v1177_v42 = vmul.f32 %v4319_v25, %v4905_v46  ;;  %v822_v30 = vpop.permute.xlu1 %821  ;;  %v1191_v40 = vadd.f32 %v1190_v24, %v1176_v39 }
 0x486   : > { %v817_v33 = vpop.permute.xlu0 %816  ;;  %v1178_v37 = vmul.f32 %v4321_v27, %v4903_v45  ;;  %v888_v3 = vadd.f32 %v4918_v49, %v822_v30 }
 0x487   : > { %v883_v41 = vadd.f32 %v4933_v61, %v817_v33  ;;  %v1192_v44 = vadd.f32 %v1191_v40, %v1177_v42 }
 0x488   : > { %v4323_v52 = vpop.eup %4322 }
 0x489   : > { %v1228_v48 = vpack.c.bf16 %v883_v41, %v880_v31  ;;  %v4325_v60 = vpop.eup %4324  ;;  %v1179_v36 = vmul.f32 %v4323_v52, %v4911_v47  ;;  %v827_v50 = vpop.permute.xlu1 %826  ;;  %v1193_v53 = vadd.f32 %v1192_v44, %v1178_v37  ;;  %v4249_v52 = vld [vmem:[%s5880_s10 + $0x8] sm:$0xff]  }
 0x48a   : > { %v891_v46 = vadd.f32 %v4928_v56, %v827_v50  ;;  %v1180_v4 = vmul.f32 %v4325_v60, %v4909_v35 }
 0x48b   : > { %3996 = vmatprep.mubr.bf16.mxu1 %v1228_v48  ;;  %v1194_v51 = vadd.f32 %v1193_v53, %v1179_v36  ;;  %v1296_v48 = vpop.permute.xlu0 %1295 }
 0x48c   : > { %v1229_v5 = vpack.c.bf16 %v891_v46, %v888_v3 }
 0x48d   : > { %v1195_v61 = vadd.f32 %v1194_v51, %v1180_v4  ;;  %v1301_v60 = vpop.permute.xlu1 %1300 }
 0x48f   : > { %v1196_v14 = vrot.slane %v1195_v61, 4 }
 0x491   : > { %v1197_v45 = vadd.f32 %v1196_v14, %v1195_v61  ;;  %v1390_v50 = vpop.permute.xlu1 %1389 }
 0x493   : > { %v1198_v7 = vrot.slane %v1197_v45, 2 }
 0x495   : > { %v1199_v8 = vadd.f32 %v1198_v7, %v1197_v45  ;;  %v1311_v3 = vpop.permute.xlu1 %1310 }
 0x497   : > { %v1200_v9 = vrot.slane %v1199_v8, 1 }
 0x499   : > { %v1201_v10 = vadd.f32 %v1200_v9, %v1199_v8 }
 0x49b   : > { %v1202_v11 = vadd.f32 1e-09, %v1201_v10 }
 0x49d   : > { %4326 = vrcp.f32 %v1202_v11 }
 0x4a7   : > { %v4327_v47 = vpop.eup %4326 }
 0x4a8   : > { %v1204_v12 = vmul.f32 %v4327_v47, %v4975_v32  ;;  %v1205_v49 = vmul.f32 %v4327_v47, %v4972_v29  ;;  %v1206_v56 = vmul.f32 %v4327_v47, %v4978_v34  ;;  %v1207_v35 = vmul.f32 %v4327_v47, %v4983_v43 }
 0x4a9   : > { %v1208_v17 = vmul.f32 %v4327_v47, %v4986_v54  ;;  %v1209_v18 = vmul.f32 %v4327_v47, %v4991_v59  ;;  %v1210_v38 = vmul.f32 %v4327_v47, %v4995_v6  ;;  %v1211_v32 = vmul.f32 %v4327_v47, %v5000_v28 }
 0x4aa   : > { %v1220_v20 = vpack.c.bf16 %v1205_v49, %v1204_v12  ;;  %v1221_v16 = vpack.c.bf16 %v1207_v35, %v1206_v56  ;;  %v1212_v34 = vmul.f32 %v4327_v47, %v5003_v13  ;;  %v1213_v43 = vmul.f32 %v4327_v47, %v5007_v15  ;;  %v4248_v15 = vld [vmem:[%s5880_s10] sm:$0xff]  }
 0x4ab   : > { %v1222_v19 = vpack.c.bf16 %v1209_v18, %v1208_v17  ;;  %v1223_v29 = vpack.c.bf16 %v1211_v32, %v1210_v38  ;;  %v1214_v54 = vmul.f32 %v4327_v47, %v1175_v21  ;;  %v1215_v23 = vmul.f32 %v4327_v47, %v1176_v39  ;;  %4004 = vmatprep.mubr.msk.bf16.mxu0 %vm635_vm1, %v4248_v15 }
 0x4ac   : > { %3980 = vmatprep.subr.bf16.mxu1 %v1220_v20  ;;  %v1224_v22 = vpack.c.bf16 %v1213_v43, %v1212_v34  ;;  %v1216_v24 = vmul.f32 %v4327_v47, %v1177_v42  ;;  %v1217_v25 = vmul.f32 %v4327_v47, %v1178_v37  ;;  %v1218_v28 = vmul.f32 %v4327_v47, %v1179_v36  ;;  %v1385_v36 = vpop.permute.xlu0 %1384 }
 0x4ad   : > { %3981 = vmatpush3.bf16.msra.mxu1 %v1220_v20  ;;  %v1225_v59 = vpack.c.bf16 %v1215_v23, %v1214_v54  ;;  %v1219_v27 = vmul.f32 %v4327_v47, %v1180_v4  ;;  %v1418_v4 = vpop.permute.xlu1 %1417 }
 0x4ae   : > { %3982 = vmatprep.subr.bf16.mxu1 %v1221_v16  ;;  %v1226_v6 = vpack.c.bf16 %v1217_v25, %v1216_v24 }
 0x4af   : > { %v1227_v13 = vpack.c.bf16 %v1219_v27, %v1218_v28 }
 0x4b0   : > { %v1306_v53 = vpop.permute.xlu0 %1305 }
 0x4b1   : > { %3983 = vmatpush3.bf16.msra.mxu1 %v1221_v16 }
 0x4b2   : > { %3984 = vmatprep.subr.bf16.mxu1 %v1222_v19 }
 0x4b4   : > { %v1413_v46 = vpop.permute.xlu0 %1412 }
 0x4b5   : > { %3985 = vmatpush3.bf16.msra.mxu1 %v1222_v19 }
 0x4b6   : > { %3986 = vmatprep.subr.bf16.mxu1 %v1223_v29 }
 0x4b8   : > { %v1395_v51 = vpop.permute.xlu0 %1394 }
 0x4b9   : > { %3987 = vmatpush3.bf16.msra.mxu1 %v1223_v29 }
 0x4ba   : > { %3988 = vmatprep.subr.bf16.mxu1 %v1224_v22 }
 0x4bc   : > { %v1423_v47 = vpop.permute.xlu0 %1422 }
 0x4bd   : > { %3989 = vmatpush3.bf16.msra.mxu1 %v1224_v22 }
 0x4be   : > { %3990 = vmatprep.subr.bf16.mxu1 %v1225_v59 }
 0x4c1   : > { %3991 = vmatpush3.bf16.msra.mxu1 %v1225_v59 }
 0x4c2   : > { %3992 = vmatprep.subr.bf16.mxu1 %v1226_v6 }
 0x4c5   : > { %3993 = vmatpush3.bf16.msra.mxu1 %v1226_v6 }
 0x4c6   : > { %3994 = vmatprep.subr.bf16.mxu1 %v1227_v13 }
 0x4c9   : > { %3995 = vmatpush3.bf16.msra.mxu1 %v1227_v13 }
 0x4ca   : > { %4008 = vmatprep.subr.bf16.mxu1 %v4591_v26 }
 0x4cc   : > { %3997 = vmatmul.mubr.bf16.vlgmr.msra.gmra.mrb[8].mxu1 %v1229_v5  ;;  %v1400_v5 = vpop.permute.xlu1 %1399 }
 0x4cd   : > { %4012 = vmatprep.mubr.msk.bf16.mxu1 %vm4592_vm3, %v4591_v26 }
 0x4d0   : > { %v1428_v20 = vpop.permute.xlu1 %1427 }
 0x59f   : > { %v3998_v21 = vpop.f32.mrb[8].mxu1 }
 0x5a0   : > { %v1264_v39 = vpop.f32.mrb[9].mxu1  ;;  %v1285_v30 = vsub.f32 %v4810_v2, %v3998_v21 }
 0x5a1   : > { %v3999_v42 = vpop.f32.mrb[10].mxu1  ;;  %v1283_v31 = vsub.f32 %v4801_v63, %v1264_v39 }
 0x5a2   : > { %v1286_v33 = vsub.f32 %v4804_v0, %v3999_v42  ;;  %v1267_v40 = vpop.f32.mrb[11].mxu1 }
 0x5a3   : > { %v1284_v41 = vsub.f32 %v4807_v1, %v1267_v40 }
 0x5a4   : > { %v1288_v37 = vpack.c.bf16 %v1286_v33, %v1285_v30 }
 0x5a5   : > { %v1287_v44 = vpack.c.bf16 %v1284_v41, %v1283_v31 }
 0x5a7   : > { %4000 = vmatprep.subr.bf16.mxu0 %v1287_v44 }
 0x5a8   : > { %4001 = vmatpush3.bf16.msra.mxu0 %v1287_v44  ;;  %v4250_v44 = vld [vmem:[%s5878_s8 + $0x10] sm:$0xff]  }
 0x5a9   : > { %4002 = vmatprep.subr.bf16.mxu0 %v1288_v37 }
 0x5ac   : > { %4003 = vmatpush3.bf16.msra.mxu0 %v1288_v37 }
 0x5af   : > { %4005 = vmatmul.mubr.msk.bf16.vlgmr.msra.gmra.mrb[24].mxu0 %vm635_vm1, %v4249_v52  ;;  %v4251_v52 = vld [vmem:[%s5878_s8 + $0x18] sm:$0xff]  }
 0x5b0   : > { %4020 = vmatprep.mubr.msk.bf16.mxu0 %vm635_vm1, %v4250_v44 }
 0x682   : > { %v4006_v61 = vpop.f32.mrb[24].mxu0 }
 0x683   : > { %v1372_v14 = vadd.f32 %v4006_v61, %v1306_v53  ;;  %v1363_v45 = vpop.f32.mrb[25].mxu0 }
 0x684   : > { %v1364_v7 = vadd.f32 %v1363_v45, %v1296_v48  ;;  %v4007_v8 = vpop.f32.mrb[26].mxu0 }
 0x685   : > { %v1404_v9 = vmul.f32 %v1395_v51, %v1372_v14  ;;  %v1375_v10 = vadd.f32 %v4007_v8, %v1311_v3  ;;  %v1366_v11 = vpop.f32.mrb[27].mxu0 }
 0x686   : > { %v1402_v12 = vmul.f32 %v1385_v36, %v1364_v7  ;;  %v1367_v49 = vadd.f32 %v1366_v11, %v1301_v60 }
 0x687   : > { %v1432_v56 = vadd.f32 %v1423_v47, %v1404_v9  ;;  %v1405_v35 = vmul.f32 %v1400_v5, %v1375_v10 }
 0x688   : > { %v1430_v16 = vadd.f32 %v1413_v46, %v1402_v12  ;;  %v1403_v17 = vmul.f32 %v1390_v50, %v1367_v49 }
 0x689   : > { %v1436_v18 = vmax.f32 %v1432_v56, 0.0  ;;  %v1433_v19 = vadd.f32 %v1428_v20, %v1405_v35 }
 0x68a   : > { %v1434_v38 = vmax.f32 %v1430_v16, 0.0  ;;  %v1431_v32 = vadd.f32 %v1418_v4, %v1403_v17 }
 0x68b   : > { %v1440_v29 = vadd.f32 %v1436_v18, %v4810_v2  ;;  %v1437_v34 = vmax.f32 %v1433_v19, 0.0 }
 0x68c   : > { %v1438_v43 = vadd.f32 %v1434_v38, %v4801_v63  ;;  %v1435_v22 = vmax.f32 %v1431_v32, 0.0 }
 0x68d   : > { %1444 = vst [vmem:[%s5051_s24 + $0x10] sm:$0xff] %v1440_v29  ;;  %v1441_v54 = vadd.f32 %v1437_v34, %v4804_v0  ;;  %v5071_v25 = vadd.f32 %v1440_v29, %v4798_v62 }
 0x68e   : > { %1442 = vst [vmem:[%s5051_s24] sm:$0xff] %v1438_v43  ;;  %v1439_v23 = vadd.f32 %v1435_v22, %v4807_v1  ;;  %v5059_v59 = vadd.f32 %v1438_v43, %v4794_v57  ;;  %v3668_v1 = vld [vmem:[%s5877_s7 + $0x4] sm:$0xf] }
 0x68f   : > { %1445 = vst [vmem:[%s5051_s24 + $0x18] sm:$0xff] %v1441_v54  ;;  %v5066_v2 = vadd.f32 %v1441_v54, %v4796_v58 }
 0x690   : > { %1443 = vst [vmem:[%s5051_s24 + $0x8] sm:$0xff] %v1439_v23  ;;  %v5063_v63 = vadd.f32 %v1439_v23, %v4792_v55 }
 0x691   : > { %v1451_v0 = vpack.c.bf16 %v5066_v2, %v5071_v25 }
 0x692   : > { %v1450_v24 = vpack.c.bf16 %v5063_v63, %v5059_v59 }
 0x694   : > { %4009 = vmatpush3.bf16.msra.mxu1 %v1450_v24  ;;  %4016 = vmatprep.subr.bf16.mxu0 %v1450_v24 }
 0x695   : > { %4017 = vmatpush3.bf16.msra.mxu0 %v1450_v24  ;;  %4010 = vmatprep.subr.bf16.mxu1 %v4591_v26 }
 0x696   : > { %4018 = vmatprep.subr.bf16.mxu0 %v1451_v0 }
 0x698   : > { %4011 = vmatpush3.bf16.msra.mxu1 %v1451_v0 }
 0x699   : > { %4019 = vmatpush3.bf16.msra.mxu0 %v1451_v0 }
 0x69b   : > { %4013 = vmatmul.mubr.msk.bf16.vlgmr.msra.gmra.mrb[12].mxu1 %vm635_vm1, %v3668_v1 }
 0x69c   : > { %4021 = vmatmul.mubr.msk.bf16.vlgmr.msra.gmra.mrb[28].mxu0 %vm635_vm1, %v4251_v52 }
 0x76e   : > { %v1491_v6 = vpop.f32.mrb[12].mxu1 }
 0x76f   : > { %v1592_v28 = vpack.c.bf16 %v1491_v6, %v1491_v6  ;;  %v4014_v27 = vpop.f32.mrb[13].mxu1 }
 0x770   : > { %v1494_v13 = vpop.f32.mrb[14].mxu1 }
 0x771   : > { %1593 = vxpose.xlu0.c.b16.start.end [1/1] (short) %v1592_v28, 128  ;;  %v4015_v15 = vpop.f32.mrb[15].mxu1  ;;  %4195 = vmatprep.subr.msk.bf16.mxu1 %vm936_vm4, %v1592_v28  ;;  %v1634_v21 = vsel %vm936_vm4, %v1592_v28, 0 }
 0x772   : > { %4025 = vmatpush3.bf16.msra.mxu1 %v1634_v21 }
 0x7d7   : > { %v1601_v39 = vpop.trf.xlu0 }
 0x7d8   : > { %4026 = vmatprep.mubr.msk.bf16.mxu1 %vm911_vm5, %v1601_v39 }
 0x7db   : > { %v1602_v42 = vpop.trf.xlu0 }
 0x7dc   : > { %4027 = vmatmul.mubr.msk.bf16.vlgmr.msra.gmra.mrb[16].mxu1 %vm911_vm5, %v1602_v42 }
 0x7df   : > { %v1603_v30 = vpop.trf.xlu0 }
 0x7e0   : > { %4030 = vmatprep.mubr.msk.bf16.mxu1 %vm911_vm5, %v1603_v30 }
 0x7e3   : > { %v1604_v33 = vpop.trf.xlu0 }
 0x7e4   : > { %4031 = vmatmul.mubr.msk.bf16.gmra.mrb[20].mxu1 %vm911_vm5, %v1604_v33 }
 0x7e7   : > { %v1605_v40 = vpop.trf.xlu0 }
 0x7e8   : > { %4034 = vmatprep.mubr.msk.bf16.mxu1 %vm911_vm5, %v1605_v40 }
 0x7eb   : > { %v1606_v31 = vpop.trf.xlu0 }
 0x7ec   : > { %4035 = vmatmul.mubr.msk.bf16.gmra.mrb[24].mxu1 %vm911_vm5, %v1606_v31 }
 0x7ef   : > { %v1607_v41 = vpop.trf.xlu0 }
 0x7f0   : > { %4038 = vmatprep.mubr.msk.bf16.mxu1 %vm911_vm5, %v1607_v41 }
 0x7f3   : > { %v1608_v37 = vpop.trf.xlu0 }
 0x7f4   : > { %4039 = vmatmul.mubr.msk.bf16.gmra.mrb[28].mxu1 %vm911_vm5, %v1608_v37 }
 0x8af   : > { %v4028_v48 = vpop.f32.mrb[16].mxu1 }
 0x8b0   : > { %v1670_v60 = vpop.f32.mrb[17].mxu1 }
 0x8b1   : > { %1733 = vmax.xlane.f32.xlu1 %v1670_v60  ;;  %v4029_v36 = vpop.f32.mrb[18].mxu1 }
 0x8b2   : > { %v1673_v50 = vpop.f32.mrb[19].mxu1 }
 0x8b3   : > { %1735 = vmax.xlane.f32.xlu0 %v1673_v50 }
 0x8b5   : > { %1737 = vmax.xlane.f32.xlu1 %v4028_v48 }
 0x8b7   : > { %v4032_v53 = vpop.f32.mrb[20].mxu1 }
 0x8b8   : > { %v1686_v3 = vpop.f32.mrb[21].mxu1 }
 0x8b9   : > { %1739 = vmax.xlane.f32.xlu1 %v4029_v36  ;;  %v4033_v46 = vpop.f32.mrb[22].mxu1 }
 0x8ba   : > { %v1689_v4 = vpop.f32.mrb[23].mxu1 }
 0x8bd   : > { %1745 = vmax.xlane.f32.xlu1 %v4032_v53 }
 0x8bf   : > { %v5098_v51 = vpop.f32.mrb[24].mxu1 }
 0x8c0   : > { %v1702_v5 = vpop.f32.mrb[25].mxu1 }
 0x8c1   : > { %1741 = vmax.xlane.f32.xlu1 %v1686_v3  ;;  %v5100_v61 = vpop.f32.mrb[26].mxu1 }
 0x8c2   : > { %1755 = vmax.xlane.f32.xlu0 %v5100_v61  ;;  %v5103_v14 = vpop.f32.mrb[27].mxu1 }
 0x8c5   : > { %1747 = vmax.xlane.f32.xlu1 %v4033_v46 }
 0x8c7   : > { %v5105_v45 = vpop.f32.mrb[28].mxu1 }
 0x8c8   : > { %v5107_v7 = vpop.f32.mrb[29].mxu1 }
 0x8c9   : > { %1743 = vmax.xlane.f32.xlu1 %v1689_v4  ;;  %v5109_v8 = vpop.f32.mrb[30].mxu1 }
 0x8ca   : > { %v5111_v9 = vpop.f32.mrb[31].mxu1 }
 0x8cb   : > { %1759 = vmax.xlane.f32.xlu0 %v5111_v9 }
 0x8cd   : > { %1749 = vmax.xlane.f32.xlu1 %v1702_v5 }
 0x8cf   : > { %1763 = vmax.xlane.f32.xlu0 %v5109_v8 }
 0x8d1   : > { %1751 = vmax.xlane.f32.xlu1 %v5103_v14 }
 0x8d5   : > { %1753 = vmax.xlane.f32.xlu1 %v5098_v51 }
 0x8d9   : > { %1757 = vmax.xlane.f32.xlu1 %v5107_v7 }
 0x8dd   : > { %1761 = vmax.xlane.f32.xlu1 %v5105_v45 }
 0x93e   : > { %v1734_v10 = vpop.xlane.xlu1 %1733 }
 0x93f   : > { %v1765_v11 = vsub.f32 %v1670_v60, %v1734_v10 }
 0x940   : > { %v1736_v47 = vpop.xlane.xlu0 %1735 }
 0x941   : > { %v1781_v12 = vmul.f32 1.442695, %v1765_v11  ;;  %v1766_v49 = vsub.f32 %v1673_v50, %v1736_v47 }
 0x942   : > { %v1738_v56 = vpop.xlane.xlu1 %1737 }
 0x943   : > { %4328 = vpow2.f32 %v1781_v12  ;;  %v1783_v35 = vmul.f32 1.442695, %v1766_v49  ;;  %v1767_v20 = vsub.f32 %v4028_v48, %v1738_v56 }
 0x945   : > { %4330 = vpow2.f32 %v1783_v35  ;;  %v1785_v16 = vmul.f32 1.442695, %v1767_v20 }
 0x946   : > { %v1740_v17 = vpop.xlane.xlu1 %1739 }
 0x947   : > { %4332 = vpow2.f32 %v1785_v16  ;;  %v1768_v18 = vsub.f32 %v4029_v36, %v1740_v17  ;;  %v3674_v17 = vld [vmem:[%s5879_s9 + $0x20] sm:$0xff] }
 0x949   : > { %v1787_v19 = vmul.f32 1.442695, %v1768_v18  ;;  %v3676_v18 = vld [vmem:[%s5879_s9 + $0x30] sm:$0xff] }
 0x94a   : > { %v1746_v38 = vpop.xlane.xlu1 %1745 }
 0x94b   : > { %4334 = vpow2.f32 %v1787_v19  ;;  %v1771_v43 = vsub.f32 %v4032_v53, %v1746_v38  ;;  %v3675_v19 = vld [vmem:[%s5879_s9 + $0x28] sm:$0xff]  ;;  %v5183_v38 = vpop.f32.mrb[28].mxu0 }
 0x94d   : > { %v5119_v32 = vpop.eup %4328  ;;  %v1793_v0 = vmul.f32 1.442695, %v1771_v43  ;;  %v5188_v43 = vpop.f32.mrb[29].mxu0 }
 0x94e   : > { %v1742_v29 = vpop.xlane.xlu1 %1741  ;;  %1813 = vadd.xlane.f32.xlu1 %v5119_v32 }
 0x94f   : > { %v5122_v34 = vpop.eup %4330  ;;  %v1769_v22 = vsub.f32 %v1686_v3, %v1742_v29  ;;  %v1756_v13 = vpop.xlane.xlu0 %1755  ;;  %v3677_v29 = vld [vmem:[%s5879_s9 + $0x38] sm:$0xff] }
 0x950   : > { %1815 = vadd.xlane.f32.xlu0 %v5122_v34  ;;  %v1776_v31 = vsub.f32 %v5100_v61, %v1756_v13  ;;  %v3697_v13 = vld [vmem:[%s5881_s11 + $0x38] sm:$0xff] }
 0x951   : > { %v5125_v54 = vpop.eup %4332  ;;  %v1789_v23 = vmul.f32 1.442695, %v1769_v22  ;;  %v3694_v22 = vld [vmem:[%s5881_s11 + $0x20] sm:$0xff] }
 0x952   : > { %v1748_v24 = vpop.xlane.xlu1 %1747  ;;  %1817 = vadd.xlane.f32.xlu1 %v5125_v54  ;;  %v1803_v48 = vmul.f32 1.442695, %v1776_v31 }
 0x953   : > { %4336 = vpow2.f32 %v1789_v23  ;;  %v1772_v6 = vsub.f32 %v4033_v46, %v1748_v24  ;;  %v5193_v23 = vpop.f32.mrb[30].mxu0  ;;  %v3695_v24 = vld [vmem:[%s5881_s11 + $0x28] sm:$0xff] }
 0x954   : > { %4338 = vpow2.f32 %v1793_v0  ;;  %v5198_v0 = vpop.f32.mrb[31].mxu0 }
 0x955   : > { %v5128_v1 = vpop.eup %4334  ;;  %v1795_v21 = vmul.f32 1.442695, %v1772_v6  ;;  %v3702_v6 = vld [vmem:[%s5882_s12 + $0x20] sm:$0xff] }
 0x956   : > { %v1744_v28 = vpop.xlane.xlu1 %1743  ;;  %1819 = vadd.xlane.f32.xlu0 %v5128_v1 }
 0x957   : > { %v1770_v27 = vsub.f32 %v1689_v4, %v1744_v28  ;;  %v3703_v28 = vld [vmem:[%s5882_s12 + $0x28] sm:$0xff] }
 0x958   : > { %v1760_v33 = vpop.xlane.xlu0 %1759 }
 0x959   : > { %v1791_v15 = vmul.f32 1.442695, %v1770_v27  ;;  %v1778_v60 = vsub.f32 %v5111_v9, %v1760_v33  ;;  %v3696_v27 = vld [vmem:[%s5881_s11 + $0x30] sm:$0xff] }
 0x95a   : > { %v1750_v39 = vpop.xlane.xlu1 %1749  ;;  %v3708_v33 = vld [vmem:[%s5883_s13 + $0x30] sm:$0xff] }
 0x95b   : > { %4340 = vpow2.f32 %v1791_v15  ;;  %v1773_v42 = vsub.f32 %v1702_v5, %v1750_v39  ;;  %v1807_v4 = vmul.f32 1.442695, %v1778_v60  ;;  %v3706_v15 = vld [vmem:[%s5883_s13 + $0x20] sm:$0xff]  ;;  %v3704_v39 = vld [vmem:[%s5882_s12 + $0x30] sm:$0xff] }
 0x95c   : > { %4342 = vpow2.f32 %v1795_v21  ;;  %v1764_v50 = vpop.xlane.xlu0 %1763  ;;  %v3707_v21 = vld [vmem:[%s5883_s13 + $0x28] sm:$0xff] }
 0x95d   : > { %v5131_v30 = vpop.eup %4336  ;;  %v1797_v40 = vmul.f32 1.442695, %v1773_v42  ;;  %v1780_v5 = vsub.f32 %v5109_v8, %v1764_v50  ;;  %v3705_v42 = vld [vmem:[%s5882_s12 + $0x38] sm:$0xff] }
 0x95e   : > { %v1752_v41 = vpop.xlane.xlu1 %1751  ;;  %1821 = vadd.xlane.f32.xlu1 %v5131_v30  ;;  %v5136_v44 = vpop.eup %4338 }
 0x95f   : > { %4344 = vpow2.f32 %v1797_v40  ;;  %v1774_v37 = vsub.f32 %v5103_v14, %v1752_v41  ;;  %v3709_v40 = vld [vmem:[%s5883_s13 + $0x38] sm:$0xff] }
 0x961   : > { %v1799_v52 = vmul.f32 1.442695, %v1774_v37 }
 0x962   : > { %v1754_v36 = vpop.xlane.xlu1 %1753  ;;  %1825 = vadd.xlane.f32.xlu1 %v5136_v44 }
 0x963   : > { %4346 = vpow2.f32 %v1799_v52  ;;  %v1775_v53 = vsub.f32 %v5098_v51, %v1754_v36  ;;  %v1811_v51 = vmul.f32 1.442695, %v1780_v5 }
 0x964   : > { %4348 = vpow2.f32 %v1803_v48 }
 0x965   : > { %v5141_v3 = vpop.eup %4340  ;;  %v1801_v46 = vmul.f32 1.442695, %v1775_v53 }
 0x966   : > { %v1758_v61 = vpop.xlane.xlu1 %1757  ;;  %1823 = vadd.xlane.f32.xlu0 %v5141_v3  ;;  %v5146_v9 = vpop.eup %4342 }
 0x967   : > { %4350 = vpow2.f32 %v1801_v46  ;;  %v1777_v14 = vsub.f32 %v5107_v7, %v1758_v61 }
 0x968   : > { %4352 = vpow2.f32 %v1807_v4 }
 0x969   : > { %v5148_v10 = vpop.eup %4344  ;;  %v1805_v11 = vmul.f32 1.442695, %v1777_v14 }
 0x96a   : > { %1829 = vadd.xlane.f32.xlu1 %v5148_v10  ;;  %v1762_v47 = vpop.xlane.xlu1 %1761  ;;  %1827 = vadd.xlane.f32.xlu0 %v5146_v9 }
 0x96b   : > { %4354 = vpow2.f32 %v1805_v11  ;;  %v1779_v8 = vsub.f32 %v5105_v45, %v1762_v47 }
 0x96c   : > { %4356 = vpow2.f32 %v1811_v51 }
 0x96d   : > { %v5153_v12 = vpop.eup %4346  ;;  %v1809_v49 = vmul.f32 1.442695, %v1779_v8 }
 0x96e   : > { %1831 = vadd.xlane.f32.xlu0 %v5153_v12  ;;  %v5156_v7 = vpop.eup %4348 }
 0x96f   : > { %4358 = vpow2.f32 %v1809_v49 }
 0x971   : > { %v5158_v56 = vpop.eup %4350 }
 0x972   : > { %1833 = vadd.xlane.f32.xlu1 %v5158_v56  ;;  %1835 = vadd.xlane.f32.xlu0 %v5156_v7  ;;  %v5162_v35 = vpop.eup %4352 }
 0x975   : > { %v5164_v20 = vpop.eup %4354 }
 0x976   : > { %1837 = vadd.xlane.f32.xlu1 %v5164_v20  ;;  %1839 = vadd.xlane.f32.xlu0 %v5162_v35  ;;  %v5168_v45 = vpop.eup %4356 }
 0x979   : > { %v5170_v16 = vpop.eup %4358 }
 0x97a   : > { %1841 = vadd.xlane.f32.xlu1 %v5170_v16  ;;  %1843 = vadd.xlane.f32.xlu0 %v5168_v45 }
 0x98b   : > { %1509 = vperm.xlu1 %4243, %v3674_v17  }
 0x98f   : > { %1519 = vperm.xlu1 %4243, %v3676_v18  }
 0x990   : > { %1514 = vperm.xlu0 %4242, %v3675_v19  }
 0x993   : > { %1524 = vperm.xlu1 %4243, %v3677_v29  }
 0x994   : > { %1993 = vperm.xlu0 %4242, %v3694_v22  }
 0x997   : > { %1998 = vperm.xlu1 %4243, %v3695_v24  }
 0x998   : > { %2083 = vperm.xlu0 %4242, %v3702_v6  }
 0x99b   : > { %2088 = vperm.xlu1 %4243, %v3703_v28  }
 0x99c   : > { %2003 = vperm.xlu0 %4242, %v3696_v27  }
 0x99f   : > { %2008 = vperm.xlu1 %4243, %v3697_v13  }
 0x9a0   : > { %2112 = vperm.xlu0 %4242, %v3706_v15  }
 0x9a3   : > { %2117 = vperm.xlu1 %4243, %v3707_v21  }
 0x9a4   : > { %2093 = vperm.xlu0 %4242, %v3704_v39  }
 0x9a7   : > { %2098 = vperm.xlu1 %4243, %v3705_v42  }
 0x9a8   : > { %2122 = vperm.xlu0 %4242, %v3708_v33  }
 0x9ab   : > { %2127 = vperm.xlu1 %4243, %v3709_v40  }
 0x9db   : > { %v1814_v31 = vpop.xlane.xlu1 %1813 }
 0x9dd   : > { %v1816_v41 = vpop.xlane.xlu0 %1815 }
 0x9de   : > { %4360 = vrcp.f32 %v1816_v41 }
 0x9df   : > { %v1818_v37 = vpop.xlane.xlu1 %1817  ;;  %4362 = vrcp.f32 %v1814_v31 }
 0x9e0   : > { %4364 = vrcp.f32 %v1818_v37 }
 0x9e3   : > { %v1820_v52 = vpop.xlane.xlu0 %1819 }
 0x9e4   : > { %4366 = vrcp.f32 %v1820_v52 }
 0x9e8   : > { %v4361_v60 = vpop.eup %4360 }
 0x9e9   : > { %v4363_v50 = vpop.eup %4362  ;;  %v5231_v46 = vmul.f32 %v4361_v60, %v5122_v34 }
 0x9ea   : > { %v4365_v4 = vpop.eup %4364  ;;  %v5234_v5 = vmul.f32 %v4363_v50, %v5119_v32 }
 0x9eb   : > { %v1822_v48 = vpop.xlane.xlu1 %1821  ;;  %v5237_v14 = vmul.f32 %v4365_v4, %v5125_v54 }
 0x9ec   : > { %4368 = vrcp.f32 %v1822_v48  ;;  %v1877_v47 = vadd.f32 %v5231_v46, %v5234_v5 }
 0x9ee   : > { %v4367_v61 = vpop.eup %4366  ;;  %v1878_v17 = vadd.f32 %v1877_v47, %v5237_v14 }
 0x9ef   : > { %v1826_v36 = vpop.xlane.xlu1 %1825  ;;  %v5242_v49 = vmul.f32 %v4367_v61, %v5128_v1 }
 0x9f0   : > { %4370 = vrcp.f32 %v1826_v36 }
 0x9f1   : > { %v1879_v18 = vadd.f32 %v1878_v17, %v5242_v49 }
 0x9f3   : > { %v1824_v53 = vpop.xlane.xlu0 %1823 }
 0x9f4   : > { %4372 = vrcp.f32 %v1824_v53 }
 0x9f6   : > { %v4369_v8 = vpop.eup %4368 }
 0x9f7   : > { %v1830_v11 = vpop.xlane.xlu1 %1829  ;;  %v1828_v51 = vpop.xlane.xlu0 %1827  ;;  %v5245_v34 = vmul.f32 %v4369_v8, %v5131_v30 }
 0x9f8   : > { %4374 = vrcp.f32 %v1830_v11 }
 0x9f9   : > { %4376 = vrcp.f32 %v1828_v51  ;;  %v1880_v1 = vadd.f32 %v1879_v18, %v5245_v34 }
 0x9fa   : > { %v4371_v54 = vpop.eup %4370 }
 0x9fb   : > { %v1832_v32 = vpop.xlane.xlu0 %1831  ;;  %v5254_v6 = vmul.f32 %v4371_v54, %v5136_v44 }
 0x9fc   : > { %4378 = vrcp.f32 %v1832_v32 }
 0x9fe   : > { %v4373_v19 = vpop.eup %4372 }
 0x9ff   : > { %v5250_v29 = vmul.f32 %v4373_v19, %v5141_v3  ;;  %v1834_v22 = vpop.xlane.xlu1 %1833  ;;  %v1836_v24 = vpop.xlane.xlu0 %1835 }
 0xa00   : > { %4380 = vrcp.f32 %v1834_v22 }
 0xa01   : > { %4382 = vrcp.f32 %v1836_v24  ;;  %v1881_v30 = vadd.f32 %v1880_v1, %v5250_v29 }
 0xa02   : > { %v4375_v28 = vpop.eup %4374 }
 0xa03   : > { %v4377_v27 = vpop.eup %4376  ;;  %v1838_v13 = vpop.xlane.xlu1 %1837  ;;  %v1882_v21 = vadd.f32 %v1881_v30, %v5254_v6  ;;  %v5262_v42 = vmul.f32 %v4375_v28, %v5148_v10 }
 0xa04   : > { %v1840_v15 = vpop.xlane.xlu0 %1839  ;;  %v5259_v3 = vmul.f32 %v4377_v27, %v5146_v9  ;;  %4384 = vrcp.f32 %v1838_v13 }
 0xa05   : > { %4386 = vrcp.f32 %v1840_v15 }
 0xa06   : > { %v4379_v39 = vpop.eup %4378  ;;  %v1883_v44 = vadd.f32 %v1882_v21, %v5259_v3 }
 0xa07   : > { %v5266_v33 = vmul.f32 %v4379_v39, %v5153_v12  ;;  %v1842_v40 = vpop.xlane.xlu1 %1841 }
 0xa08   : > { %v1844_v31 = vpop.xlane.xlu0 %1843  ;;  %4388 = vrcp.f32 %v1842_v40  ;;  %v1884_v41 = vadd.f32 %v1883_v44, %v5262_v42 }
 0xa09   : > { %4390 = vrcp.f32 %v1844_v31 }
 0xa0a   : > { %v4381_v37 = vpop.eup %4380  ;;  %v1885_v60 = vadd.f32 %v1884_v41, %v5266_v33 }
 0xa0b   : > { %v4383_v9 = vpop.eup %4382  ;;  %v1871_v52 = vmul.f32 %v4381_v37, %v5158_v56  ;;  %v1510_v48 = vpop.permute.xlu1 %1509 }
 0xa0c   : > { %v1872_v10 = vmul.f32 %v4383_v9, %v5156_v7  ;;  %v1578_v51 = vadd.f32 %v5188_v43, %v1510_v48 }
 0xa0d   : > { %v1886_v36 = vadd.f32 %v1885_v60, %v1871_v52 }
 0xa0e   : > { %v4385_v50 = vpop.eup %4384 }
 0xa0f   : > { %v4387_v53 = vpop.eup %4386  ;;  %v1873_v12 = vmul.f32 %v4385_v50, %v5164_v20  ;;  %v1520_v4 = vpop.permute.xlu1 %1519  ;;  %v1887_v11 = vadd.f32 %v1886_v36, %v1872_v10 }
 0xa10   : > { %v1515_v61 = vpop.permute.xlu0 %1514  ;;  %v1874_v8 = vmul.f32 %v4387_v53, %v5162_v35  ;;  %v1586_v22 = vadd.f32 %v5183_v38, %v1520_v4 }
 0xa11   : > { %v1581_v47 = vadd.f32 %v5198_v0, %v1515_v61  ;;  %v1888_v56 = vadd.f32 %v1887_v11, %v1873_v12 }
 0xa12   : > { %v4389_v32 = vpop.eup %4388 }
 0xa13   : > { %v1924_v17 = vpack.c.bf16 %v1581_v47, %v1578_v51  ;;  %v4391_v54 = vpop.eup %4390  ;;  %v1875_v7 = vmul.f32 %v4389_v32, %v5170_v16  ;;  %v1525_v18 = vpop.permute.xlu1 %1524  ;;  %v1889_v19 = vadd.f32 %v1888_v56, %v1874_v8  ;;  %v4253_v32 = vld [vmem:[%s5880_s10 + $0x18] sm:$0xff]  }
 0xa14   : > { %v1589_v20 = vadd.f32 %v5193_v23, %v1525_v18  ;;  %v1876_v24 = vmul.f32 %v4391_v54, %v5168_v45 }
 0xa15   : > { %4058 = vmatprep.mubr.bf16.mxu0 %v1924_v17  ;;  %v1890_v43 = vadd.f32 %v1889_v19, %v1875_v7  ;;  %v1994_v17 = vpop.permute.xlu0 %1993 }
 0xa16   : > { %v1925_v1 = vpack.c.bf16 %v1589_v20, %v1586_v22 }
 0xa17   : > { %v1891_v0 = vadd.f32 %v1890_v43, %v1876_v24  ;;  %v1999_v54 = vpop.permute.xlu1 %1998 }
 0xa19   : > { %v1892_v30 = vrot.slane %v1891_v0, 4 }
 0xa1b   : > { %v1893_v35 = vadd.f32 %v1892_v30, %v1891_v0  ;;  %v2089_v18 = vpop.permute.xlu1 %2088 }
 0xa1d   : > { %v1894_v28 = vrot.slane %v1893_v35, 2 }
 0xa1f   : > { %v1895_v27 = vadd.f32 %v1894_v28, %v1893_v35  ;;  %v2009_v22 = vpop.permute.xlu1 %2008 }
 0xa21   : > { %v1896_v13 = vrot.slane %v1895_v27, 1 }
 0xa23   : > { %v1897_v15 = vadd.f32 %v1896_v13, %v1895_v27 }
 0xa25   : > { %v1898_v21 = vadd.f32 1e-09, %v1897_v15 }
 0xa27   : > { %4392 = vrcp.f32 %v1898_v21 }
 0xa31   : > { %v4393_v16 = vpop.eup %4392 }
 0xa32   : > { %v1900_v39 = vmul.f32 %v4393_v16, %v5234_v5  ;;  %v1901_v38 = vmul.f32 %v4393_v16, %v5231_v46  ;;  %v1902_v23 = vmul.f32 %v4393_v16, %v5237_v14  ;;  %v1903_v45 = vmul.f32 %v4393_v16, %v5242_v49 }
 0xa33   : > { %v1904_v31 = vmul.f32 %v4393_v16, %v5245_v34  ;;  %v1905_v41 = vmul.f32 %v4393_v16, %v5250_v29  ;;  %v1906_v9 = vmul.f32 %v4393_v16, %v5254_v6  ;;  %v1907_v5 = vmul.f32 %v4393_v16, %v5259_v3 }
 0xa34   : > { %v1916_v44 = vpack.c.bf16 %v1901_v38, %v1900_v39  ;;  %v1917_v40 = vpack.c.bf16 %v1903_v45, %v1902_v23  ;;  %v1908_v14 = vmul.f32 %v4393_v16, %v5262_v42  ;;  %v1909_v49 = vmul.f32 %v4393_v16, %v5266_v33  ;;  %v4252_v33 = vld [vmem:[%s5880_s10 + $0x10] sm:$0xff]  }
 0xa35   : > { %v1918_v37 = vpack.c.bf16 %v1905_v41, %v1904_v31  ;;  %v1919_v46 = vpack.c.bf16 %v1907_v5, %v1906_v9  ;;  %v1910_v34 = vmul.f32 %v4393_v16, %v1871_v52  ;;  %v1911_v60 = vmul.f32 %v4393_v16, %v1872_v10  ;;  %4066 = vmatprep.mubr.msk.bf16.mxu1 %vm635_vm1, %v4252_v33 }
 0xa36   : > { %4042 = vmatprep.subr.bf16.mxu0 %v1916_v44  ;;  %v1920_v48 = vpack.c.bf16 %v1909_v49, %v1908_v14  ;;  %v1912_v36 = vmul.f32 %v4393_v16, %v1873_v12  ;;  %v1913_v50 = vmul.f32 %v4393_v16, %v1874_v8  ;;  %v1914_v3 = vmul.f32 %v4393_v16, %v1875_v7  ;;  %v2084_v7 = vpop.permute.xlu0 %2083 }
 0xa37   : > { %4043 = vmatpush3.bf16.msra.mxu0 %v1916_v44  ;;  %v1921_v29 = vpack.c.bf16 %v1911_v60, %v1910_v34  ;;  %v1915_v53 = vmul.f32 %v4393_v16, %v1876_v24  ;;  %v2118_v24 = vpop.permute.xlu1 %2117 }
 0xa38   : > { %4044 = vmatprep.subr.bf16.mxu0 %v1917_v40  ;;  %v1922_v6 = vpack.c.bf16 %v1913_v50, %v1912_v36 }
 0xa39   : > { %v1923_v42 = vpack.c.bf16 %v1915_v53, %v1914_v3 }
 0xa3a   : > { %v2004_v19 = vpop.permute.xlu0 %2003 }
 0xa3b   : > { %4045 = vmatpush3.bf16.msra.mxu0 %v1917_v40 }
 0xa3c   : > { %4046 = vmatprep.subr.bf16.mxu0 %v1918_v37 }
 0xa3e   : > { %v2113_v20 = vpop.permute.xlu0 %2112 }
 0xa3f   : > { %4047 = vmatpush3.bf16.msra.mxu0 %v1918_v37 }
 0xa40   : > { %4048 = vmatprep.subr.bf16.mxu0 %v1919_v46 }
 0xa42   : > { %v2094_v43 = vpop.permute.xlu0 %2093 }
 0xa43   : > { %4049 = vmatpush3.bf16.msra.mxu0 %v1919_v46 }
 0xa44   : > { %4050 = vmatprep.subr.bf16.mxu0 %v1920_v48 }
 0xa46   : > { %v2123_v16 = vpop.permute.xlu0 %2122 }
 0xa47   : > { %4051 = vmatpush3.bf16.msra.mxu0 %v1920_v48 }
 0xa48   : > { %4052 = vmatprep.subr.bf16.mxu0 %v1921_v29 }
 0xa4b   : > { %4053 = vmatpush3.bf16.msra.mxu0 %v1921_v29 }
 0xa4c   : > { %4054 = vmatprep.subr.bf16.mxu0 %v1922_v6 }
 0xa4f   : > { %4055 = vmatpush3.bf16.msra.mxu0 %v1922_v6 }
 0xa50   : > { %4056 = vmatprep.subr.bf16.mxu0 %v1923_v42 }
 0xa53   : > { %4057 = vmatpush3.bf16.msra.mxu0 %v1923_v42 }
 0xa54   : > { %4070 = vmatprep.subr.bf16.mxu0 %v4591_v26 }
 0xa56   : > { %4059 = vmatmul.mubr.bf16.vlgmr.msra.gmra.mrb[32].mxu0 %v1925_v1  ;;  %v2099_v1 = vpop.permute.xlu1 %2098 }
 0xa57   : > { %4074 = vmatprep.mubr.msk.bf16.mxu0 %vm4592_vm3, %v4591_v26 }
 0xa5a   : > { %v2128_v44 = vpop.permute.xlu1 %2127 }
 0xb29   : > { %v4060_v52 = vpop.f32.mrb[32].mxu0 }
 0xb2a   : > { %v1960_v10 = vpop.f32.mrb[33].mxu0  ;;  %v1982_v4 = vsub.f32 %v5071_v25, %v4060_v52 }
 0xb2b   : > { %v4061_v12 = vpop.f32.mrb[34].mxu0  ;;  %v1980_v51 = vsub.f32 %v5059_v59, %v1960_v10 }
 0xb2c   : > { %v1983_v61 = vsub.f32 %v5066_v2, %v4061_v12  ;;  %v1963_v11 = vpop.f32.mrb[35].mxu0 }
 0xb2d   : > { %v1981_v47 = vsub.f32 %v5063_v63, %v1963_v11 }
 0xb2e   : > { %v1985_v8 = vpack.c.bf16 %v1983_v61, %v1982_v4 }
 0xb2f   : > { %v1984_v56 = vpack.c.bf16 %v1981_v47, %v1980_v51 }
 0xb31   : > { %4062 = vmatprep.subr.bf16.mxu1 %v1984_v56 }
 0xb32   : > { %4063 = vmatpush3.bf16.msra.mxu1 %v1984_v56  ;;  %v4254_v56 = vld [vmem:[%s5878_s8 + $0x20] sm:$0xff]  }
 0xb33   : > { %4064 = vmatprep.subr.bf16.mxu1 %v1985_v8 }
 0xb36   : > { %4065 = vmatpush3.bf16.msra.mxu1 %v1985_v8 }
 0xb39   : > { %4067 = vmatmul.mubr.msk.bf16.vlgmr.msra.gmra.mrb[32].mxu1 %vm635_vm1, %v4253_v32  ;;  %v4255_v32 = vld [vmem:[%s5878_s8 + $0x28] sm:$0xff]  }
 0xb3a   : > { %4082 = vmatprep.mubr.msk.bf16.mxu1 %vm635_vm1, %v4254_v56 }
 0xc0c   : > { %v4068_v0 = vpop.f32.mrb[32].mxu1 }
 0xc0d   : > { %v2070_v30 = vadd.f32 %v4068_v0, %v2004_v19  ;;  %v2061_v35 = vpop.f32.mrb[33].mxu1 }
 0xc0e   : > { %v2062_v28 = vadd.f32 %v2061_v35, %v1994_v17  ;;  %v4069_v27 = vpop.f32.mrb[34].mxu1 }
 0xc0f   : > { %v2103_v13 = vmul.f32 %v2094_v43, %v2070_v30  ;;  %v2073_v15 = vadd.f32 %v4069_v27, %v2009_v22  ;;  %v2064_v21 = vpop.f32.mrb[35].mxu1 }
 0xc10   : > { %v2101_v39 = vmul.f32 %v2084_v7, %v2062_v28  ;;  %v2065_v38 = vadd.f32 %v2064_v21, %v1999_v54 }
 0xc11   : > { %v2132_v23 = vadd.f32 %v2123_v16, %v2103_v13  ;;  %v2104_v45 = vmul.f32 %v2099_v1, %v2073_v15 }
 0xc12   : > { %v2130_v40 = vadd.f32 %v2113_v20, %v2101_v39  ;;  %v2102_v31 = vmul.f32 %v2089_v18, %v2065_v38 }
 0xc13   : > { %v2136_v41 = vmax.f32 %v2132_v23, 0.0  ;;  %v2133_v37 = vadd.f32 %v2128_v44, %v2104_v45 }
 0xc14   : > { %v2134_v9 = vmax.f32 %v2130_v40, 0.0  ;;  %v2131_v5 = vadd.f32 %v2118_v24, %v2102_v31 }
 0xc15   : > { %v2140_v46 = vadd.f32 %v2136_v41, %v5071_v25  ;;  %v2137_v14 = vmax.f32 %v2133_v37, 0.0 }
 0xc16   : > { %v2138_v49 = vadd.f32 %v2134_v9, %v5059_v59  ;;  %v2135_v48 = vmax.f32 %v2131_v5, 0.0 }
 0xc17   : > { %2144 = vst [vmem:[%s5051_s24 + $0x30] sm:$0xff] %v2140_v46  ;;  %v2141_v34 = vadd.f32 %v2137_v14, %v5066_v2  ;;  %v5325_v50 = vadd.f32 %v2140_v46, %v4798_v62  ;;  %v3710_v2 = vld [vmem:[%s5877_s7 + $0x8] sm:$0xf] }
 0xc18   : > { %2142 = vst [vmem:[%s5051_s24 + $0x20] sm:$0xff] %v2138_v49  ;;  %v2139_v60 = vadd.f32 %v2135_v48, %v5063_v63  ;;  %v5313_v29 = vadd.f32 %v2138_v49, %v4794_v57 }
 0xc19   : > { %2145 = vst [vmem:[%s5051_s24 + $0x38] sm:$0xff] %v2141_v34  ;;  %v5320_v25 = vadd.f32 %v2141_v34, %v4796_v58 }
 0xc1a   : > { %2143 = vst [vmem:[%s5051_s24 + $0x28] sm:$0xff] %v2139_v60  ;;  %v5317_v36 = vadd.f32 %v2139_v60, %v4792_v55 }
 0xc1b   : > { %v2151_v63 = vpack.c.bf16 %v5320_v25, %v5325_v50 }
 0xc1c   : > { %v2150_v59 = vpack.c.bf16 %v5317_v36, %v5313_v29 }
 0xc1e   : > { %4071 = vmatpush3.bf16.msra.mxu0 %v2150_v59  ;;  %4078 = vmatprep.subr.bf16.mxu1 %v2150_v59 }
 0xc1f   : > { %4079 = vmatpush3.bf16.msra.mxu1 %v2150_v59  ;;  %4072 = vmatprep.subr.bf16.mxu0 %v4591_v26 }
 0xc20   : > { %4080 = vmatprep.subr.bf16.mxu1 %v2151_v63 }
 0xc22   : > { %4073 = vmatpush3.bf16.msra.mxu0 %v2151_v63 }
 0xc23   : > { %4081 = vmatpush3.bf16.msra.mxu1 %v2151_v63 }
 0xc25   : > { %4075 = vmatmul.mubr.msk.bf16.vlgmr.msra.gmra.mrb[36].mxu0 %vm635_vm1, %v3710_v2 }
 0xc26   : > { %4083 = vmatmul.mubr.msk.bf16.vlgmr.msra.gmra.mrb[36].mxu1 %vm635_vm1, %v4255_v32 }
 0xcf8   : > { %v2191_v6 = vpop.f32.mrb[36].mxu0 }
 0xcf9   : > { %v2292_v3 = vpack.c.bf16 %v2191_v6, %v2191_v6  ;;  %v4076_v53 = vpop.f32.mrb[37].mxu0 }
 0xcfa   : > { %v2194_v42 = vpop.f32.mrb[38].mxu0 }
 0xcfb   : > { %2293 = vxpose.xlu0.c.b16.start.end [1/1] (short) %v2292_v3, 128  ;;  %v4077_v33 = vpop.f32.mrb[39].mxu0  ;;  %4196 = vmatprep.subr.msk.bf16.mxu0 %vm936_vm4, %v2292_v3  ;;  %v2334_v52 = vsel %vm936_vm4, %v2292_v3, 0 }
 0xcfc   : > { %4087 = vmatpush3.bf16.msra.mxu0 %v2334_v52 }
 0xd61   : > { %v2301_v10 = vpop.trf.xlu0 }
 0xd62   : > { %4088 = vmatprep.mubr.msk.bf16.mxu0 %vm911_vm5, %v2301_v10 }
 0xd65   : > { %v2302_v12 = vpop.trf.xlu0 }
 0xd66   : > { %4089 = vmatmul.mubr.msk.bf16.vlgmr.msra.gmra.mrb[40].mxu0 %vm911_vm5, %v2302_v12 }
 0xd69   : > { %v2303_v4 = vpop.trf.xlu0 }
 0xd6a   : > { %4092 = vmatprep.mubr.msk.bf16.mxu0 %vm911_vm5, %v2303_v4 }
 0xd6d   : > { %v2304_v61 = vpop.trf.xlu0 }
 0xd6e   : > { %4093 = vmatmul.mubr.msk.bf16.gmra.mrb[44].mxu0 %vm911_vm5, %v2304_v61 }
 0xd71   : > { %v2305_v11 = vpop.trf.xlu0 }
 0xd72   : > { %4096 = vmatprep.mubr.msk.bf16.mxu0 %vm911_vm5, %v2305_v11 }
 0xd75   : > { %v2306_v51 = vpop.trf.xlu0 }
 0xd76   : > { %4097 = vmatmul.mubr.msk.bf16.gmra.mrb[48].mxu0 %vm911_vm5, %v2306_v51 }
 0xd79   : > { %v2307_v47 = vpop.trf.xlu0 }
 0xd7a   : > { %4100 = vmatprep.mubr.msk.bf16.mxu0 %vm911_vm5, %v2307_v47 }
 0xd7d   : > { %v2308_v8 = vpop.trf.xlu0 }
 0xd7e   : > { %4101 = vmatmul.mubr.msk.bf16.gmra.mrb[52].mxu0 %vm911_vm5, %v2308_v8 }
 0xe39   : > { %v4090_v17 = vpop.f32.mrb[40].mxu0 }
 0xe3a   : > { %v2370_v54 = vpop.f32.mrb[41].mxu0 }
 0xe3b   : > { %2433 = vmax.xlane.f32.xlu1 %v2370_v54  ;;  %v4091_v7 = vpop.f32.mrb[42].mxu0 }
 0xe3c   : > { %v2373_v18 = vpop.f32.mrb[43].mxu0 }
 0xe3d   : > { %2435 = vmax.xlane.f32.xlu0 %v2373_v18 }
 0xe3f   : > { %2437 = vmax.xlane.f32.xlu1 %v4090_v17 }
 0xe41   : > { %v4094_v19 = vpop.f32.mrb[44].mxu0 }
 0xe42   : > { %v2386_v22 = vpop.f32.mrb[45].mxu0 }
 0xe43   : > { %2439 = vmax.xlane.f32.xlu1 %v4091_v7  ;;  %v4095_v20 = vpop.f32.mrb[46].mxu0 }
 0xe44   : > { %v2389_v24 = vpop.f32.mrb[47].mxu0 }
 0xe47   : > { %2445 = vmax.xlane.f32.xlu1 %v4094_v19 }
 0xe49   : > { %v5352_v43 = vpop.f32.mrb[48].mxu0 }
 0xe4a   : > { %v2402_v1 = vpop.f32.mrb[49].mxu0 }
 0xe4b   : > { %2441 = vmax.xlane.f32.xlu1 %v2386_v22  ;;  %v5354_v0 = vpop.f32.mrb[50].mxu0 }
 0xe4c   : > { %2455 = vmax.xlane.f32.xlu0 %v5354_v0  ;;  %v5357_v30 = vpop.f32.mrb[51].mxu0 }
 0xe4f   : > { %2447 = vmax.xlane.f32.xlu1 %v4095_v20 }
 0xe51   : > { %v5359_v35 = vpop.f32.mrb[52].mxu0 }
 0xe52   : > { %v5361_v28 = vpop.f32.mrb[53].mxu0 }
 0xe53   : > { %2443 = vmax.xlane.f32.xlu1 %v2389_v24  ;;  %v5363_v27 = vpop.f32.mrb[54].mxu0 }
 0xe54   : > { %v5365_v13 = vpop.f32.mrb[55].mxu0 }
 0xe55   : > { %2459 = vmax.xlane.f32.xlu0 %v5365_v13 }
 0xe57   : > { %2449 = vmax.xlane.f32.xlu1 %v2402_v1 }
 0xe59   : > { %2463 = vmax.xlane.f32.xlu0 %v5363_v27 }
 0xe5b   : > { %2451 = vmax.xlane.f32.xlu1 %v5357_v30 }
 0xe5f   : > { %2453 = vmax.xlane.f32.xlu1 %v5352_v43 }
 0xe63   : > { %2457 = vmax.xlane.f32.xlu1 %v5361_v28 }
 0xe67   : > { %2461 = vmax.xlane.f32.xlu1 %v5359_v35 }
 0xec8   : > { %v2434_v15 = vpop.xlane.xlu1 %2433 }
 0xec9   : > { %v2465_v21 = vsub.f32 %v2370_v54, %v2434_v15 }
 0xeca   : > { %v2436_v16 = vpop.xlane.xlu0 %2435 }
 0xecb   : > { %v2481_v39 = vmul.f32 1.442695, %v2465_v21  ;;  %v2466_v38 = vsub.f32 %v2373_v18, %v2436_v16 }
 0xecc   : > { %v2438_v23 = vpop.xlane.xlu1 %2437 }
 0xecd   : > { %4394 = vpow2.f32 %v2481_v39  ;;  %v2483_v45 = vmul.f32 1.442695, %v2466_v38  ;;  %v2467_v44 = vsub.f32 %v4090_v17, %v2438_v23 }
 0xecf   : > { %4396 = vpow2.f32 %v2483_v45  ;;  %v2485_v40 = vmul.f32 1.442695, %v2467_v44 }
 0xed0   : > { %v2440_v31 = vpop.xlane.xlu1 %2439 }
 0xed1   : > { %4398 = vpow2.f32 %v2485_v40  ;;  %v2468_v41 = vsub.f32 %v4091_v7, %v2440_v31  ;;  %v3716_v31 = vld [vmem:[%s5879_s9 + $0x40] sm:$0xff] }
 0xed3   : > { %v2487_v37 = vmul.f32 1.442695, %v2468_v41  ;;  %v3718_v41 = vld [vmem:[%s5879_s9 + $0x50] sm:$0xff] }
 0xed4   : > { %v2446_v9 = vpop.xlane.xlu1 %2445 }
 0xed5   : > { %4400 = vpow2.f32 %v2487_v37  ;;  %v2471_v49 = vsub.f32 %v4094_v19, %v2446_v9  ;;  %v3717_v37 = vld [vmem:[%s5879_s9 + $0x48] sm:$0xff]  ;;  %v5437_v9 = vpop.f32.mrb[36].mxu1 }
 0xed7   : > { %v5373_v5 = vpop.eup %4394  ;;  %v2493_v63 = vmul.f32 1.442695, %v2471_v49  ;;  %v5442_v49 = vpop.f32.mrb[37].mxu1 }
 0xed8   : > { %v2442_v46 = vpop.xlane.xlu1 %2441  ;;  %2513 = vadd.xlane.f32.xlu1 %v5373_v5 }
 0xed9   : > { %v5376_v14 = vpop.eup %4396  ;;  %v2469_v48 = vsub.f32 %v2386_v22, %v2442_v46  ;;  %v2456_v42 = vpop.xlane.xlu0 %2455  ;;  %v3719_v46 = vld [vmem:[%s5879_s9 + $0x58] sm:$0xff] }
 0xeda   : > { %2515 = vadd.xlane.f32.xlu0 %v5376_v14  ;;  %v2476_v51 = vsub.f32 %v5354_v0, %v2456_v42  ;;  %v3739_v42 = vld [vmem:[%s5881_s11 + $0x58] sm:$0xff] }
 0xedb   : > { %v5379_v34 = vpop.eup %4398  ;;  %v2489_v60 = vmul.f32 1.442695, %v2469_v48  ;;  %v3736_v48 = vld [vmem:[%s5881_s11 + $0x40] sm:$0xff] }
 0xedc   : > { %v2448_v59 = vpop.xlane.xlu1 %2447  ;;  %2517 = vadd.xlane.f32.xlu1 %v5379_v34  ;;  %v2503_v17 = vmul.f32 1.442695, %v2476_v51 }
 0xedd   : > { %4402 = vpow2.f32 %v2489_v60  ;;  %v2472_v6 = vsub.f32 %v4095_v20, %v2448_v59  ;;  %v5447_v60 = vpop.f32.mrb[38].mxu1  ;;  %v3737_v59 = vld [vmem:[%s5881_s11 + $0x48] sm:$0xff] }
 0xede   : > { %4404 = vpow2.f32 %v2493_v63  ;;  %v5452_v63 = vpop.f32.mrb[39].mxu1 }
 0xedf   : > { %v5382_v2 = vpop.eup %4400  ;;  %v2495_v52 = vmul.f32 1.442695, %v2472_v6  ;;  %v3744_v6 = vld [vmem:[%s5882_s12 + $0x40] sm:$0xff] }
 0xee0   : > { %v2444_v3 = vpop.xlane.xlu1 %2443  ;;  %2519 = vadd.xlane.f32.xlu0 %v5382_v2 }
 0xee1   : > { %v2470_v53 = vsub.f32 %v2389_v24, %v2444_v3  ;;  %v3745_v3 = vld [vmem:[%s5882_s12 + $0x48] sm:$0xff] }
 0xee2   : > { %v2460_v61 = vpop.xlane.xlu0 %2459 }
 0xee3   : > { %v2491_v33 = vmul.f32 1.442695, %v2470_v53  ;;  %v2478_v54 = vsub.f32 %v5365_v13, %v2460_v61  ;;  %v3738_v53 = vld [vmem:[%s5881_s11 + $0x50] sm:$0xff] }
 0xee4   : > { %v2450_v10 = vpop.xlane.xlu1 %2449  ;;  %v3750_v61 = vld [vmem:[%s5883_s13 + $0x50] sm:$0xff] }
 0xee5   : > { %4406 = vpow2.f32 %v2491_v33  ;;  %v2473_v12 = vsub.f32 %v2402_v1, %v2450_v10  ;;  %v2507_v24 = vmul.f32 1.442695, %v2478_v54  ;;  %v3748_v33 = vld [vmem:[%s5883_s13 + $0x40] sm:$0xff]  ;;  %v3746_v10 = vld [vmem:[%s5882_s12 + $0x50] sm:$0xff] }
 0xee6   : > { %4408 = vpow2.f32 %v2495_v52  ;;  %v2464_v18 = vpop.xlane.xlu0 %2463  ;;  %v3749_v52 = vld [vmem:[%s5883_s13 + $0x48] sm:$0xff] }
 0xee7   : > { %v5385_v4 = vpop.eup %4402  ;;  %v2497_v11 = vmul.f32 1.442695, %v2473_v12  ;;  %v2480_v1 = vsub.f32 %v5363_v27, %v2464_v18  ;;  %v3747_v12 = vld [vmem:[%s5882_s12 + $0x58] sm:$0xff] }
 0xee8   : > { %v2452_v47 = vpop.xlane.xlu1 %2451  ;;  %2521 = vadd.xlane.f32.xlu1 %v5385_v4  ;;  %v5390_v56 = vpop.eup %4404 }
 0xee9   : > { %4410 = vpow2.f32 %v2497_v11  ;;  %v2474_v8 = vsub.f32 %v5357_v30, %v2452_v47  ;;  %v3751_v11 = vld [vmem:[%s5883_s13 + $0x58] sm:$0xff] }
 0xeeb   : > { %v2499_v32 = vmul.f32 1.442695, %v2474_v8 }
 0xeec   : > { %v2454_v7 = vpop.xlane.xlu1 %2453  ;;  %2525 = vadd.xlane.f32.xlu1 %v5390_v56 }
 0xeed   : > { %4412 = vpow2.f32 %v2499_v32  ;;  %v2475_v19 = vsub.f32 %v5352_v43, %v2454_v7  ;;  %v2511_v43 = vmul.f32 1.442695, %v2480_v1 }
 0xeee   : > { %4414 = vpow2.f32 %v2503_v17 }
 0xeef   : > { %v5395_v22 = vpop.eup %4406  ;;  %v2501_v20 = vmul.f32 1.442695, %v2475_v19 }
 0xef0   : > { %v2458_v0 = vpop.xlane.xlu1 %2457  ;;  %2523 = vadd.xlane.f32.xlu0 %v5395_v22  ;;  %v5400_v13 = vpop.eup %4408 }
 0xef1   : > { %4416 = vpow2.f32 %v2501_v20  ;;  %v2477_v30 = vsub.f32 %v5361_v28, %v2458_v0 }
 0xef2   : > { %4418 = vpow2.f32 %v2507_v24 }
 0xef3   : > { %v5402_v15 = vpop.eup %4410  ;;  %v2505_v21 = vmul.f32 1.442695, %v2477_v30 }
 0xef4   : > { %2529 = vadd.xlane.f32.xlu1 %v5402_v15  ;;  %v2462_v16 = vpop.xlane.xlu1 %2461  ;;  %2527 = vadd.xlane.f32.xlu0 %v5400_v13 }
 0xef5   : > { %4420 = vpow2.f32 %v2505_v21  ;;  %v2479_v27 = vsub.f32 %v5359_v35, %v2462_v16 }
 0xef6   : > { %4422 = vpow2.f32 %v2511_v43 }
 0xef7   : > { %v5407_v39 = vpop.eup %4412  ;;  %v2509_v38 = vmul.f32 1.442695, %v2479_v27 }
 0xef8   : > { %2531 = vadd.xlane.f32.xlu0 %v5407_v39  ;;  %v5410_v28 = vpop.eup %4414 }
 0xef9   : > { %4424 = vpow2.f32 %v2509_v38 }
 0xefb   : > { %v5412_v23 = vpop.eup %4416 }
 0xefc   : > { %2533 = vadd.xlane.f32.xlu1 %v5412_v23  ;;  %2535 = vadd.xlane.f32.xlu0 %v5410_v28  ;;  %v5416_v45 = vpop.eup %4418 }
 0xeff   : > { %v5418_v44 = vpop.eup %4420 }
 0xf00   : > { %2537 = vadd.xlane.f32.xlu1 %v5418_v44  ;;  %2539 = vadd.xlane.f32.xlu0 %v5416_v45  ;;  %v5422_v35 = vpop.eup %4422 }
 0xf03   : > { %v5424_v40 = vpop.eup %4424 }
 0xf04   : > { %2541 = vadd.xlane.f32.xlu1 %v5424_v40  ;;  %2543 = vadd.xlane.f32.xlu0 %v5422_v35 }
 0xf15   : > { %2209 = vperm.xlu1 %4243, %v3716_v31  }
 0xf19   : > { %2219 = vperm.xlu1 %4243, %v3718_v41  }
 0xf1a   : > { %2214 = vperm.xlu0 %4242, %v3717_v37  }
 0xf1d   : > { %2224 = vperm.xlu1 %4243, %v3719_v46  }
 0xf1e   : > { %2693 = vperm.xlu0 %4242, %v3736_v48  }
 0xf21   : > { %2698 = vperm.xlu1 %4243, %v3737_v59  }
 0xf22   : > { %2783 = vperm.xlu0 %4242, %v3744_v6  }
 0xf25   : > { %2788 = vperm.xlu1 %4243, %v3745_v3  }
 0xf26   : > { %2703 = vperm.xlu0 %4242, %v3738_v53  }
 0xf29   : > { %2708 = vperm.xlu1 %4243, %v3739_v42  }
 0xf2a   : > { %2812 = vperm.xlu0 %4242, %v3748_v33  }
 0xf2d   : > { %2817 = vperm.xlu1 %4243, %v3749_v52  }
 0xf2e   : > { %2793 = vperm.xlu0 %4242, %v3746_v10  }
 0xf31   : > { %2798 = vperm.xlu1 %4243, %v3747_v12  }
 0xf32   : > { %2822 = vperm.xlu0 %4242, %v3750_v61  }
 0xf35   : > { %2827 = vperm.xlu1 %4243, %v3751_v11  }
 0xf65   : > { %v2514_v51 = vpop.xlane.xlu1 %2513 }
 0xf67   : > { %v2516_v47 = vpop.xlane.xlu0 %2515 }
 0xf68   : > { %4426 = vrcp.f32 %v2516_v47 }
 0xf69   : > { %v2518_v8 = vpop.xlane.xlu1 %2517  ;;  %4428 = vrcp.f32 %v2514_v51 }
 0xf6a   : > { %4430 = vrcp.f32 %v2518_v8 }
 0xf6d   : > { %v2520_v32 = vpop.xlane.xlu0 %2519 }
 0xf6e   : > { %4432 = vrcp.f32 %v2520_v32 }
 0xf72   : > { %v4427_v54 = vpop.eup %4426 }
 0xf73   : > { %v4429_v18 = vpop.eup %4428  ;;  %v5485_v20 = vmul.f32 %v4427_v54, %v5376_v14 }
 0xf74   : > { %v4431_v24 = vpop.eup %4430  ;;  %v5488_v1 = vmul.f32 %v4429_v18, %v5373_v5 }
 0xf75   : > { %v2522_v17 = vpop.xlane.xlu1 %2521  ;;  %v5491_v30 = vmul.f32 %v4431_v24, %v5379_v34 }
 0xf76   : > { %4434 = vrcp.f32 %v2522_v17  ;;  %v2577_v16 = vadd.f32 %v5485_v20, %v5488_v1 }
 0xf78   : > { %v4433_v0 = vpop.eup %4432  ;;  %v2578_v31 = vadd.f32 %v2577_v16, %v5491_v30 }
 0xf79   : > { %v2526_v7 = vpop.xlane.xlu1 %2525  ;;  %v5496_v38 = vmul.f32 %v4433_v0, %v5382_v2 }
 0xf7a   : > { %4436 = vrcp.f32 %v2526_v7 }
 0xf7b   : > { %v2579_v41 = vadd.f32 %v2578_v31, %v5496_v38 }
 0xf7d   : > { %v2524_v19 = vpop.xlane.xlu0 %2523 }
 0xf7e   : > { %4438 = vrcp.f32 %v2524_v19 }
 0xf80   : > { %v4435_v27 = vpop.eup %4434 }
 0xf81   : > { %v2530_v21 = vpop.xlane.xlu1 %2529  ;;  %v2528_v43 = vpop.xlane.xlu0 %2527  ;;  %v5499_v14 = vmul.f32 %v4435_v27, %v5385_v4 }
 0xf82   : > { %4440 = vrcp.f32 %v2530_v21 }
 0xf83   : > { %4442 = vrcp.f32 %v2528_v43  ;;  %v2580_v2 = vadd.f32 %v2579_v41, %v5499_v14 }
 0xf84   : > { %v4437_v34 = vpop.eup %4436 }
 0xf85   : > { %v2532_v5 = vpop.xlane.xlu0 %2531  ;;  %v5508_v6 = vmul.f32 %v4437_v34, %v5390_v56 }
 0xf86   : > { %4444 = vrcp.f32 %v2532_v5 }
 0xf88   : > { %v4439_v37 = vpop.eup %4438 }
 0xf89   : > { %v5504_v46 = vmul.f32 %v4439_v37, %v5395_v22  ;;  %v2534_v48 = vpop.xlane.xlu1 %2533  ;;  %v2536_v59 = vpop.xlane.xlu0 %2535 }
 0xf8a   : > { %4446 = vrcp.f32 %v2534_v48 }
 0xf8b   : > { %4448 = vrcp.f32 %v2536_v59  ;;  %v2581_v4 = vadd.f32 %v2580_v2, %v5504_v46 }
 0xf8c   : > { %v4441_v3 = vpop.eup %4440 }
 0xf8d   : > { %v4443_v53 = vpop.eup %4442  ;;  %v2538_v42 = vpop.xlane.xlu1 %2537  ;;  %v2582_v52 = vadd.f32 %v2581_v4, %v5508_v6  ;;  %v5516_v12 = vmul.f32 %v4441_v3, %v5402_v15 }
 0xf8e   : > { %v2540_v33 = vpop.xlane.xlu0 %2539  ;;  %v5513_v22 = vmul.f32 %v4443_v53, %v5400_v13  ;;  %4450 = vrcp.f32 %v2538_v42 }
 0xf8f   : > { %4452 = vrcp.f32 %v2540_v33 }
 0xf90   : > { %v4445_v10 = vpop.eup %4444  ;;  %v2583_v56 = vadd.f32 %v2582_v52, %v5513_v22 }
 0xf91   : > { %v5520_v61 = vmul.f32 %v4445_v10, %v5407_v39  ;;  %v2542_v11 = vpop.xlane.xlu1 %2541 }
 0xf92   : > { %v2544_v51 = vpop.xlane.xlu0 %2543  ;;  %4454 = vrcp.f32 %v2542_v11  ;;  %v2584_v47 = vadd.f32 %v2583_v56, %v5516_v12 }
 0xf93   : > { %4456 = vrcp.f32 %v2544_v51 }
 0xf94   : > { %v4447_v8 = vpop.eup %4446  ;;  %v2585_v54 = vadd.f32 %v2584_v47, %v5520_v61 }
 0xf95   : > { %v4449_v13 = vpop.eup %4448  ;;  %v2571_v32 = vmul.f32 %v4447_v8, %v5412_v23  ;;  %v2210_v17 = vpop.permute.xlu1 %2209 }
 0xf96   : > { %v2572_v15 = vmul.f32 %v4449_v13, %v5410_v28  ;;  %v2278_v43 = vadd.f32 %v5442_v49, %v2210_v17 }
 0xf97   : > { %v2586_v7 = vadd.f32 %v2585_v54, %v2571_v32 }
 0xf98   : > { %v4451_v18 = vpop.eup %4450 }
 0xf99   : > { %v4453_v19 = vpop.eup %4452  ;;  %v2573_v39 = vmul.f32 %v4451_v18, %v5418_v44  ;;  %v2220_v24 = vpop.permute.xlu1 %2219  ;;  %v2587_v21 = vadd.f32 %v2586_v7, %v2572_v15 }
 0xf9a   : > { %v2215_v0 = vpop.permute.xlu0 %2214  ;;  %v2574_v27 = vmul.f32 %v4453_v19, %v5416_v45  ;;  %v2286_v48 = vadd.f32 %v5437_v9, %v2220_v24 }
 0xf9b   : > { %v2281_v16 = vadd.f32 %v5452_v63, %v2215_v0  ;;  %v2588_v23 = vadd.f32 %v2587_v21, %v2573_v39 }
 0xf9c   : > { %v4455_v5 = vpop.eup %4454 }
 0xf9d   : > { %v2624_v31 = vpack.c.bf16 %v2281_v16, %v2278_v43  ;;  %v4457_v34 = vpop.eup %4456  ;;  %v2575_v28 = vmul.f32 %v4455_v5, %v5424_v40  ;;  %v2225_v41 = vpop.permute.xlu1 %2224  ;;  %v2589_v37 = vadd.f32 %v2588_v23, %v2574_v27  ;;  %v4257_v5 = vld [vmem:[%s5880_s10 + $0x28] sm:$0xff]  }
 0xf9e   : > { %v2289_v44 = vadd.f32 %v5447_v60, %v2225_v41  ;;  %v2576_v59 = vmul.f32 %v4457_v34, %v5422_v35 }
 0xf9f   : > { %4120 = vmatprep.mubr.bf16.mxu1 %v2624_v31  ;;  %v2590_v49 = vadd.f32 %v2589_v37, %v2575_v28  ;;  %v2694_v31 = vpop.permute.xlu0 %2693 }
 0xfa0   : > { %v2625_v2 = vpack.c.bf16 %v2289_v44, %v2286_v48 }
 0xfa1   : > { %v2591_v63 = vadd.f32 %v2590_v49, %v2576_v59  ;;  %v2699_v34 = vpop.permute.xlu1 %2698 }
 0xfa3   : > { %v2592_v4 = vrot.slane %v2591_v63, 4 }
 0xfa5   : > { %v2593_v45 = vadd.f32 %v2592_v4, %v2591_v63  ;;  %v2789_v41 = vpop.permute.xlu1 %2788 }
 0xfa7   : > { %v2594_v3 = vrot.slane %v2593_v45, 2 }
 0xfa9   : > { %v2595_v53 = vadd.f32 %v2594_v3, %v2593_v45  ;;  %v2709_v48 = vpop.permute.xlu1 %2708 }
 0xfab   : > { %v2596_v42 = vrot.slane %v2595_v53, 1 }
 0xfad   : > { %v2597_v33 = vadd.f32 %v2596_v42, %v2595_v53 }
 0xfaf   : > { %v2598_v52 = vadd.f32 1e-09, %v2597_v33 }
 0xfb1   : > { %4458 = vrcp.f32 %v2598_v52 }
 0xfbb   : > { %v4459_v40 = vpop.eup %4458 }
 0xfbc   : > { %v2600_v10 = vmul.f32 %v4459_v40, %v5488_v1  ;;  %v2601_v9 = vmul.f32 %v4459_v40, %v5485_v20  ;;  %v2602_v60 = vmul.f32 %v4459_v40, %v5491_v30  ;;  %v2603_v35 = vmul.f32 %v4459_v40, %v5496_v38 }
 0xfbd   : > { %v2604_v51 = vmul.f32 %v4459_v40, %v5499_v14  ;;  %v2605_v47 = vmul.f32 %v4459_v40, %v5504_v46  ;;  %v2606_v13 = vmul.f32 %v4459_v40, %v5508_v6  ;;  %v2607_v1 = vmul.f32 %v4459_v40, %v5513_v22 }
 0xfbe   : > { %v2616_v56 = vpack.c.bf16 %v2601_v9, %v2600_v10  ;;  %v2617_v11 = vpack.c.bf16 %v2603_v35, %v2602_v60  ;;  %v2608_v30 = vmul.f32 %v4459_v40, %v5516_v12  ;;  %v2609_v38 = vmul.f32 %v4459_v40, %v5520_v61  ;;  %v4256_v61 = vld [vmem:[%s5880_s10 + $0x20] sm:$0xff]  }
 0xfbf   : > { %v2618_v8 = vpack.c.bf16 %v2605_v47, %v2604_v51  ;;  %v2619_v20 = vpack.c.bf16 %v2607_v1, %v2606_v13  ;;  %v2610_v14 = vmul.f32 %v4459_v40, %v2571_v32  ;;  %v2611_v54 = vmul.f32 %v4459_v40, %v2572_v15  ;;  %4128 = vmatprep.mubr.msk.bf16.mxu0 %vm635_vm1, %v4256_v61 }
 0xfc0   : > { %4104 = vmatprep.subr.bf16.mxu1 %v2616_v56  ;;  %v2620_v17 = vpack.c.bf16 %v2609_v38, %v2608_v30  ;;  %v2612_v7 = vmul.f32 %v4459_v40, %v2573_v39  ;;  %v2613_v18 = vmul.f32 %v4459_v40, %v2574_v27  ;;  %v2614_v22 = vmul.f32 %v4459_v40, %v2575_v28  ;;  %v2784_v28 = vpop.permute.xlu0 %2783 }
 0xfc1   : > { %4105 = vmatpush3.bf16.msra.mxu1 %v2616_v56  ;;  %v2621_v46 = vpack.c.bf16 %v2611_v54, %v2610_v14  ;;  %v2615_v19 = vmul.f32 %v4459_v40, %v2576_v59  ;;  %v2818_v59 = vpop.permute.xlu1 %2817 }
 0xfc2   : > { %4106 = vmatprep.subr.bf16.mxu1 %v2617_v11  ;;  %v2622_v6 = vpack.c.bf16 %v2613_v18, %v2612_v7 }
 0xfc3   : > { %v2623_v12 = vpack.c.bf16 %v2615_v19, %v2614_v22 }
 0xfc4   : > { %v2704_v37 = vpop.permute.xlu0 %2703 }
 0xfc5   : > { %4107 = vmatpush3.bf16.msra.mxu1 %v2617_v11 }
 0xfc6   : > { %4108 = vmatprep.subr.bf16.mxu1 %v2618_v8 }
 0xfc8   : > { %v2813_v44 = vpop.permute.xlu0 %2812 }
 0xfc9   : > { %4109 = vmatpush3.bf16.msra.mxu1 %v2618_v8 }
 0xfca   : > { %4110 = vmatprep.subr.bf16.mxu1 %v2619_v20 }
 0xfcc   : > { %v2794_v49 = vpop.permute.xlu0 %2793 }
 0xfcd   : > { %4111 = vmatpush3.bf16.msra.mxu1 %v2619_v20 }
 0xfce   : > { %4112 = vmatprep.subr.bf16.mxu1 %v2620_v17 }
 0xfd0   : > { %v2823_v40 = vpop.permute.xlu0 %2822 }
 0xfd1   : > { %4113 = vmatpush3.bf16.msra.mxu1 %v2620_v17 }
 0xfd2   : > { %4114 = vmatprep.subr.bf16.mxu1 %v2621_v46 }
 0xfd5   : > { %4115 = vmatpush3.bf16.msra.mxu1 %v2621_v46 }
 0xfd6   : > { %4116 = vmatprep.subr.bf16.mxu1 %v2622_v6 }
 0xfd9   : > { %4117 = vmatpush3.bf16.msra.mxu1 %v2622_v6 }
 0xfda   : > { %4118 = vmatprep.subr.bf16.mxu1 %v2623_v12 }
 0xfdd   : > { %4119 = vmatpush3.bf16.msra.mxu1 %v2623_v12 }
 0xfde   : > { %4132 = vmatprep.subr.bf16.mxu1 %v4591_v26 }
 0xfe0   : > { %4121 = vmatmul.mubr.bf16.vlgmr.msra.gmra.mrb[40].mxu1 %v2625_v2  ;;  %v2799_v2 = vpop.permute.xlu1 %2798 }
 0xfe1   : > { %4136 = vmatprep.mubr.msk.bf16.mxu1 %vm4592_vm3, %v4591_v26 }
 0xfe4   : > { %v2828_v56 = vpop.permute.xlu1 %2827 }
0x10b3   : > { %v4122_v32 = vpop.f32.mrb[40].mxu1 }
0x10b4   : > { %v2660_v15 = vpop.f32.mrb[41].mxu1  ;;  %v2682_v24 = vsub.f32 %v5325_v50, %v4122_v32 }
0x10b5   : > { %v4123_v39 = vpop.f32.mrb[42].mxu1  ;;  %v2680_v43 = vsub.f32 %v5313_v29, %v2660_v15 }
0x10b6   : > { %v2683_v0 = vsub.f32 %v5320_v25, %v4123_v39  ;;  %v2663_v21 = vpop.f32.mrb[43].mxu1 }
0x10b7   : > { %v2681_v16 = vsub.f32 %v5317_v36, %v2663_v21  ;;  %v4259_v21 = vld [vmem:[%s5878_s8 + $0x38] sm:$0xff]  }
0x10b8   : > { %v2685_v27 = vpack.c.bf16 %v2683_v0, %v2682_v24  ;;  %v4258_v0 = vld [vmem:[%s5878_s8 + $0x30] sm:$0xff]  }
0x10b9   : > { %v2684_v23 = vpack.c.bf16 %v2681_v16, %v2680_v43 }
0x10bb   : > { %4124 = vmatprep.subr.bf16.mxu0 %v2684_v23 }
0x10bc   : > { %4125 = vmatpush3.bf16.msra.mxu0 %v2684_v23 }
0x10bd   : > { %4126 = vmatprep.subr.bf16.mxu0 %v2685_v27 }
0x10c0   : > { %4127 = vmatpush3.bf16.msra.mxu0 %v2685_v27 }
0x10c3   : > { %4129 = vmatmul.mubr.msk.bf16.vlgmr.msra.gmra.mrb[56].mxu0 %vm635_vm1, %v4257_v5 }
0x10c4   : > { %4144 = vmatprep.mubr.msk.bf16.mxu0 %vm635_vm1, %v4258_v0 }
0x1196   : > { %v4130_v63 = vpop.f32.mrb[56].mxu0 }
0x1197   : > { %v2770_v4 = vadd.f32 %v4130_v63, %v2704_v37  ;;  %v2761_v45 = vpop.f32.mrb[57].mxu0 }
0x1198   : > { %v2762_v3 = vadd.f32 %v2761_v45, %v2694_v31  ;;  %v4131_v53 = vpop.f32.mrb[58].mxu0 }
0x1199   : > { %v2803_v42 = vmul.f32 %v2794_v49, %v2770_v4  ;;  %v2773_v33 = vadd.f32 %v4131_v53, %v2709_v48  ;;  %v2764_v52 = vpop.f32.mrb[59].mxu0 }
0x119a   : > { %v2801_v10 = vmul.f32 %v2784_v28, %v2762_v3  ;;  %v2765_v9 = vadd.f32 %v2764_v52, %v2699_v34 }
0x119b   : > { %v2832_v60 = vadd.f32 %v2823_v40, %v2803_v42  ;;  %v2804_v35 = vmul.f32 %v2799_v2, %v2773_v33 }
0x119c   : > { %v2830_v11 = vadd.f32 %v2813_v44, %v2801_v10  ;;  %v2802_v51 = vmul.f32 %v2789_v41, %v2765_v9 }
0x119d   : > { %v2836_v47 = vmax.f32 %v2832_v60, 0.0  ;;  %v2833_v8 = vadd.f32 %v2828_v56, %v2804_v35 }
0x119e   : > { %v2834_v13 = vmax.f32 %v2830_v11, 0.0  ;;  %v2831_v1 = vadd.f32 %v2818_v59, %v2802_v51 }
0x119f   : > { %v2840_v20 = vadd.f32 %v2836_v47, %v5325_v50  ;;  %v2837_v30 = vmax.f32 %v2833_v8, 0.0 }
0x11a0   : > { %v2838_v38 = vadd.f32 %v2834_v13, %v5313_v29  ;;  %v2835_v17 = vmax.f32 %v2831_v1, 0.0 }
0x11a1   : > { %2844 = vst [vmem:[%s5051_s24 + $0x50] sm:$0xff] %v2840_v20  ;;  %v2841_v14 = vadd.f32 %v2837_v30, %v5320_v25  ;;  %v5579_v18 = vadd.f32 %v2840_v20, %v4798_v62 }
0x11a2   : > { %2842 = vst [vmem:[%s5051_s24 + $0x40] sm:$0xff] %v2838_v38  ;;  %v2839_v54 = vadd.f32 %v2835_v17, %v5317_v36  ;;  %v5567_v46 = vadd.f32 %v2838_v38, %v4794_v57 }
0x11a3   : > { %2845 = vst [vmem:[%s5051_s24 + $0x58] sm:$0xff] %v2841_v14  ;;  %v5574_v50 = vadd.f32 %v2841_v14, %v4796_v58 }
0x11a4   : > { %2843 = vst [vmem:[%s5051_s24 + $0x48] sm:$0xff] %v2839_v54  ;;  %v5571_v7 = vadd.f32 %v2839_v54, %v4792_v55  ;;  %v3752_v55 = vld [vmem:[%s5877_s7 + $0xc] sm:$0xf] }
0x11a5   : > { %v2851_v36 = vpack.c.bf16 %v5574_v50, %v5579_v18 }
0x11a6   : > { %v2850_v29 = vpack.c.bf16 %v5571_v7, %v5567_v46 }
0x11a8   : > { %4133 = vmatpush3.bf16.msra.mxu1 %v2850_v29  ;;  %4140 = vmatprep.subr.bf16.mxu0 %v2850_v29 }
0x11a9   : > { %4141 = vmatpush3.bf16.msra.mxu0 %v2850_v29  ;;  %4134 = vmatprep.subr.bf16.mxu1 %v4591_v26 }
0x11aa   : > { %4142 = vmatprep.subr.bf16.mxu0 %v2851_v36 }
0x11ac   : > { %4135 = vmatpush3.bf16.msra.mxu1 %v2851_v36 }
0x11ad   : > { %4143 = vmatpush3.bf16.msra.mxu0 %v2851_v36 }
0x11af   : > { %4137 = vmatmul.mubr.msk.bf16.vlgmr.msra.gmra.mrb[44].mxu1 %vm635_vm1, %v3752_v55 }
0x11b0   : > { %4145 = vmatmul.mubr.msk.bf16.vlgmr.msra.gmra.mrb[60].mxu0 %vm635_vm1, %v4259_v21 }
0x1282   : > { %v2891_v57 = vpop.f32.mrb[44].mxu1 }
0x1283   : > { %v2992_v58 = vpack.c.bf16 %v2891_v57, %v2891_v57  ;;  %v4138_v62 = vpop.f32.mrb[45].mxu1 }
0x1284   : > { %v2894_v25 = vpop.f32.mrb[46].mxu1 }
0x1285   : > { %2993 = vxpose.xlu0.c.b16.start.end [1/1] (short) %v2992_v58, 128  ;;  %v4139_v6 = vpop.f32.mrb[47].mxu1  ;;  %4197 = vmatprep.subr.msk.bf16.mxu1 %vm936_vm4, %v2992_v58  ;;  %v3034_v22 = vsel %vm936_vm4, %v2992_v58, 0 }
0x1286   : > { %4149 = vmatpush3.bf16.msra.mxu1 %v3034_v22 }
0x12eb   : > { %v3001_v26 = vpop.trf.xlu0 }
0x12ec   : > { %4150 = vmatprep.mubr.msk.bf16.mxu1 %vm911_vm5, %v3001_v26 }
0x12ef   : > { %v3002_v19 = vpop.trf.xlu0 }
0x12f0   : > { %4151 = vmatmul.mubr.msk.bf16.vlgmr.msra.gmra.mrb[48].mxu1 %vm911_vm5, %v3002_v19 }
0x12f3   : > { %v3003_v12 = vpop.trf.xlu0 }
0x12f4   : > { %4154 = vmatprep.mubr.msk.bf16.mxu1 %vm911_vm5, %v3003_v12 }
0x12f7   : > { %v3004_v61 = vpop.trf.xlu0 }
0x12f8   : > { %4155 = vmatmul.mubr.msk.bf16.gmra.mrb[52].mxu1 %vm911_vm5, %v3004_v61 }
0x12fb   : > { %v3005_v32 = vpop.trf.xlu0 }
0x12fc   : > { %4158 = vmatprep.mubr.msk.bf16.mxu1 %vm911_vm5, %v3005_v32 }
0x12ff   : > { %v3006_v15 = vpop.trf.xlu0 }
0x1300   : > { %4159 = vmatmul.mubr.msk.bf16.gmra.mrb[56].mxu1 %vm911_vm5, %v3006_v15 }
0x1303   : > { %v3007_v39 = vpop.trf.xlu0 }
0x1304   : > { %4162 = vmatprep.mubr.msk.bf16.mxu1 %vm911_vm5, %v3007_v39 }
0x1307   : > { %v3008_v24 = vpop.trf.xlu0 }
0x1308   : > { %4163 = vmatmul.mubr.msk.bf16.gmra.mrb[60].mxu1 %vm911_vm5, %v3008_v24 }
0x13c3   : > { %v4152_v43 = vpop.f32.mrb[48].mxu1 }
0x13c4   : > { %v3070_v16 = vpop.f32.mrb[49].mxu1 }
0x13c5   : > { %3133 = vmax.xlane.f32.xlu1 %v3070_v16  ;;  %v4153_v27 = vpop.f32.mrb[50].mxu1 }
0x13c6   : > { %v3073_v23 = vpop.f32.mrb[51].mxu1 }
0x13c7   : > { %3135 = vmax.xlane.f32.xlu0 %v3073_v23 }
0x13c9   : > { %3137 = vmax.xlane.f32.xlu1 %v4152_v43 }
0x13cb   : > { %v4156_v5 = vpop.f32.mrb[52].mxu1 }
0x13cc   : > { %v3086_v31 = vpop.f32.mrb[53].mxu1 }
0x13cd   : > { %3139 = vmax.xlane.f32.xlu1 %v4153_v27  ;;  %v4157_v34 = vpop.f32.mrb[54].mxu1 }
0x13ce   : > { %v3089_v28 = vpop.f32.mrb[55].mxu1 }
0x13d1   : > { %3145 = vmax.xlane.f32.xlu1 %v4156_v5 }
0x13d3   : > { %v5606_v41 = vpop.f32.mrb[56].mxu1 }
0x13d4   : > { %v3102_v37 = vpop.f32.mrb[57].mxu1 }
0x13d5   : > { %3141 = vmax.xlane.f32.xlu1 %v3086_v31  ;;  %v5608_v48 = vpop.f32.mrb[58].mxu1 }
0x13d6   : > { %3155 = vmax.xlane.f32.xlu0 %v5608_v48  ;;  %v5611_v44 = vpop.f32.mrb[59].mxu1 }
0x13d9   : > { %3147 = vmax.xlane.f32.xlu1 %v4157_v34 }
0x13db   : > { %v5613_v59 = vpop.f32.mrb[60].mxu1 }
0x13dc   : > { %v5615_v49 = vpop.f32.mrb[61].mxu1 }
0x13dd   : > { %3143 = vmax.xlane.f32.xlu1 %v3089_v28  ;;  %v5617_v2 = vpop.f32.mrb[62].mxu1 }
0x13de   : > { %v5619_v63 = vpop.f32.mrb[63].mxu1 }
0x13df   : > { %3159 = vmax.xlane.f32.xlu0 %v5619_v63 }
0x13e1   : > { %3149 = vmax.xlane.f32.xlu1 %v3102_v37 }
0x13e3   : > { %3163 = vmax.xlane.f32.xlu0 %v5617_v2 }
0x13e5   : > { %3151 = vmax.xlane.f32.xlu1 %v5611_v44 }
0x13e9   : > { %3153 = vmax.xlane.f32.xlu1 %v5606_v41 }
0x13ed   : > { %3157 = vmax.xlane.f32.xlu1 %v5615_v49 }
0x13f1   : > { %3161 = vmax.xlane.f32.xlu1 %v5613_v59 }
0x1452   : > { %v3134_v4 = vpop.xlane.xlu1 %3133 }
0x1453   : > { %v3165_v45 = vsub.f32 %v3070_v16, %v3134_v4 }
0x1454   : > { %v3136_v3 = vpop.xlane.xlu0 %3135 }
0x1455   : > { %v3181_v53 = vmul.f32 1.442695, %v3165_v45  ;;  %v3166_v42 = vsub.f32 %v3073_v23, %v3136_v3 }
0x1456   : > { %v3138_v33 = vpop.xlane.xlu1 %3137 }
0x1457   : > { %4460 = vpow2.f32 %v3181_v53  ;;  %v3183_v52 = vmul.f32 1.442695, %v3166_v42  ;;  %v3167_v40 = vsub.f32 %v4152_v43, %v3138_v33  ;;  %v3758_v42 = vld [vmem:[%s5879_s9 + $0x60] sm:$0xff]  ;;  %v3760_v33 = vld [vmem:[%s5879_s9 + $0x70] sm:$0xff] }
0x1459   : > { %4462 = vpow2.f32 %v3183_v52  ;;  %v3185_v10 = vmul.f32 1.442695, %v3167_v40  ;;  %v3759_v52 = vld [vmem:[%s5879_s9 + $0x68] sm:$0xff]  ;;  %v5691_v40 = vpop.f32.mrb[60].mxu0 }
0x145a   : > { %v3140_v9 = vpop.xlane.xlu1 %3139 }
0x145b   : > { %4464 = vpow2.f32 %v3185_v10  ;;  %v3168_v60 = vsub.f32 %v4153_v27, %v3140_v9  ;;  %v3761_v10 = vld [vmem:[%s5879_s9 + $0x78] sm:$0xff]  ;;  %v5696_v9 = vpop.f32.mrb[61].mxu0 }
0x145d   : > { %v3187_v35 = vmul.f32 1.442695, %v3168_v60  ;;  %v3778_v60 = vld [vmem:[%s5881_s11 + $0x60] sm:$0xff] }
0x145e   : > { %v3146_v56 = vpop.xlane.xlu1 %3145 }
0x145f   : > { %4466 = vpow2.f32 %v3187_v35  ;;  %v3171_v8 = vsub.f32 %v4156_v5, %v3146_v56  ;;  %v5701_v35 = vpop.f32.mrb[62].mxu0  ;;  %v3779_v56 = vld [vmem:[%s5881_s11 + $0x68] sm:$0xff] }
0x1461   : > { %v5627_v11 = vpop.eup %4460  ;;  %v3193_v38 = vmul.f32 1.442695, %v3171_v8  ;;  %v3780_v8 = vld [vmem:[%s5881_s11 + $0x70] sm:$0xff] }
0x1462   : > { %v3142_v51 = vpop.xlane.xlu1 %3141  ;;  %3213 = vadd.xlane.f32.xlu1 %v5627_v11 }
0x1463   : > { %v5630_v47 = vpop.eup %4462  ;;  %v3169_v13 = vsub.f32 %v3086_v31, %v3142_v51  ;;  %v3156_v36 = vpop.xlane.xlu0 %3155 }
0x1464   : > { %3215 = vadd.xlane.f32.xlu0 %v5630_v47  ;;  %v3176_v26 = vsub.f32 %v5608_v48, %v3156_v36  ;;  %v5706_v51 = vpop.f32.mrb[63].mxu0  ;;  %v3792_v36 = vld [vmem:[%s5883_s13 + $0x70] sm:$0xff] }
0x1465   : > { %v5633_v1 = vpop.eup %4464  ;;  %v3189_v20 = vmul.f32 1.442695, %v3169_v13  ;;  %v3781_v13 = vld [vmem:[%s5881_s11 + $0x78] sm:$0xff] }
0x1466   : > { %v3148_v30 = vpop.xlane.xlu1 %3147  ;;  %3217 = vadd.xlane.f32.xlu1 %v5633_v1  ;;  %v3203_v15 = vmul.f32 1.442695, %v3176_v26 }
0x1467   : > { %4468 = vpow2.f32 %v3189_v20  ;;  %v3172_v14 = vsub.f32 %v4157_v34, %v3148_v30  ;;  %v3786_v20 = vld [vmem:[%s5882_s12 + $0x60] sm:$0xff]  ;;  %v3787_v30 = vld [vmem:[%s5882_s12 + $0x68] sm:$0xff] }
0x1468   : > { %4470 = vpow2.f32 %v3193_v38  ;;  %v3788_v38 = vld [vmem:[%s5882_s12 + $0x70] sm:$0xff] }
0x1469   : > { %v5636_v17 = vpop.eup %4466  ;;  %v3195_v57 = vmul.f32 1.442695, %v3172_v14  ;;  %v3789_v14 = vld [vmem:[%s5882_s12 + $0x78] sm:$0xff] }
0x146a   : > { %v3144_v54 = vpop.xlane.xlu1 %3143  ;;  %3219 = vadd.xlane.f32.xlu0 %v5636_v17 }
0x146b   : > { %v3170_v29 = vsub.f32 %v3089_v28, %v3144_v54  ;;  %v3790_v54 = vld [vmem:[%s5883_s13 + $0x60] sm:$0xff] }
0x146c   : > { %v3160_v6 = vpop.xlane.xlu0 %3159 }
0x146d   : > { %v3191_v55 = vmul.f32 1.442695, %v3170_v29  ;;  %v3178_v39 = vsub.f32 %v5619_v63, %v3160_v6  ;;  %v3791_v29 = vld [vmem:[%s5883_s13 + $0x68] sm:$0xff] }
0x146e   : > { %v3150_v58 = vpop.xlane.xlu1 %3149 }
0x146f   : > { %4472 = vpow2.f32 %v3191_v55  ;;  %v3173_v62 = vsub.f32 %v3102_v37, %v3150_v58  ;;  %v3207_v27 = vmul.f32 1.442695, %v3178_v39  ;;  %v3793_v55 = vld [vmem:[%s5883_s13 + $0x78] sm:$0xff] }
0x1470   : > { %4474 = vpow2.f32 %v3195_v57  ;;  %v3164_v0 = vpop.xlane.xlu0 %3163 }
0x1471   : > { %v5639_v25 = vpop.eup %4468  ;;  %v3197_v22 = vmul.f32 1.442695, %v3173_v62  ;;  %v3180_v23 = vsub.f32 %v5617_v2, %v3164_v0 }
0x1472   : > { %v3152_v19 = vpop.xlane.xlu1 %3151  ;;  %3221 = vadd.xlane.f32.xlu1 %v5639_v25  ;;  %v5644_v61 = vpop.eup %4470 }
0x1473   : > { %4476 = vpow2.f32 %v3197_v22  ;;  %v3174_v12 = vsub.f32 %v5611_v44, %v3152_v19 }
0x1475   : > { %v3199_v32 = vmul.f32 1.442695, %v3174_v12 }
0x1476   : > { %v3154_v24 = vpop.xlane.xlu1 %3153  ;;  %3225 = vadd.xlane.f32.xlu1 %v5644_v61 }
0x1477   : > { %4478 = vpow2.f32 %v3199_v32  ;;  %v3175_v21 = vsub.f32 %v5606_v41, %v3154_v24  ;;  %v3211_v41 = vmul.f32 1.442695, %v3180_v23 }
0x1478   : > { %4480 = vpow2.f32 %v3203_v15 }
0x1479   : > { %v5649_v43 = vpop.eup %4472  ;;  %v3201_v16 = vmul.f32 1.442695, %v3175_v21 }
0x147a   : > { %v3158_v5 = vpop.xlane.xlu1 %3157  ;;  %3223 = vadd.xlane.f32.xlu0 %v5649_v43  ;;  %v5654_v34 = vpop.eup %4474 }
0x147b   : > { %4482 = vpow2.f32 %v3201_v16  ;;  %v3177_v31 = vsub.f32 %v5615_v49, %v3158_v5 }
0x147c   : > { %4484 = vpow2.f32 %v3207_v27 }
0x147d   : > { %v5656_v28 = vpop.eup %4476  ;;  %v3205_v37 = vmul.f32 1.442695, %v3177_v31 }
0x147e   : > { %3229 = vadd.xlane.f32.xlu1 %v5656_v28  ;;  %v3162_v48 = vpop.xlane.xlu1 %3161  ;;  %3227 = vadd.xlane.f32.xlu0 %v5654_v34 }
0x147f   : > { %4486 = vpow2.f32 %v3205_v37  ;;  %v3179_v44 = vsub.f32 %v5613_v59, %v3162_v48 }
0x1480   : > { %4488 = vpow2.f32 %v3211_v41 }
0x1481   : > { %v5661_v2 = vpop.eup %4478  ;;  %v3209_v63 = vmul.f32 1.442695, %v3179_v44 }
0x1482   : > { %3231 = vadd.xlane.f32.xlu0 %v5661_v2  ;;  %v5664_v49 = vpop.eup %4480 }
0x1483   : > { %4490 = vpow2.f32 %v3209_v63 }
0x1485   : > { %v5666_v4 = vpop.eup %4482 }
0x1486   : > { %3233 = vadd.xlane.f32.xlu1 %v5666_v4  ;;  %3235 = vadd.xlane.f32.xlu0 %v5664_v49  ;;  %v5670_v45 = vpop.eup %4484 }
0x1489   : > { %v5672_v3 = vpop.eup %4486 }
0x148a   : > { %3237 = vadd.xlane.f32.xlu1 %v5672_v3  ;;  %3239 = vadd.xlane.f32.xlu0 %v5670_v45  ;;  %v5676_v59 = vpop.eup %4488 }
0x148d   : > { %v5678_v53 = vpop.eup %4490 }
0x148e   : > { %3241 = vadd.xlane.f32.xlu1 %v5678_v53  ;;  %3243 = vadd.xlane.f32.xlu0 %v5676_v59 }
0x149f   : > { %2909 = vperm.xlu1 %4243, %v3758_v42  }
0x14a3   : > { %2919 = vperm.xlu1 %4243, %v3760_v33  }
0x14a4   : > { %2914 = vperm.xlu0 %4242, %v3759_v52  }
0x14a7   : > { %2924 = vperm.xlu1 %4243, %v3761_v10  }
0x14a8   : > { %3393 = vperm.xlu0 %4242, %v3778_v60  }
0x14ab   : > { %3398 = vperm.xlu1 %4243, %v3779_v56  }
0x14ac   : > { %3403 = vperm.xlu0 %4242, %v3780_v8  }
0x14af   : > { %3408 = vperm.xlu1 %4243, %v3781_v13  }
0x14b0   : > { %3483 = vperm.xlu0 %4242, %v3786_v20  }
0x14b3   : > { %3488 = vperm.xlu1 %4243, %v3787_v30  }
0x14b4   : > { %3493 = vperm.xlu0 %4242, %v3788_v38  }
0x14b7   : > { %3498 = vperm.xlu1 %4243, %v3789_v14  }
0x14b8   : > { %3512 = vperm.xlu0 %4242, %v3790_v54  }
0x14bb   : > { %3517 = vperm.xlu1 %4243, %v3791_v29  }
0x14bc   : > { %3522 = vperm.xlu0 %4242, %v3792_v36  }
0x14bf   : > { %3527 = vperm.xlu1 %4243, %v3793_v55  }
0x14ef   : > { %v3214_v57 = vpop.xlane.xlu1 %3213 }
0x14f1   : > { %v3216_v58 = vpop.xlane.xlu0 %3215 }
0x14f2   : > { %4492 = vrcp.f32 %v3216_v58 }
0x14f3   : > { %v3218_v62 = vpop.xlane.xlu1 %3217  ;;  %4494 = vrcp.f32 %v3214_v57 }
0x14f4   : > { %4496 = vrcp.f32 %v3218_v62 }
0x14f7   : > { %v3220_v6 = vpop.xlane.xlu0 %3219 }
0x14f8   : > { %4498 = vrcp.f32 %v3220_v6 }
0x14fc   : > { %v4493_v26 = vpop.eup %4492 }
0x14fd   : > { %v4495_v12 = vpop.eup %4494  ;;  %v5739_v15 = vmul.f32 %v4493_v26, %v5630_v47 }
0x14fe   : > { %v4497_v39 = vpop.eup %4496  ;;  %v5742_v24 = vmul.f32 %v4495_v12, %v5627_v11 }
0x14ff   : > { %v3222_v22 = vpop.xlane.xlu1 %3221  ;;  %v5745_v21 = vmul.f32 %v4497_v39, %v5633_v1 }
0x1500   : > { %4500 = vrcp.f32 %v3222_v22  ;;  %v3277_v23 = vadd.f32 %v5739_v15, %v5742_v24 }
0x1502   : > { %v4499_v0 = vpop.eup %4498  ;;  %v3278_v37 = vadd.f32 %v3277_v23, %v5745_v21 }
0x1503   : > { %v3226_v19 = vpop.xlane.xlu1 %3225  ;;  %v5750_v31 = vmul.f32 %v4499_v0, %v5636_v17 }
0x1504   : > { %4502 = vrcp.f32 %v3226_v19 }
0x1505   : > { %v3279_v41 = vadd.f32 %v3278_v37, %v5750_v31 }
0x1507   : > { %v3224_v32 = vpop.xlane.xlu0 %3223 }
0x1508   : > { %4504 = vrcp.f32 %v3224_v32 }
0x150a   : > { %v4501_v5 = vpop.eup %4500 }
0x150b   : > { %v3230_v16 = vpop.xlane.xlu1 %3229  ;;  %v3228_v27 = vpop.xlane.xlu0 %3227  ;;  %v5753_v47 = vmul.f32 %v4501_v5, %v5639_v25 }
0x150c   : > { %4506 = vrcp.f32 %v3230_v16 }
0x150d   : > { %4508 = vrcp.f32 %v3228_v27  ;;  %v3280_v17 = vadd.f32 %v3279_v41, %v5753_v47 }
0x150e   : > { %v4503_v1 = vpop.eup %4502 }
0x150f   : > { %v3232_v11 = vpop.xlane.xlu0 %3231  ;;  %v5762_v33 = vmul.f32 %v4503_v1, %v5644_v61 }
0x1510   : > { %4510 = vrcp.f32 %v3232_v11 }
0x1512   : > { %v4505_v48 = vpop.eup %4504 }
0x1513   : > { %v5758_v44 = vmul.f32 %v4505_v48, %v5649_v43  ;;  %v3234_v63 = vpop.xlane.xlu1 %3233  ;;  %v3236_v42 = vpop.xlane.xlu0 %3235 }
0x1514   : > { %4512 = vrcp.f32 %v3234_v63 }
0x1515   : > { %4514 = vrcp.f32 %v3236_v42  ;;  %v3281_v25 = vadd.f32 %v3280_v17, %v5758_v44 }
0x1516   : > { %v4507_v52 = vpop.eup %4506 }
0x1517   : > { %v4509_v10 = vpop.eup %4508  ;;  %v3238_v60 = vpop.xlane.xlu1 %3237  ;;  %v3282_v8 = vadd.f32 %v3281_v25, %v5762_v33  ;;  %v5770_v20 = vmul.f32 %v4507_v52, %v5656_v28 }
0x1518   : > { %v3240_v56 = vpop.xlane.xlu0 %3239  ;;  %v5767_v43 = vmul.f32 %v4509_v10, %v5654_v34  ;;  %4516 = vrcp.f32 %v3238_v60 }
0x1519   : > { %4518 = vrcp.f32 %v3240_v56 }
0x151a   : > { %v4511_v13 = vpop.eup %4510  ;;  %v3283_v61 = vadd.f32 %v3282_v8, %v5767_v43 }
0x151b   : > { %v5774_v30 = vmul.f32 %v4511_v13, %v5661_v2  ;;  %v3242_v38 = vpop.xlane.xlu1 %3241 }
0x151c   : > { %v3244_v14 = vpop.xlane.xlu0 %3243  ;;  %4520 = vrcp.f32 %v3242_v38  ;;  %v3284_v54 = vadd.f32 %v3283_v61, %v5770_v20 }
0x151d   : > { %4522 = vrcp.f32 %v3244_v14 }
0x151e   : > { %v4513_v29 = vpop.eup %4512  ;;  %v3285_v57 = vadd.f32 %v3284_v54, %v5774_v30 }
0x151f   : > { %v4515_v34 = vpop.eup %4514  ;;  %v3271_v36 = vmul.f32 %v4513_v29, %v5666_v4  ;;  %v2910_v55 = vpop.permute.xlu1 %2909 }
0x1520   : > { %v3272_v28 = vmul.f32 %v4515_v34, %v5664_v49  ;;  %v2978_v12 = vadd.f32 %v5696_v9, %v2910_v55 }
0x1521   : > { %v3286_v58 = vadd.f32 %v3285_v57, %v3271_v36 }
0x1522   : > { %v4517_v62 = vpop.eup %4516 }
0x1523   : > { %v4519_v6 = vpop.eup %4518  ;;  %v3273_v2 = vmul.f32 %v4517_v62, %v5672_v3  ;;  %v2920_v22 = vpop.permute.xlu1 %2919  ;;  %v3287_v19 = vadd.f32 %v3286_v58, %v3272_v28 }
0x1524   : > { %v2915_v26 = vpop.permute.xlu0 %2914  ;;  %v3274_v39 = vmul.f32 %v4519_v6, %v5670_v45  ;;  %v2986_v11 = vadd.f32 %v5691_v40, %v2920_v22 }
0x1525   : > { %v2981_v32 = vadd.f32 %v5706_v51, %v2915_v26  ;;  %v3288_v4 = vadd.f32 %v3287_v19, %v3273_v2  ;;  %v4261_v19 = vld [vmem:[%s5880_s10 + $0x38] sm:$0xff]  }
0x1526   : > { %v4521_v0 = vpop.eup %4520 }
0x1527   : > { %v3324_v16 = vpack.c.bf16 %v2981_v32, %v2978_v12  ;;  %v4523_v27 = vpop.eup %4522  ;;  %v3275_v49 = vmul.f32 %v4521_v0, %v5678_v53  ;;  %v2925_v23 = vpop.permute.xlu1 %2924  ;;  %v3289_v5 = vadd.f32 %v3288_v4, %v3274_v39 }
0x1528   : > { %v2989_v3 = vadd.f32 %v5701_v35, %v2925_v23  ;;  %v3276_v37 = vmul.f32 %v4523_v27, %v5676_v59  ;;  %v3394_v12 = vpop.permute.xlu0 %3393 }
0x1529   : > { %4182 = vmatprep.mubr.bf16.mxu0 %v3324_v16  ;;  %v3290_v9 = vadd.f32 %v3289_v5, %v3275_v49 }
0x152a   : > { %v3325_v1 = vpack.c.bf16 %v2989_v3, %v2986_v11 }
0x152b   : > { %v3291_v51 = vadd.f32 %v3290_v9, %v3276_v37  ;;  %v3399_v32 = vpop.permute.xlu1 %3398 }
0x152d   : > { %v3292_v41 = vrot.slane %v3291_v51, 4 }
0x152f   : > { %v3293_v45 = vadd.f32 %v3292_v41, %v3291_v51  ;;  %v3409_v4 = vpop.permute.xlu1 %3408 }
0x1531   : > { %v3294_v48 = vrot.slane %v3293_v45, 2 }
0x1533   : > { %v3295_v63 = vadd.f32 %v3294_v48, %v3293_v45  ;;  %v3489_v16 = vpop.permute.xlu1 %3488 }
0x1535   : > { %v3296_v42 = vrot.slane %v3295_v63, 1 }
0x1537   : > { %v3297_v17 = vadd.f32 %v3296_v42, %v3295_v63 }
0x1539   : > { %v3298_v25 = vadd.f32 1e-09, %v3297_v17 }
0x153b   : > { %4524 = vrcp.f32 %v3298_v25 }
0x1545   : > { %v4525_v53 = vpop.eup %4524 }
0x1546   : > { %v3300_v52 = vmul.f32 %v4525_v53, %v5742_v24  ;;  %v3301_v40 = vmul.f32 %v4525_v53, %v5739_v15  ;;  %v3302_v35 = vmul.f32 %v4525_v53, %v5745_v21  ;;  %v3303_v59 = vmul.f32 %v4525_v53, %v5750_v31 }
0x1547   : > { %v3304_v56 = vmul.f32 %v4525_v53, %v5753_v47  ;;  %v3305_v8 = vmul.f32 %v4525_v53, %v5758_v44  ;;  %v3306_v61 = vmul.f32 %v4525_v53, %v5762_v33  ;;  %v3307_v24 = vmul.f32 %v4525_v53, %v5767_v43 }
0x1548   : > { %v3316_v10 = vpack.c.bf16 %v3301_v40, %v3300_v52  ;;  %v3317_v60 = vpack.c.bf16 %v3303_v59, %v3302_v35  ;;  %v3308_v21 = vmul.f32 %v4525_v53, %v5770_v20  ;;  %v3309_v31 = vmul.f32 %v4525_v53, %v5774_v30  ;;  %v4260_v30 = vld [vmem:[%s5880_s10 + $0x30] sm:$0xff]  }
0x1549   : > { %v3318_v13 = vpack.c.bf16 %v3305_v8, %v3304_v56  ;;  %v3319_v15 = vpack.c.bf16 %v3307_v24, %v3306_v61  ;;  %v3310_v47 = vmul.f32 %v4525_v53, %v3271_v36  ;;  %v3311_v14 = vmul.f32 %v4525_v53, %v3272_v28  ;;  %4190 = vmatprep.mubr.msk.bf16.mxu1 %vm635_vm1, %v4260_v30 }
0x154a   : > { %4166 = vmatprep.subr.bf16.mxu0 %v3316_v10  ;;  %v3320_v38 = vpack.c.bf16 %v3309_v31, %v3308_v21  ;;  %v3312_v54 = vmul.f32 %v4525_v53, %v3273_v2  ;;  %v3313_v29 = vmul.f32 %v4525_v53, %v3274_v39  ;;  %v3314_v43 = vmul.f32 %v4525_v53, %v3275_v49  ;;  %v3404_v39 = vpop.permute.xlu0 %3403  ;;  %v3499_v49 = vpop.permute.xlu1 %3498 }
0x154b   : > { %4167 = vmatpush3.bf16.msra.mxu0 %v3316_v10  ;;  %v3321_v44 = vpack.c.bf16 %v3311_v14, %v3310_v47  ;;  %v3315_v34 = vmul.f32 %v4525_v53, %v3276_v37 }
0x154c   : > { %4168 = vmatprep.subr.bf16.mxu0 %v3317_v60  ;;  %v3322_v33 = vpack.c.bf16 %v3313_v29, %v3312_v54 }
0x154d   : > { %v3323_v20 = vpack.c.bf16 %v3315_v34, %v3314_v43 }
0x154e   : > { %v3484_v0 = vpop.permute.xlu0 %3483  ;;  %v3518_v5 = vpop.permute.xlu1 %3517 }
0x154f   : > { %4169 = vmatpush3.bf16.msra.mxu0 %v3317_v60 }
0x1550   : > { %4170 = vmatprep.subr.bf16.mxu0 %v3318_v13 }
0x1552   : > { %v3494_v27 = vpop.permute.xlu0 %3493  ;;  %v3528_v53 = vpop.permute.xlu1 %3527 }
0x1553   : > { %4171 = vmatpush3.bf16.msra.mxu0 %v3318_v13 }
0x1554   : > { %4172 = vmatprep.subr.bf16.mxu0 %v3319_v15 }
0x1556   : > { %v3513_v23 = vpop.permute.xlu0 %3512 }
0x1557   : > { %4173 = vmatpush3.bf16.msra.mxu0 %v3319_v15 }
0x1558   : > { %4174 = vmatprep.subr.bf16.mxu0 %v3320_v38 }
0x155a   : > { %v3523_v48 = vpop.permute.xlu0 %3522 }
0x155b   : > { %4175 = vmatpush3.bf16.msra.mxu0 %v3320_v38 }
0x155c   : > { %4176 = vmatprep.subr.bf16.mxu0 %v3321_v44 }
0x155f   : > { %4177 = vmatpush3.bf16.msra.mxu0 %v3321_v44 }
0x1560   : > { %4178 = vmatprep.subr.bf16.mxu0 %v3322_v33 }
0x1563   : > { %4179 = vmatpush3.bf16.msra.mxu0 %v3322_v33 }
0x1564   : > { %4180 = vmatprep.subr.bf16.mxu0 %v3323_v20 }
0x1567   : > { %4181 = vmatpush3.bf16.msra.mxu0 %v3323_v20 }
0x156a   : > { %4183 = vmatmul.mubr.bf16.vlgmr.msra.gmra.mrb[64].mxu0 %v3325_v1 }
0x163d   : > { %v4184_v36 = vpop.f32.mrb[64].mxu0 }
0x163e   : > { %v3360_v55 = vpop.f32.mrb[65].mxu0  ;;  %v3382_v28 = vsub.f32 %v5579_v18, %v4184_v36 }
0x163f   : > { %v4185_v57 = vpop.f32.mrb[66].mxu0  ;;  %v3380_v6 = vsub.f32 %v5567_v46, %v3360_v55 }
0x1640   : > { %v3383_v58 = vsub.f32 %v5574_v50, %v4185_v57  ;;  %v3363_v62 = vpop.f32.mrb[67].mxu0 }
0x1641   : > { %v3381_v2 = vsub.f32 %v5571_v7, %v3363_v62 }
0x1642   : > { %v3385_v22 = vpack.c.bf16 %v3383_v58, %v3382_v28 }
0x1643   : > { %v3384_v26 = vpack.c.bf16 %v3381_v2, %v3380_v6 }
0x1645   : > { %4186 = vmatprep.subr.bf16.mxu1 %v3384_v26 }
0x1646   : > { %4187 = vmatpush3.bf16.msra.mxu1 %v3384_v26 }
0x1647   : > { %4188 = vmatprep.subr.bf16.mxu1 %v3385_v22 }
0x164a   : > { %4189 = vmatpush3.bf16.msra.mxu1 %v3385_v22 }
0x164d   : > { %4191 = vmatmul.mubr.msk.bf16.vlgmr.msra.gmra.mrb[64].mxu1 %vm635_vm1, %v4261_v19 }
0x1720   : > { %v4192_v11 = vpop.f32.mrb[64].mxu1 }
0x1721   : > { %v3470_v3 = vadd.f32 %v4192_v11, %v3404_v39  ;;  %v3461_v37 = vpop.f32.mrb[65].mxu1 }
0x1722   : > { %v3462_v9 = vadd.f32 %v3461_v37, %v3394_v12  ;;  %v4193_v1 = vpop.f32.mrb[66].mxu1 }
0x1723   : > { %v3503_v51 = vmul.f32 %v3494_v27, %v3470_v3  ;;  %v3473_v41 = vadd.f32 %v4193_v1, %v3409_v4  ;;  %v3464_v45 = vpop.f32.mrb[67].mxu1 }
0x1724   : > { %v3501_v63 = vmul.f32 %v3484_v0, %v3462_v9  ;;  %v3465_v42 = vadd.f32 %v3464_v45, %v3399_v32 }
0x1725   : > { %v3532_v17 = vadd.f32 %v3523_v48, %v3503_v51  ;;  %v3504_v25 = vmul.f32 %v3499_v49, %v3473_v41 }
0x1726   : > { %v3530_v52 = vadd.f32 %v3513_v23, %v3501_v63  ;;  %v3502_v40 = vmul.f32 %v3489_v16, %v3465_v42 }
0x1727   : > { %v3536_v35 = vmax.f32 %v3532_v17, 0.0  ;;  %v3533_v59 = vadd.f32 %v3528_v53, %v3504_v25 }
0x1728   : > { %v3534_v10 = vmax.f32 %v3530_v52, 0.0  ;;  %v3531_v60 = vadd.f32 %v3518_v5, %v3502_v40 }
0x1729   : > { %v3540_v56 = vadd.f32 %v3536_v35, %v5579_v18  ;;  %v3537_v8 = vmax.f32 %v3533_v59, 0.0 }
0x172a   : > { %v3538_v13 = vadd.f32 %v3534_v10, %v5567_v46  ;;  %v3535_v61 = vmax.f32 %v3531_v60, 0.0 }
0x172b   : > { %3544 = vst [vmem:[%s5051_s24 + $0x70] sm:$0xff] %v3540_v56  ;;  %v3541_v24 = vadd.f32 %v3537_v8, %v5574_v50 }
0x172c   : > { %3542 = vst [vmem:[%s5051_s24 + $0x60] sm:$0xff] %v3538_v13  ;;  %v3539_v18 = vadd.f32 %v3535_v61, %v5571_v7 }
0x172d   : > { %3545 = vst [vmem:[%s5051_s24 + $0x78] sm:$0xff] %v3541_v24 }
0x172e   : > { %3543 = vst [vmem:[%s5051_s24 + $0x68] sm:$0xff] %v3539_v18 }
0x172f   : > { %4539 = shalt.err (!%p4536_p3)
}
0x1730   : > { %s4540_s16 = scalar_lea.hbm %s5819_s29, 2048  ;;  %s4544_s18 = scalar_lea.hbm %s5884_s14, 4096 }
0x1731   : > { %p4541_p4 = scmp.ne.s32.totalorder %s5819_s29, %s4540_s16  ;;  %p4545_p9 = scmp.lt.u32.totalorder %s5819_s29, %s5884_s14 }
0x1732   : > { %p4546_p10 = scmp.lt.u32.totalorder %s4544_s18, %s4540_s16  ;;  %p4548_p12 = scmp.lt.u32.totalorder %s4540_s16, %s5819_s29 }
0x1733   : > { %p4542_p7 = pnand %p4541_p4, %p4709_p5 }
0x1734   : > { %p4547_p11 = por %p4546_p10, %p4545_p9 }
0x1735   : > { %p4543_p8 = pneg %p4542_p7 }
0x1736   : > { %p4549_p13 = por %p4548_p12, %p4547_p11 }
0x1738   : > { %p4550_p0 = pnand %p4549_p13, %p4543_p8 }
0x173a   : > { %4553 = shalt.err (!%p4550_p0)
}
0x173b   : > { %s4594_s22 = smov 128   ;;  %s4595_s19 = smov 8  }
0x173c   : > { %4198 = dma.vmem_to_hbm [thread:$0]  (%p4709_p5), %s5821_s21, 2048, %s5819_s29, %s5829_s17, %s4594_s22, %s4594_s22, %s4595_s19  }
0x173d PF: > { %s5899_s27 = sld [smem:[#allocation7_spill]]  ;;  %s5900_s25 = sld [smem:[#allocation5_spill]] }
0x1743   : > { %p4204_p1 = scmp.ge.s32.totalorder %s5899_s27, 2  ;;  %s3575_s24 = sand.u32 1, %s5900_s25  }
0x1744   : > { %s3576_s16 = scalar_lea.sflag [#allocation3], %s3575_s24 }
0x1745   : > { %p4201_p2 = pnand %p4204_p1, %p4713_p6 }
0x1747   : > { %4571 = dma.done.wait (!%p4201_p2), %s3576_s16, 2048  }
0x1748   : > { %4573 = vsyncadd (!%p4201_p2), %s3576_s16, 4294965248  ;;  %s5902_s16 = sld [smem:[#allocation8_spill]]  ;;  %s5903_s28 = sld [smem:[#allocation6_spill]] }
0x1749   : > { %s5904_s15 = sld [smem:[#allocation9_spill]]  ;;  %s5905_s29 = smov %s4580_s30 }
0x174e   : > { %p24_p3 = scmp.ge.s32.totalorder %s5902_s16, 4   ;;  %s5906_s30 = smov %s5903_s28 }
0x1750   :  { %26 = sbr.rel (!%p24_p3) target bundleno = 3 (0x3), region = 135 }
0x1757   :  { %3581 = vsyncpa [#allocation3], 1 }
0x1758   :  { %3583 = vsyncpa [#allocation3 + $0x1], 1 }

</bundles_post_ra>
